<compile_context>
chip_gen: v6e
topology: v6e:2x2x1
jax: 0.10.0
libtpu: 0.0.40
codegen_flags: <defaults>
</compile_context>

<pallas_src>
import functools
import math

import jax
import jax.numpy as jnp
from jax.experimental import pallas as pl
from jax.experimental.pallas import tpu as pltpu


C_IN, C_LAT = 4, 8                      # encoder C_IN->C_LAT, decoder C_LAT->C_IN
_MAX_POSITIONS_PER_TILE = 32 * 1024     # per-tile VMEM budget (safe for v7x 64 MiB)


# -----------------------------------------------------------------------------
# In-kernel 3x3 "same" convolution in (C, M) layout
# -----------------------------------------------------------------------------
def _conv3x3_cm(x, w9, b, h_idx, w_idx, pad_ref, *, H, W, pad, relu):
    """3x3, stride-1, pad-1 conv (PyTorch cross-correlation semantics).

    x:       (Cin, M) activation value, M = n_imgs*H*W flattened as (n, h, w)
    w9:      (9, Cout, Cin) weights, k = (dh+1)*3 + (dw+1)
    b:       (Cout, 1) float32 bias
    h_idx:   (1, M) int32 per-position h coordinate
    w_idx:   (1, M) int32 per-position w coordinate
    pad_ref: zero-halo VMEM scratch of shape (>=Cin, M + 2*pad)
    """
    cin, m = x.shape
    cout = w9.shape[1]
    # Stage x into the zero-halo scratch so each 3x3 offset is a static slice.
    pad_ref[0:cin, pad:pad + m] = x.astype(pad_ref.dtype)
    acc = jnp.zeros((cout, m), jnp.float32)
    k = 0
    for dh in (-1, 0, 1):
        h_ok = (h_idx + dh >= 0) & (h_idx + dh < H)
        for dw in (-1, 0, 1):
            w_ok = (w_idx + dw >= 0) & (w_idx + dw < W)
            valid = h_ok & w_ok                                   # (1, m)
            shift = dh * W + dw
            xs = pad_ref[0:cin, pad + shift:pad + shift + m]      # shifted window
            xs = jnp.where(valid, xs, 0.0)                        # zero at borders
            acc = acc + jnp.dot(w9[k], xs, preferred_element_type=jnp.float32)
            k += 1
    acc = acc + b                                                 # (Cout,1) broadcast
    if relu:
        acc = jnp.maximum(acc, 0.0)
    return acc


# -----------------------------------------------------------------------------
# Pallas kernels: encoder-only and fused encoder+decoder (latent stays on-chip)
# -----------------------------------------------------------------------------
def _enc_kernel(hw_ref, x_ref, ew_ref, eb_ref, z_ref, pad_ref, *, H, W, pad):
    pad_ref[...] = jnp.zeros_like(pad_ref)
    h_idx = hw_ref[0:1, :]
    w_idx = hw_ref[1:2, :]
    z = _conv3x3_cm(x_ref[...], ew_ref[...], eb_ref[...], h_idx, w_idx, pad_ref,
                    H=H, W=W, pad=pad, relu=True)
    z_ref[...] = z.astype(z_ref.dtype)


def _ae_kernel(hw_ref, x_ref, ew_ref, eb_ref, dw_ref, db_ref, z_ref, r_ref,
               pad_ref, *, H, W, pad):
    pad_ref[...] = jnp.zeros_like(pad_ref)
    h_idx = hw_ref[0:1, :]
    w_idx = hw_ref[1:2, :]
    x = x_ref[...]
    z = _conv3x3_cm(x, ew_ref[...], eb_ref[...], h_idx, w_idx, pad_ref,
                    H=H, W=W, pad=pad, relu=True)                 # encoder + ReLU
    z_ref[...] = z.astype(z_ref.dtype)
    r = _conv3x3_cm(z.astype(x.dtype), dw_ref[...], db_ref[...], h_idx, w_idx,
                    pad_ref, H=H, W=W, pad=pad, relu=False)       # decoder (fused)
    r_ref[...] = r.astype(r_ref.dtype)


# -----------------------------------------------------------------------------
# Layout helpers + wrapper around pallas_call
# -----------------------------------------------------------------------------
def _make_hw(n_imgs, H, W):
    m = jnp.arange(n_imgs * H * W, dtype=jnp.int32)
    p = m % (H * W)
    return jnp.stack([p // W, p % W], axis=0)          # (2, M) int32


def _from_cm(x_cm, n_imgs, H, W):
    c = x_cm.shape[0]
    return x_cm.reshape(c, n_imgs, H, W).transpose(1, 0, 2, 3)


def _pick_num_tiles(n_imgs, px_per_img, max_positions=_MAX_POSITIONS_PER_TILE):
    """Tile whole images along M only when the single-block footprint is large."""
    if n_imgs * px_per_img <= max_positions:
        return 1
    for t in range(2, n_imgs + 1):
        if n_imgs % t:
            continue
        tile_m = (n_imgs // t) * px_per_img
        if tile_m <= max_positions and tile_m % 128 == 0:
            return t
    return 1


def _prep_params(params, compute_dtype):
    enc_w, enc_b = params["enc_w"], params["enc_b"]
    dec_w, dec_b = params["dec_w"], params["dec_b"]
    ew = enc_w.transpose(2, 3, 0, 1).reshape(9, enc_w.shape[0], enc_w.shape[1])
    dw = dec_w.transpose(2, 3, 0, 1).reshape(9, dec_w.shape[0], dec_w.shape[1])
    return (ew.astype(compute_dtype),
            enc_b.reshape(-1, 1).astype(jnp.float32),
            dw.astype(compute_dtype),
            dec_b.reshape(-1, 1).astype(jnp.float32))


def _run_conv_net(prepped, x_nchw, *, decode, compute_dtype):
    """Run encoder (and optionally decoder, fused) over a batch of NCHW images."""
    ew, eb, dw, db = prepped
    n_imgs, c_in, H, W = x_nchw.shape
    c_lat = ew.shape[1]
    M = n_imgs * H * W
    x_cm = x_nchw.transpose(1, 0, 2, 3).reshape(c_in, M).astype(compute_dtype)
    hw = _make_hw(n_imgs, H, W)

    n_tiles = _pick_num_tiles(n_imgs, H * W)
    tile_m = M // n_tiles
    pad = ((W + 1 + 127) // 128) * 128                 # lane-aligned halo offset

    in_specs = [
        pl.BlockSpec((2, tile_m), lambda i: (0, i)),          # h/w indices
        pl.BlockSpec((c_in, tile_m), lambda i: (0, i)),       # activations
        pl.BlockSpec((9, c_lat, c_in), lambda i: (0, 0, 0)),  # encoder weights
        pl.BlockSpec((c_lat, 1), lambda i: (0, 0)),           # encoder bias
    ]
    scratch = [pltpu.VMEM((max(c_in, c_lat), tile_m + 2 * pad), x_cm.dtype)]

    if decode:
        kernel = functools.partial(_ae_kernel, H=H, W=W, pad=pad)
        in_specs = in_specs + [
            pl.BlockSpec((9, c_in, c_lat), lambda i: (0, 0, 0)),  # decoder weights
            pl.BlockSpec((c_in, 1), lambda i: (0, 0)),            # decoder bias
        ]
        out_shape = (jax.ShapeDtypeStruct((c_lat, M), jnp.float32),
                     jax.ShapeDtypeStruct((c_in, M), jnp.float32))
        out_specs = (pl.BlockSpec((c_lat, tile_m), lambda i: (0, i)),
                     pl.BlockSpec((c_in, tile_m), lambda i: (0, i)))
        args = (hw, x_cm, ew, eb, dw, db)
    else:
        kernel = functools.partial(_enc_kernel, H=H, W=W, pad=pad)
        out_shape = jax.ShapeDtypeStruct((c_lat, M), jnp.float32)
        out_specs = pl.BlockSpec((c_lat, tile_m), lambda i: (0, i))
        args = (hw, x_cm, ew, eb)

    outs = pl.pallas_call(
        kernel,
        out_shape=out_shape,
        grid_spec=pltpu.PrefetchScalarGridSpec(
            num_scalar_prefetch=0,
            grid=(n_tiles,),
            in_specs=in_specs,
            out_specs=out_specs,
            scratch_shapes=scratch,
        ),
        compiler_params=pltpu.CompilerParams(
            dimension_semantics=("parallel",)),
    )(*args)

    if decode:
        z_cm, r_cm = outs
        return _from_cm(z_cm, n_imgs, H, W), _from_cm(r_cm, n_imgs, H, W)
    return _from_cm(outs, n_imgs, H, W)


# -----------------------------------------------------------------------------
# ContrastiveNetAE forward (matches PyTorch module semantics)
# -----------------------------------------------------------------------------
def init_params(key):
    """Deterministic PyTorch-like (kaiming-uniform) init for the two convs."""
    k_ew, k_eb, k_dw, k_db = jax.random.split(key, 4)

    def conv_init(kw_, kb_, cout, cin):
        bound = 1.0 / math.sqrt(cin * 9)
        w = jax.random.uniform(kw_, (cout, cin, 3, 3), jnp.float32, -bound, bound)
        b = jax.random.uniform(kb_, (cout,), jnp.float32, -bound, bound)
        return w, b

    enc_w, enc_b = conv_init(k_ew, k_eb, C_LAT, C_IN)
    dec_w, dec_b = conv_init(k_dw, k_db, C_IN, C_LAT)
    return dict(enc_w=enc_w, enc_b=enc_b, dec_w=dec_w, dec_b=dec_b)


def get_embedding(params, x, compute_dtype=jnp.float32):
    return _run_conv_net(_prep_params(params, compute_dtype), x,
                         decode=False, compute_dtype=compute_dtype)


def contrastive_net_ae_forward(params, x_anchor, x_pos=None, x_neg=None,
                               training=False, compute_dtype=jnp.float32):
    prepped = _prep_params(params, compute_dtype)
    # Anchor: encoder + decoder fused in a single kernel (latent stays in VMEM).
    z_anchor, reconstruction = _run_conv_net(prepped, x_anchor, decode=True,
                                             compute_dtype=compute_dtype)
    # TODO(synk): PyTorch also stashes `self.latent_representation` (CPU copy);
    # here the latent is simply returned (functional API).
    if not training:
        return reconstruction, z_anchor

    assert x_pos is not None, "[ContrastiveNet] No positive sample(s) given for training."
    assert x_neg is not None, "[ContrastiveNet] No negative sample(s) given for training."

    def _encode_batches(x):
        # PyTorch loops over the leading dim calling encoder per batch; batching
        # all (P*B) images into ONE encoder kernel call is numerically identical.
        lead = x.shape[:2]
        flat = x.reshape((lead[0] * lead[1],) + x.shape[2:])
        z = _run_conv_net(prepped, flat, decode=False, compute_dtype=compute_dtype)
        return z.reshape(lead + z.shape[1:])

    output_pos = _encode_batches(x_pos)
    output_neg = _encode_batches(x_neg)
    return reconstruction, z_anchor, output_pos, output_neg


# -----------------------------------------------------------------------------
# Plain-JAX reference for correctness checks
# -----------------------------------------------------------------------------
def ref_conv3x3(x, w, b, *, apply_relu):
    out = jax.lax.conv_general_dilated(
        x, w, window_strides=(1, 1), padding="SAME",
        dimension_numbers=("NCHW", "OIHW", "NCHW"))
    out = out + b.reshape(1, -1, 1, 1)
    return jnp.maximum(out, 0.0) if apply_relu else out


if __name__ == "__main__":
    key = jax.random.PRNGKey(0)
    kp, kx, kpos, kneg = jax.random.split(key, 4)
    params = init_params(kp)

    B, H, W = 2, 16, 16
    P = 2  # number of positive / negative batches
    x_anchor = jax.random.normal(kx, (B, C_IN, H, W), jnp.float32)
    x_pos = jax.random.normal(kpos, (P, B, C_IN, H, W), jnp.float32)
    x_neg = jax.random.normal(kneg, (P, B, C_IN, H, W), jnp.float32)

    fwd_train = jax.jit(functools.partial(contrastive_net_ae_forward, training=True))
    recon, z_anchor, z_pos, z_neg = fwd_train(params, x_anchor, x_pos, x_neg)
    jax.block_until_ready((recon, z_anchor, z_pos, z_neg))

    fwd_eval = jax.jit(contrastive_net_ae_forward)
    recon_e, z_e = fwd_eval(params, x_anchor)
    jax.block_until_ready((recon_e, z_e))

    # shape checks (PyTorch semantics)
    assert z_anchor.shape == (B, C_LAT, H, W)
    assert recon.shape == (B, C_IN, H, W)
    assert z_pos.shape == (P, B, C_LAT, H, W)
    assert z_neg.shape == (P, B, C_LAT, H, W)
    assert recon_e.shape == recon.shape and z_e.shape == z_anchor.shape

    # numeric checks against the plain-JAX reference conv
    z_ref = ref_conv3x3(x_anchor, params["enc_w"], params["enc_b"], apply_relu=True)
    r_ref = ref_conv3x3(z_ref, params["dec_w"], params["dec_b"], apply_relu=False)
    zp_ref = ref_conv3x3(x_pos.reshape(P * B, C_IN, H, W), params["enc_w"],
                         params["enc_b"], apply_relu=True).reshape(P, B, C_LAT, H, W)
    zn_ref = ref_conv3x3(x_neg.reshape(P * B, C_IN, H, W), params["enc_w"],
                         params["enc_b"], apply_relu=True).reshape(P, B, C_LAT, H, W)
    assert jnp.allclose(z_anchor, z_ref, atol=1e-4, rtol=1e-4)
    assert jnp.allclose(recon, r_ref, atol=1e-4, rtol=1e-4)
    assert jnp.allclose(z_pos, zp_ref, atol=1e-4, rtol=1e-4)
    assert jnp.allclose(z_neg, zn_ref, atol=1e-4, rtol=1e-4)

    print("KERNEL_OK")
</pallas_src>

<mosaic_0001>
module attributes {stable_mosaic.version = 11 : i64} {
  func.func @_enc_kernel(%arg0: i32, %arg1: memref<2x1024xi32, #tpu.memory_space<vmem>>, %arg2: memref<4x1024xf32, #tpu.memory_space<vmem>>, %arg3: memref<9x8x4xf32, #tpu.memory_space<vmem>>, %arg4: memref<8x1xf32, #tpu.memory_space<vmem>>, %arg5: memref<8x1024xf32, #tpu.memory_space<vmem>>, %arg6: memref<8x1280xf32, #tpu.memory_space<vmem>>) attributes {dimension_semantics = [#tpu.dimension_semantics<parallel>], iteration_bounds = array<i64: 1>, scalar_prefetch = 0 : i64, scratch_operands = 1 : i64, tpu.core_type = #tpu.core_type<tc>, window_params = [{transform_indices = @transform_0, window_bounds = array<i64: 2, 1024>}, {transform_indices = @transform_1, window_bounds = array<i64: 4, 1024>}, {pipeline_mode = #tpu.pipeline_mode<synchronous>, transform_indices = @transform_2, window_bounds = array<i64: 9, 8, 4>}, {pipeline_mode = #tpu.pipeline_mode<synchronous>, transform_indices = @transform_3, window_bounds = array<i64: 8, 1>}, {transform_indices = @transform_4, window_bounds = array<i64: 8, 1024>}]} {
    %cst = arith.constant 0.000000e+00 : f32
    %0 = vector.broadcast %cst : f32 to vector<8x1280xf32>
    %c0 = arith.constant 0 : index
    %c0_0 = arith.constant 0 : index
    %1 = vector.load %arg6[%c0, %c0_0] : memref<8x1280xf32, #tpu.memory_space<vmem>>, vector<8x1280xf32>
    tpu.vector_store %arg6[%c0, %c0_0], %0 {strides = array<i32>} : memref<8x1280xf32, #tpu.memory_space<vmem>>, vector<8x1280xf32>,
    %c0_1 = arith.constant 0 : index
    %c0_2 = arith.constant 0 : index
    %2 = vector.load %arg1[%c0_1, %c0_2] : memref<2x1024xi32, #tpu.memory_space<vmem>>, vector<1x1024xi32>
    %c1 = arith.constant 1 : index
    %c0_3 = arith.constant 0 : index
    %3 = vector.load %arg1[%c1, %c0_3] : memref<2x1024xi32, #tpu.memory_space<vmem>>, vector<1x1024xi32>
    %c0_4 = arith.constant 0 : index
    %c0_5 = arith.constant 0 : index
    %4 = vector.load %arg2[%c0_4, %c0_5] : memref<4x1024xf32, #tpu.memory_space<vmem>>, vector<4x1024xf32>
    %c0_6 = arith.constant 0 : index
    %c0_7 = arith.constant 0 : index
    %c0_8 = arith.constant 0 : index
    %5 = vector.load %arg3[%c0_6, %c0_7, %c0_8] : memref<9x8x4xf32, #tpu.memory_space<vmem>>, vector<9x8x4xf32>
    %c0_9 = arith.constant 0 : index
    %c0_10 = arith.constant 0 : index
    %6 = vector.load %arg4[%c0_9, %c0_10] : memref<8x1xf32, #tpu.memory_space<vmem>>, vector<8x1xf32>
    %c0_11 = arith.constant 0 : index
    %c128 = arith.constant 128 : index
    %7 = vector.load %arg6[%c0_11, %c128] : memref<8x1280xf32, #tpu.memory_space<vmem>>, vector<4x1024xf32>
    tpu.vector_store %arg6[%c0_11, %c128], %4 {strides = array<i32>} : memref<8x1280xf32, #tpu.memory_space<vmem>>, vector<4x1024xf32>,
    %cst_12 = arith.constant 0.000000e+00 : f32
    %8 = vector.broadcast %cst_12 : f32 to vector<8x1024xf32>
    %c-1_i32 = arith.constant -1 : i32
    %9 = vector.broadcast %c-1_i32 : i32 to vector<1x1024xi32>
    %10 = arith.addi %2, %9 : vector<1x1024xi32>
    %c0_i32 = arith.constant 0 : i32
    %11 = vector.broadcast %c0_i32 : i32 to vector<1x1024xi32>
    %12 = arith.cmpi sge, %10, %11 : vector<1x1024xi32>
    %c-1_i32_13 = arith.constant -1 : i32
    %13 = vector.broadcast %c-1_i32_13 : i32 to vector<1x1024xi32>
    %14 = arith.addi %2, %13 : vector<1x1024xi32>
    %c16_i32 = arith.constant 16 : i32
    %15 = vector.broadcast %c16_i32 : i32 to vector<1x1024xi32>
    %16 = arith.cmpi slt, %14, %15 : vector<1x1024xi32>
    %17 = arith.andi %12, %16 : vector<1x1024xi1>
    %c-1_i32_14 = arith.constant -1 : i32
    %18 = vector.broadcast %c-1_i32_14 : i32 to vector<1x1024xi32>
    %19 = arith.addi %3, %18 : vector<1x1024xi32>
    %c0_i32_15 = arith.constant 0 : i32
    %20 = vector.broadcast %c0_i32_15 : i32 to vector<1x1024xi32>
    %21 = arith.cmpi sge, %19, %20 : vector<1x1024xi32>
    %c-1_i32_16 = arith.constant -1 : i32
    %22 = vector.broadcast %c-1_i32_16 : i32 to vector<1x1024xi32>
    %23 = arith.addi %3, %22 : vector<1x1024xi32>
    %c16_i32_17 = arith.constant 16 : i32
    %24 = vector.broadcast %c16_i32_17 : i32 to vector<1x1024xi32>
    %25 = arith.cmpi slt, %23, %24 : vector<1x1024xi32>
    %26 = arith.andi %21, %25 : vector<1x1024xi1>
    %27 = arith.andi %17, %26 : vector<1x1024xi1>
    %c0_18 = arith.constant 0 : index
    %c111 = arith.constant 111 : index
    %28 = vector.load %arg6[%c0_18, %c111] : memref<8x1280xf32, #tpu.memory_space<vmem>>, vector<4x1024xf32>
    %cst_19 = arith.constant 0.000000e+00 : f32
    %29 = vector.shape_cast %27 : vector<1x1024xi1> to vector<1x1024xi1>
    %30 = vector.broadcast %29 : vector<1x1024xi1> to vector<4x1024xi1>
    %31 = vector.broadcast %cst_19 : f32 to vector<4x1024xf32>
    %32 = arith.select %30, %28, %31 : vector<4x1024xi1>, vector<4x1024xf32>
    %33 = vector.extract_strided_slice %5 {offsets = [0, 0, 0], sizes = [1, 8, 4], strides = [1, 1, 1]} : vector<9x8x4xf32> to vector<1x8x4xf32>
    %34 = vector.shape_cast %33 : vector<1x8x4xf32> to vector<8x4xf32>
    %cst_20 = arith.constant dense<0.000000e+00> : vector<8x1024xf32>
    %35 = tpu.matmul %34, %32, %cst_20 {dimension_numbers = #tpu.dot_dimension_numbers<[1], [0], [0], [1], [0, 0, 1, 1], [], []>} : vector<8x4xf32>, vector<4x1024xf32>, vector<8x1024xf32> -> vector<8x1024xf32>
    %36 = arith.addf %8, %35 : vector<8x1024xf32>
    %c0_i32_21 = arith.constant 0 : i32
    %37 = vector.broadcast %c0_i32_21 : i32 to vector<1x1024xi32>
    %38 = arith.addi %3, %37 : vector<1x1024xi32>
    %c0_i32_22 = arith.constant 0 : i32
    %39 = vector.broadcast %c0_i32_22 : i32 to vector<1x1024xi32>
    %40 = arith.cmpi sge, %38, %39 : vector<1x1024xi32>
    %c0_i32_23 = arith.constant 0 : i32
    %41 = vector.broadcast %c0_i32_23 : i32 to vector<1x1024xi32>
    %42 = arith.addi %3, %41 : vector<1x1024xi32>
    %c16_i32_24 = arith.constant 16 : i32
    %43 = vector.broadcast %c16_i32_24 : i32 to vector<1x1024xi32>
    %44 = arith.cmpi slt, %42, %43 : vector<1x1024xi32>
    %45 = arith.andi %40, %44 : vector<1x1024xi1>
    %46 = arith.andi %17, %45 : vector<1x1024xi1>
    %c0_25 = arith.constant 0 : index
    %c112 = arith.constant 112 : index
    %47 = vector.load %arg6[%c0_25, %c112] : memref<8x1280xf32, #tpu.memory_space<vmem>>, vector<4x1024xf32>
    %cst_26 = arith.constant 0.000000e+00 : f32
    %48 = vector.shape_cast %46 : vector<1x1024xi1> to vector<1x1024xi1>
    %49 = vector.broadcast %48 : vector<1x1024xi1> to vector<4x1024xi1>
    %50 = vector.broadcast %cst_26 : f32 to vector<4x1024xf32>
    %51 = arith.select %49, %47, %50 : vector<4x1024xi1>, vector<4x1024xf32>
    %52 = vector.extract_strided_slice %5 {offsets = [1, 0, 0], sizes = [1, 8, 4], strides = [1, 1, 1]} : vector<9x8x4xf32> to vector<1x8x4xf32>
    %53 = vector.shape_cast %52 : vector<1x8x4xf32> to vector<8x4xf32>
    %cst_27 = arith.constant dense<0.000000e+00> : vector<8x1024xf32>
    %54 = tpu.matmul %53, %51, %cst_27 {dimension_numbers = #tpu.dot_dimension_numbers<[1], [0], [0], [1], [0, 0, 1, 1], [], []>} : vector<8x4xf32>, vector<4x1024xf32>, vector<8x1024xf32> -> vector<8x1024xf32>
    %55 = arith.addf %36, %54 : vector<8x1024xf32>
    %c1_i32 = arith.constant 1 : i32
    %56 = vector.broadcast %c1_i32 : i32 to vector<1x1024xi32>
    %57 = arith.addi %3, %56 : vector<1x1024xi32>
    %c0_i32_28 = arith.constant 0 : i32
    %58 = vector.broadcast %c0_i32_28 : i32 to vector<1x1024xi32>
    %59 = arith.cmpi sge, %57, %58 : vector<1x1024xi32>
    %c1_i32_29 = arith.constant 1 : i32
    %60 = vector.broadcast %c1_i32_29 : i32 to vector<1x1024xi32>
    %61 = arith.addi %3, %60 : vector<1x1024xi32>
    %c16_i32_30 = arith.constant 16 : i32
    %62 = vector.broadcast %c16_i32_30 : i32 to vector<1x1024xi32>
    %63 = arith.cmpi slt, %61, %62 : vector<1x1024xi32>
    %64 = arith.andi %59, %63 : vector<1x1024xi1>
    %65 = arith.andi %17, %64 : vector<1x1024xi1>
    %c0_31 = arith.constant 0 : index
    %c113 = arith.constant 113 : index
    %66 = vector.load %arg6[%c0_31, %c113] : memref<8x1280xf32, #tpu.memory_space<vmem>>, vector<4x1024xf32>
    %cst_32 = arith.constant 0.000000e+00 : f32
    %67 = vector.shape_cast %65 : vector<1x1024xi1> to vector<1x1024xi1>
    %68 = vector.broadcast %67 : vector<1x1024xi1> to vector<4x1024xi1>
    %69 = vector.broadcast %cst_32 : f32 to vector<4x1024xf32>
    %70 = arith.select %68, %66, %69 : vector<4x1024xi1>, vector<4x1024xf32>
    %71 = vector.extract_strided_slice %5 {offsets = [2, 0, 0], sizes = [1, 8, 4], strides = [1, 1, 1]} : vector<9x8x4xf32> to vector<1x8x4xf32>
    %72 = vector.shape_cast %71 : vector<1x8x4xf32> to vector<8x4xf32>
    %cst_33 = arith.constant dense<0.000000e+00> : vector<8x1024xf32>
    %73 = tpu.matmul %72, %70, %cst_33 {dimension_numbers = #tpu.dot_dimension_numbers<[1], [0], [0], [1], [0, 0, 1, 1], [], []>} : vector<8x4xf32>, vector<4x1024xf32>, vector<8x1024xf32> -> vector<8x1024xf32>
    %74 = arith.addf %55, %73 : vector<8x1024xf32>
    %c0_i32_34 = arith.constant 0 : i32
    %75 = vector.broadcast %c0_i32_34 : i32 to vector<1x1024xi32>
    %76 = arith.addi %2, %75 : vector<1x1024xi32>
    %c0_i32_35 = arith.constant 0 : i32
    %77 = vector.broadcast %c0_i32_35 : i32 to vector<1x1024xi32>
    %78 = arith.cmpi sge, %76, %77 : vector<1x1024xi32>
    %c0_i32_36 = arith.constant 0 : i32
    %79 = vector.broadcast %c0_i32_36 : i32 to vector<1x1024xi32>
    %80 = arith.addi %2, %79 : vector<1x1024xi32>
    %c16_i32_37 = arith.constant 16 : i32
    %81 = vector.broadcast %c16_i32_37 : i32 to vector<1x1024xi32>
    %82 = arith.cmpi slt, %80, %81 : vector<1x1024xi32>
    %83 = arith.andi %78, %82 : vector<1x1024xi1>
    %c-1_i32_38 = arith.constant -1 : i32
    %84 = vector.broadcast %c-1_i32_38 : i32 to vector<1x1024xi32>
    %85 = arith.addi %3, %84 : vector<1x1024xi32>
    %c0_i32_39 = arith.constant 0 : i32
    %86 = vector.broadcast %c0_i32_39 : i32 to vector<1x1024xi32>
    %87 = arith.cmpi sge, %85, %86 : vector<1x1024xi32>
    %c-1_i32_40 = arith.constant -1 : i32
    %88 = vector.broadcast %c-1_i32_40 : i32 to vector<1x1024xi32>
    %89 = arith.addi %3, %88 : vector<1x1024xi32>
    %c16_i32_41 = arith.constant 16 : i32
    %90 = vector.broadcast %c16_i32_41 : i32 to vector<1x1024xi32>
    %91 = arith.cmpi slt, %89, %90 : vector<1x1024xi32>
    %92 = arith.andi %87, %91 : vector<1x1024xi1>
    %93 = arith.andi %83, %92 : vector<1x1024xi1>
    %c0_42 = arith.constant 0 : index
    %c127 = arith.constant 127 : index
    %94 = vector.load %arg6[%c0_42, %c127] : memref<8x1280xf32, #tpu.memory_space<vmem>>, vector<4x1024xf32>
    %cst_43 = arith.constant 0.000000e+00 : f32
    %95 = vector.shape_cast %93 : vector<1x1024xi1> to vector<1x1024xi1>
    %96 = vector.broadcast %95 : vector<1x1024xi1> to vector<4x1024xi1>
    %97 = vector.broadcast %cst_43 : f32 to vector<4x1024xf32>
    %98 = arith.select %96, %94, %97 : vector<4x1024xi1>, vector<4x1024xf32>
    %99 = vector.extract_strided_slice %5 {offsets = [3, 0, 0], sizes = [1, 8, 4], strides = [1, 1, 1]} : vector<9x8x4xf32> to vector<1x8x4xf32>
    %100 = vector.shape_cast %99 : vector<1x8x4xf32> to vector<8x4xf32>
    %cst_44 = arith.constant dense<0.000000e+00> : vector<8x1024xf32>
    %101 = tpu.matmul %100, %98, %cst_44 {dimension_numbers = #tpu.dot_dimension_numbers<[1], [0], [0], [1], [0, 0, 1, 1], [], []>} : vector<8x4xf32>, vector<4x1024xf32>, vector<8x1024xf32> -> vector<8x1024xf32>
    %102 = arith.addf %74, %101 : vector<8x1024xf32>
    %c0_i32_45 = arith.constant 0 : i32
    %103 = vector.broadcast %c0_i32_45 : i32 to vector<1x1024xi32>
    %104 = arith.addi %3, %103 : vector<1x1024xi32>
    %c0_i32_46 = arith.constant 0 : i32
    %105 = vector.broadcast %c0_i32_46 : i32 to vector<1x1024xi32>
    %106 = arith.cmpi sge, %104, %105 : vector<1x1024xi32>
    %c0_i32_47 = arith.constant 0 : i32
    %107 = vector.broadcast %c0_i32_47 : i32 to vector<1x1024xi32>
    %108 = arith.addi %3, %107 : vector<1x1024xi32>
    %c16_i32_48 = arith.constant 16 : i32
    %109 = vector.broadcast %c16_i32_48 : i32 to vector<1x1024xi32>
    %110 = arith.cmpi slt, %108, %109 : vector<1x1024xi32>
    %111 = arith.andi %106, %110 : vector<1x1024xi1>
    %112 = arith.andi %83, %111 : vector<1x1024xi1>
    %c0_49 = arith.constant 0 : index
    %c128_50 = arith.constant 128 : index
    %113 = vector.load %arg6[%c0_49, %c128_50] : memref<8x1280xf32, #tpu.memory_space<vmem>>, vector<4x1024xf32>
    %cst_51 = arith.constant 0.000000e+00 : f32
    %114 = vector.shape_cast %112 : vector<1x1024xi1> to vector<1x1024xi1>
    %115 = vector.broadcast %114 : vector<1x1024xi1> to vector<4x1024xi1>
    %116 = vector.broadcast %cst_51 : f32 to vector<4x1024xf32>
    %117 = arith.select %115, %113, %116 : vector<4x1024xi1>, vector<4x1024xf32>
    %118 = vector.extract_strided_slice %5 {offsets = [4, 0, 0], sizes = [1, 8, 4], strides = [1, 1, 1]} : vector<9x8x4xf32> to vector<1x8x4xf32>
    %119 = vector.shape_cast %118 : vector<1x8x4xf32> to vector<8x4xf32>
    %cst_52 = arith.constant dense<0.000000e+00> : vector<8x1024xf32>
    %120 = tpu.matmul %119, %117, %cst_52 {dimension_numbers = #tpu.dot_dimension_numbers<[1], [0], [0], [1], [0, 0, 1, 1], [], []>} : vector<8x4xf32>, vector<4x1024xf32>, vector<8x1024xf32> -> vector<8x1024xf32>
    %121 = arith.addf %102, %120 : vector<8x1024xf32>
    %c1_i32_53 = arith.constant 1 : i32
    %122 = vector.broadcast %c1_i32_53 : i32 to vector<1x1024xi32>
    %123 = arith.addi %3, %122 : vector<1x1024xi32>
    %c0_i32_54 = arith.constant 0 : i32
    %124 = vector.broadcast %c0_i32_54 : i32 to vector<1x1024xi32>
    %125 = arith.cmpi sge, %123, %124 : vector<1x1024xi32>
    %c1_i32_55 = arith.constant 1 : i32
    %126 = vector.broadcast %c1_i32_55 : i32 to vector<1x1024xi32>
    %127 = arith.addi %3, %126 : vector<1x1024xi32>
    %c16_i32_56 = arith.constant 16 : i32
    %128 = vector.broadcast %c16_i32_56 : i32 to vector<1x1024xi32>
    %129 = arith.cmpi slt, %127, %128 : vector<1x1024xi32>
    %130 = arith.andi %125, %129 : vector<1x1024xi1>
    %131 = arith.andi %83, %130 : vector<1x1024xi1>
    %c0_57 = arith.constant 0 : index
    %c129 = arith.constant 129 : index
    %132 = vector.load %arg6[%c0_57, %c129] : memref<8x1280xf32, #tpu.memory_space<vmem>>, vector<4x1024xf32>
    %cst_58 = arith.constant 0.000000e+00 : f32
    %133 = vector.shape_cast %131 : vector<1x1024xi1> to vector<1x1024xi1>
    %134 = vector.broadcast %133 : vector<1x1024xi1> to vector<4x1024xi1>
    %135 = vector.broadcast %cst_58 : f32 to vector<4x1024xf32>
    %136 = arith.select %134, %132, %135 : vector<4x1024xi1>, vector<4x1024xf32>
    %137 = vector.extract_strided_slice %5 {offsets = [5, 0, 0], sizes = [1, 8, 4], strides = [1, 1, 1]} : vector<9x8x4xf32> to vector<1x8x4xf32>
    %138 = vector.shape_cast %137 : vector<1x8x4xf32> to vector<8x4xf32>
    %cst_59 = arith.constant dense<0.000000e+00> : vector<8x1024xf32>
    %139 = tpu.matmul %138, %136, %cst_59 {dimension_numbers = #tpu.dot_dimension_numbers<[1], [0], [0], [1], [0, 0, 1, 1], [], []>} : vector<8x4xf32>, vector<4x1024xf32>, vector<8x1024xf32> -> vector<8x1024xf32>
    %140 = arith.addf %121, %139 : vector<8x1024xf32>
    %c1_i32_60 = arith.constant 1 : i32
    %141 = vector.broadcast %c1_i32_60 : i32 to vector<1x1024xi32>
    %142 = arith.addi %2, %141 : vector<1x1024xi32>
    %c0_i32_61 = arith.constant 0 : i32
    %143 = vector.broadcast %c0_i32_61 : i32 to vector<1x1024xi32>
    %144 = arith.cmpi sge, %142, %143 : vector<1x1024xi32>
    %c1_i32_62 = arith.constant 1 : i32
    %145 = vector.broadcast %c1_i32_62 : i32 to vector<1x1024xi32>
    %146 = arith.addi %2, %145 : vector<1x1024xi32>
    %c16_i32_63 = arith.constant 16 : i32
    %147 = vector.broadcast %c16_i32_63 : i32 to vector<1x1024xi32>
    %148 = arith.cmpi slt, %146, %147 : vector<1x1024xi32>
    %149 = arith.andi %144, %148 : vector<1x1024xi1>
    %c-1_i32_64 = arith.constant -1 : i32
    %150 = vector.broadcast %c-1_i32_64 : i32 to vector<1x1024xi32>
    %151 = arith.addi %3, %150 : vector<1x1024xi32>
    %c0_i32_65 = arith.constant 0 : i32
    %152 = vector.broadcast %c0_i32_65 : i32 to vector<1x1024xi32>
    %153 = arith.cmpi sge, %151, %152 : vector<1x1024xi32>
    %c-1_i32_66 = arith.constant -1 : i32
    %154 = vector.broadcast %c-1_i32_66 : i32 to vector<1x1024xi32>
    %155 = arith.addi %3, %154 : vector<1x1024xi32>
    %c16_i32_67 = arith.constant 16 : i32
    %156 = vector.broadcast %c16_i32_67 : i32 to vector<1x1024xi32>
    %157 = arith.cmpi slt, %155, %156 : vector<1x1024xi32>
    %158 = arith.andi %153, %157 : vector<1x1024xi1>
    %159 = arith.andi %149, %158 : vector<1x1024xi1>
    %c0_68 = arith.constant 0 : index
    %c143 = arith.constant 143 : index
    %160 = vector.load %arg6[%c0_68, %c143] : memref<8x1280xf32, #tpu.memory_space<vmem>>, vector<4x1024xf32>
    %cst_69 = arith.constant 0.000000e+00 : f32
    %161 = vector.shape_cast %159 : vector<1x1024xi1> to vector<1x1024xi1>
    %162 = vector.broadcast %161 : vector<1x1024xi1> to vector<4x1024xi1>
    %163 = vector.broadcast %cst_69 : f32 to vector<4x1024xf32>
    %164 = arith.select %162, %160, %163 : vector<4x1024xi1>, vector<4x1024xf32>
    %165 = vector.extract_strided_slice %5 {offsets = [6, 0, 0], sizes = [1, 8, 4], strides = [1, 1, 1]} : vector<9x8x4xf32> to vector<1x8x4xf32>
    %166 = vector.shape_cast %165 : vector<1x8x4xf32> to vector<8x4xf32>
    %cst_70 = arith.constant dense<0.000000e+00> : vector<8x1024xf32>
    %167 = tpu.matmul %166, %164, %cst_70 {dimension_numbers = #tpu.dot_dimension_numbers<[1], [0], [0], [1], [0, 0, 1, 1], [], []>} : vector<8x4xf32>, vector<4x1024xf32>, vector<8x1024xf32> -> vector<8x1024xf32>
    %168 = arith.addf %140, %167 : vector<8x1024xf32>
    %c0_i32_71 = arith.constant 0 : i32
    %169 = vector.broadcast %c0_i32_71 : i32 to vector<1x1024xi32>
    %170 = arith.addi %3, %169 : vector<1x1024xi32>
    %c0_i32_72 = arith.constant 0 : i32
    %171 = vector.broadcast %c0_i32_72 : i32 to vector<1x1024xi32>
    %172 = arith.cmpi sge, %170, %171 : vector<1x1024xi32>
    %c0_i32_73 = arith.constant 0 : i32
    %173 = vector.broadcast %c0_i32_73 : i32 to vector<1x1024xi32>
    %174 = arith.addi %3, %173 : vector<1x1024xi32>
    %c16_i32_74 = arith.constant 16 : i32
    %175 = vector.broadcast %c16_i32_74 : i32 to vector<1x1024xi32>
    %176 = arith.cmpi slt, %174, %175 : vector<1x1024xi32>
    %177 = arith.andi %172, %176 : vector<1x1024xi1>
    %178 = arith.andi %149, %177 : vector<1x1024xi1>
    %c0_75 = arith.constant 0 : index
    %c144 = arith.constant 144 : index
    %179 = vector.load %arg6[%c0_75, %c144] : memref<8x1280xf32, #tpu.memory_space<vmem>>, vector<4x1024xf32>
    %cst_76 = arith.constant 0.000000e+00 : f32
    %180 = vector.shape_cast %178 : vector<1x1024xi1> to vector<1x1024xi1>
    %181 = vector.broadcast %180 : vector<1x1024xi1> to vector<4x1024xi1>
    %182 = vector.broadcast %cst_76 : f32 to vector<4x1024xf32>
    %183 = arith.select %181, %179, %182 : vector<4x1024xi1>, vector<4x1024xf32>
    %184 = vector.extract_strided_slice %5 {offsets = [7, 0, 0], sizes = [1, 8, 4], strides = [1, 1, 1]} : vector<9x8x4xf32> to vector<1x8x4xf32>
    %185 = vector.shape_cast %184 : vector<1x8x4xf32> to vector<8x4xf32>
    %cst_77 = arith.constant dense<0.000000e+00> : vector<8x1024xf32>
    %186 = tpu.matmul %185, %183, %cst_77 {dimension_numbers = #tpu.dot_dimension_numbers<[1], [0], [0], [1], [0, 0, 1, 1], [], []>} : vector<8x4xf32>, vector<4x1024xf32>, vector<8x1024xf32> -> vector<8x1024xf32>
    %187 = arith.addf %168, %186 : vector<8x1024xf32>
    %c1_i32_78 = arith.constant 1 : i32
    %188 = vector.broadcast %c1_i32_78 : i32 to vector<1x1024xi32>
    %189 = arith.addi %3, %188 : vector<1x1024xi32>
    %c0_i32_79 = arith.constant 0 : i32
    %190 = vector.broadcast %c0_i32_79 : i32 to vector<1x1024xi32>
    %191 = arith.cmpi sge, %189, %190 : vector<1x1024xi32>
    %c1_i32_80 = arith.constant 1 : i32
    %192 = vector.broadcast %c1_i32_80 : i32 to vector<1x1024xi32>
    %193 = arith.addi %3, %192 : vector<1x1024xi32>
    %c16_i32_81 = arith.constant 16 : i32
    %194 = vector.broadcast %c16_i32_81 : i32 to vector<1x1024xi32>
    %195 = arith.cmpi slt, %193, %194 : vector<1x1024xi32>
    %196 = arith.andi %191, %195 : vector<1x1024xi1>
    %197 = arith.andi %149, %196 : vector<1x1024xi1>
    %c0_82 = arith.constant 0 : index
    %c145 = arith.constant 145 : index
    %198 = vector.load %arg6[%c0_82, %c145] : memref<8x1280xf32, #tpu.memory_space<vmem>>, vector<4x1024xf32>
    %cst_83 = arith.constant 0.000000e+00 : f32
    %199 = vector.shape_cast %197 : vector<1x1024xi1> to vector<1x1024xi1>
    %200 = vector.broadcast %199 : vector<1x1024xi1> to vector<4x1024xi1>
    %201 = vector.broadcast %cst_83 : f32 to vector<4x1024xf32>
    %202 = arith.select %200, %198, %201 : vector<4x1024xi1>, vector<4x1024xf32>
    %203 = vector.extract_strided_slice %5 {offsets = [8, 0, 0], sizes = [1, 8, 4], strides = [1, 1, 1]} : vector<9x8x4xf32> to vector<1x8x4xf32>
    %204 = vector.shape_cast %203 : vector<1x8x4xf32> to vector<8x4xf32>
    %cst_84 = arith.constant dense<0.000000e+00> : vector<8x1024xf32>
    %205 = tpu.matmul %204, %202, %cst_84 {dimension_numbers = #tpu.dot_dimension_numbers<[1], [0], [0], [1], [0, 0, 1, 1], [], []>} : vector<8x4xf32>, vector<4x1024xf32>, vector<8x1024xf32> -> vector<8x1024xf32>
    %206 = arith.addf %187, %205 : vector<8x1024xf32>
    %207 = vector.broadcast %6 : vector<8x1xf32> to vector<8x1024xf32>
    %208 = arith.addf %206, %207 : vector<8x1024xf32>
    %cst_85 = arith.constant 0.000000e+00 : f32
    %209 = vector.broadcast %cst_85 : f32 to vector<8x1024xf32>
    %210 = arith.maximumf %208, %209 : vector<8x1024xf32>
    %c0_86 = arith.constant 0 : index
    %c0_87 = arith.constant 0 : index
    %211 = vector.load %arg5[%c0_86, %c0_87] : memref<8x1024xf32, #tpu.memory_space<vmem>>, vector<8x1024xf32>
    tpu.vector_store %arg5[%c0_86, %c0_87], %210 {strides = array<i32>} : memref<8x1024xf32, #tpu.memory_space<vmem>>, vector<8x1024xf32>,
    return
  }
  func.func @transform_0(%arg0: i32) -> (i32, i32) {
    %c0_i32 = arith.constant 0 : i32
    %c0_i32_0 = arith.constant 0 : i32
    return %c0_i32, %arg0 : i32, i32
  }
  func.func @transform_1(%arg0: i32) -> (i32, i32) {
    %c0_i32 = arith.constant 0 : i32
    %c0_i32_0 = arith.constant 0 : i32
    return %c0_i32, %arg0 : i32, i32
  }
  func.func @transform_2(%arg0: i32) -> (i32, i32, i32) {
    %c0_i32 = arith.constant 0 : i32
    %c0_i32_0 = arith.constant 0 : i32
    %c0_i32_1 = arith.constant 0 : i32
    %c0_i32_2 = arith.constant 0 : i32
    return %c0_i32, %c0_i32_0, %c0_i32_1 : i32, i32, i32
  }
  func.func @transform_3(%arg0: i32) -> (i32, i32) {
    %c0_i32 = arith.constant 0 : i32
    %c0_i32_0 = arith.constant 0 : i32
    %c0_i32_1 = arith.constant 0 : i32
    return %c0_i32, %c0_i32_0 : i32, i32
  }
  func.func @transform_4(%arg0: i32) -> (i32, i32) {
    %c0_i32 = arith.constant 0 : i32
    %c0_i32_0 = arith.constant 0 : i32
    return %c0_i32, %arg0 : i32, i32
  }
}

module attributes {stable_mosaic.version = 11 : i64} {
  func.func @_ae_kernel(%arg0: i32, %arg1: memref<2x512xi32, #tpu.memory_space<vmem>>, %arg2: memref<4x512xf32, #tpu.memory_space<vmem>>, %arg3: memref<9x8x4xf32, #tpu.memory_space<vmem>>, %arg4: memref<8x1xf32, #tpu.memory_space<vmem>>, %arg5: memref<9x4x8xf32, #tpu.memory_space<vmem>>, %arg6: memref<4x1xf32, #tpu.memory_space<vmem>>, %arg7: memref<8x512xf32, #tpu.memory_space<vmem>>, %arg8: memref<4x512xf32, #tpu.memory_space<vmem>>, %arg9: memref<8x768xf32, #tpu.memory_space<vmem>>) attributes {dimension_semantics = [#tpu.dimension_semantics<parallel>], iteration_bounds = array<i64: 1>, scalar_prefetch = 0 : i64, scratch_operands = 1 : i64, tpu.core_type = #tpu.core_type<tc>, window_params = [{transform_indices = @transform_0, window_bounds = array<i64: 2, 512>}, {transform_indices = @transform_1, window_bounds = array<i64: 4, 512>}, {pipeline_mode = #tpu.pipeline_mode<synchronous>, transform_indices = @transform_2, window_bounds = array<i64: 9, 8, 4>}, {pipeline_mode = #tpu.pipeline_mode<synchronous>, transform_indices = @transform_3, window_bounds = array<i64: 8, 1>}, {pipeline_mode = #tpu.pipeline_mode<synchronous>, transform_indices = @transform_4, window_bounds = array<i64: 9, 4, 8>}, {pipeline_mode = #tpu.pipeline_mode<synchronous>, transform_indices = @transform_5, window_bounds = array<i64: 4, 1>}, {transform_indices = @transform_6, window_bounds = array<i64: 8, 512>}, {transform_indices = @transform_7, window_bounds = array<i64: 4, 512>}]} {
    %cst = arith.constant 0.000000e+00 : f32
    %0 = vector.broadcast %cst : f32 to vector<8x768xf32>
    %c0 = arith.constant 0 : index
    %c0_0 = arith.constant 0 : index
    %1 = vector.load %arg9[%c0, %c0_0] : memref<8x768xf32, #tpu.memory_space<vmem>>, vector<8x768xf32>
    tpu.vector_store %arg9[%c0, %c0_0], %0 {strides = array<i32>} : memref<8x768xf32, #tpu.memory_space<vmem>>, vector<8x768xf32>,
    %c0_1 = arith.constant 0 : index
    %c0_2 = arith.constant 0 : index
    %2 = vector.load %arg1[%c0_1, %c0_2] : memref<2x512xi32, #tpu.memory_space<vmem>>, vector<1x512xi32>
    %c1 = arith.constant 1 : index
    %c0_3 = arith.constant 0 : index
    %3 = vector.load %arg1[%c1, %c0_3] : memref<2x512xi32, #tpu.memory_space<vmem>>, vector<1x512xi32>
    %c0_4 = arith.constant 0 : index
    %c0_5 = arith.constant 0 : index
    %4 = vector.load %arg2[%c0_4, %c0_5] : memref<4x512xf32, #tpu.memory_space<vmem>>, vector<4x512xf32>
    %c0_6 = arith.constant 0 : index
    %c0_7 = arith.constant 0 : index
    %c0_8 = arith.constant 0 : index
    %5 = vector.load %arg3[%c0_6, %c0_7, %c0_8] : memref<9x8x4xf32, #tpu.memory_space<vmem>>, vector<9x8x4xf32>
    %c0_9 = arith.constant 0 : index
    %c0_10 = arith.constant 0 : index
    %6 = vector.load %arg4[%c0_9, %c0_10] : memref<8x1xf32, #tpu.memory_space<vmem>>, vector<8x1xf32>
    %c0_11 = arith.constant 0 : index
    %c128 = arith.constant 128 : index
    %7 = vector.load %arg9[%c0_11, %c128] : memref<8x768xf32, #tpu.memory_space<vmem>>, vector<4x512xf32>
    tpu.vector_store %arg9[%c0_11, %c128], %4 {strides = array<i32>} : memref<8x768xf32, #tpu.memory_space<vmem>>, vector<4x512xf32>,
    %cst_12 = arith.constant 0.000000e+00 : f32
    %8 = vector.broadcast %cst_12 : f32 to vector<8x512xf32>
    %c-1_i32 = arith.constant -1 : i32
    %9 = vector.broadcast %c-1_i32 : i32 to vector<1x512xi32>
    %10 = arith.addi %2, %9 : vector<1x512xi32>
    %c0_i32 = arith.constant 0 : i32
    %11 = vector.broadcast %c0_i32 : i32 to vector<1x512xi32>
    %12 = arith.cmpi sge, %10, %11 : vector<1x512xi32>
    %c-1_i32_13 = arith.constant -1 : i32
    %13 = vector.broadcast %c-1_i32_13 : i32 to vector<1x512xi32>
    %14 = arith.addi %2, %13 : vector<1x512xi32>
    %c16_i32 = arith.constant 16 : i32
    %15 = vector.broadcast %c16_i32 : i32 to vector<1x512xi32>
    %16 = arith.cmpi slt, %14, %15 : vector<1x512xi32>
    %17 = arith.andi %12, %16 : vector<1x512xi1>
    %c-1_i32_14 = arith.constant -1 : i32
    %18 = vector.broadcast %c-1_i32_14 : i32 to vector<1x512xi32>
    %19 = arith.addi %3, %18 : vector<1x512xi32>
    %c0_i32_15 = arith.constant 0 : i32
    %20 = vector.broadcast %c0_i32_15 : i32 to vector<1x512xi32>
    %21 = arith.cmpi sge, %19, %20 : vector<1x512xi32>
    %c-1_i32_16 = arith.constant -1 : i32
    %22 = vector.broadcast %c-1_i32_16 : i32 to vector<1x512xi32>
    %23 = arith.addi %3, %22 : vector<1x512xi32>
    %c16_i32_17 = arith.constant 16 : i32
    %24 = vector.broadcast %c16_i32_17 : i32 to vector<1x512xi32>
    %25 = arith.cmpi slt, %23, %24 : vector<1x512xi32>
    %26 = arith.andi %21, %25 : vector<1x512xi1>
    %27 = arith.andi %17, %26 : vector<1x512xi1>
    %c0_18 = arith.constant 0 : index
    %c111 = arith.constant 111 : index
    %28 = vector.load %arg9[%c0_18, %c111] : memref<8x768xf32, #tpu.memory_space<vmem>>, vector<4x512xf32>
    %cst_19 = arith.constant 0.000000e+00 : f32
    %29 = vector.shape_cast %27 : vector<1x512xi1> to vector<1x512xi1>
    %30 = vector.broadcast %29 : vector<1x512xi1> to vector<4x512xi1>
    %31 = vector.broadcast %cst_19 : f32 to vector<4x512xf32>
    %32 = arith.select %30, %28, %31 : vector<4x512xi1>, vector<4x512xf32>
    %33 = vector.extract_strided_slice %5 {offsets = [0, 0, 0], sizes = [1, 8, 4], strides = [1, 1, 1]} : vector<9x8x4xf32> to vector<1x8x4xf32>
    %34 = vector.shape_cast %33 : vector<1x8x4xf32> to vector<8x4xf32>
    %cst_20 = arith.constant dense<0.000000e+00> : vector<8x512xf32>
    %35 = tpu.matmul %34, %32, %cst_20 {dimension_numbers = #tpu.dot_dimension_numbers<[1], [0], [0], [1], [0, 0, 1, 1], [], []>} : vector<8x4xf32>, vector<4x512xf32>, vector<8x512xf32> -> vector<8x512xf32>
    %36 = arith.addf %8, %35 : vector<8x512xf32>
    %c0_i32_21 = arith.constant 0 : i32
    %37 = vector.broadcast %c0_i32_21 : i32 to vector<1x512xi32>
    %38 = arith.addi %3, %37 : vector<1x512xi32>
    %c0_i32_22 = arith.constant 0 : i32
    %39 = vector.broadcast %c0_i32_22 : i32 to vector<1x512xi32>
    %40 = arith.cmpi sge, %38, %39 : vector<1x512xi32>
    %c0_i32_23 = arith.constant 0 : i32
    %41 = vector.broadcast %c0_i32_23 : i32 to vector<1x512xi32>
    %42 = arith.addi %3, %41 : vector<1x512xi32>
    %c16_i32_24 = arith.constant 16 : i32
    %43 = vector.broadcast %c16_i32_24 : i32 to vector<1x512xi32>
    %44 = arith.cmpi slt, %42, %43 : vector<1x512xi32>
    %45 = arith.andi %40, %44 : vector<1x512xi1>
    %46 = arith.andi %17, %45 : vector<1x512xi1>
    %c0_25 = arith.constant 0 : index
    %c112 = arith.constant 112 : index
    %47 = vector.load %arg9[%c0_25, %c112] : memref<8x768xf32, #tpu.memory_space<vmem>>, vector<4x512xf32>
    %cst_26 = arith.constant 0.000000e+00 : f32
    %48 = vector.shape_cast %46 : vector<1x512xi1> to vector<1x512xi1>
    %49 = vector.broadcast %48 : vector<1x512xi1> to vector<4x512xi1>
    %50 = vector.broadcast %cst_26 : f32 to vector<4x512xf32>
    %51 = arith.select %49, %47, %50 : vector<4x512xi1>, vector<4x512xf32>
    %52 = vector.extract_strided_slice %5 {offsets = [1, 0, 0], sizes = [1, 8, 4], strides = [1, 1, 1]} : vector<9x8x4xf32> to vector<1x8x4xf32>
    %53 = vector.shape_cast %52 : vector<1x8x4xf32> to vector<8x4xf32>
    %cst_27 = arith.constant dense<0.000000e+00> : vector<8x512xf32>
    %54 = tpu.matmul %53, %51, %cst_27 {dimension_numbers = #tpu.dot_dimension_numbers<[1], [0], [0], [1], [0, 0, 1, 1], [], []>} : vector<8x4xf32>, vector<4x512xf32>, vector<8x512xf32> -> vector<8x512xf32>
    %55 = arith.addf %36, %54 : vector<8x512xf32>
    %c1_i32 = arith.constant 1 : i32
    %56 = vector.broadcast %c1_i32 : i32 to vector<1x512xi32>
    %57 = arith.addi %3, %56 : vector<1x512xi32>
    %c0_i32_28 = arith.constant 0 : i32
    %58 = vector.broadcast %c0_i32_28 : i32 to vector<1x512xi32>
    %59 = arith.cmpi sge, %57, %58 : vector<1x512xi32>
    %c1_i32_29 = arith.constant 1 : i32
    %60 = vector.broadcast %c1_i32_29 : i32 to vector<1x512xi32>
    %61 = arith.addi %3, %60 : vector<1x512xi32>
    %c16_i32_30 = arith.constant 16 : i32
    %62 = vector.broadcast %c16_i32_30 : i32 to vector<1x512xi32>
    %63 = arith.cmpi slt, %61, %62 : vector<1x512xi32>
    %64 = arith.andi %59, %63 : vector<1x512xi1>
    %65 = arith.andi %17, %64 : vector<1x512xi1>
    %c0_31 = arith.constant 0 : index
    %c113 = arith.constant 113 : index
    %66 = vector.load %arg9[%c0_31, %c113] : memref<8x768xf32, #tpu.memory_space<vmem>>, vector<4x512xf32>
    %cst_32 = arith.constant 0.000000e+00 : f32
    %67 = vector.shape_cast %65 : vector<1x512xi1> to vector<1x512xi1>
    %68 = vector.broadcast %67 : vector<1x512xi1> to vector<4x512xi1>
    %69 = vector.broadcast %cst_32 : f32 to vector<4x512xf32>
    %70 = arith.select %68, %66, %69 : vector<4x512xi1>, vector<4x512xf32>
    %71 = vector.extract_strided_slice %5 {offsets = [2, 0, 0], sizes = [1, 8, 4], strides = [1, 1, 1]} : vector<9x8x4xf32> to vector<1x8x4xf32>
    %72 = vector.shape_cast %71 : vector<1x8x4xf32> to vector<8x4xf32>
    %cst_33 = arith.constant dense<0.000000e+00> : vector<8x512xf32>
    %73 = tpu.matmul %72, %70, %cst_33 {dimension_numbers = #tpu.dot_dimension_numbers<[1], [0], [0], [1], [0, 0, 1, 1], [], []>} : vector<8x4xf32>, vector<4x512xf32>, vector<8x512xf32> -> vector<8x512xf32>
    %74 = arith.addf %55, %73 : vector<8x512xf32>
    %c0_i32_34 = arith.constant 0 : i32
    %75 = vector.broadcast %c0_i32_34 : i32 to vector<1x512xi32>
    %76 = arith.addi %2, %75 : vector<1x512xi32>
    %c0_i32_35 = arith.constant 0 : i32
    %77 = vector.broadcast %c0_i32_35 : i32 to vector<1x512xi32>
    %78 = arith.cmpi sge, %76, %77 : vector<1x512xi32>
    %c0_i32_36 = arith.constant 0 : i32
    %79 = vector.broadcast %c0_i32_36 : i32 to vector<1x512xi32>
    %80 = arith.addi %2, %79 : vector<1x512xi32>
    %c16_i32_37 = arith.constant 16 : i32
    %81 = vector.broadcast %c16_i32_37 : i32 to vector<1x512xi32>
    %82 = arith.cmpi slt, %80, %81 : vector<1x512xi32>
    %83 = arith.andi %78, %82 : vector<1x512xi1>
    %c-1_i32_38 = arith.constant -1 : i32
    %84 = vector.broadcast %c-1_i32_38 : i32 to vector<1x512xi32>
    %85 = arith.addi %3, %84 : vector<1x512xi32>
    %c0_i32_39 = arith.constant 0 : i32
    %86 = vector.broadcast %c0_i32_39 : i32 to vector<1x512xi32>
    %87 = arith.cmpi sge, %85, %86 : vector<1x512xi32>
    %c-1_i32_40 = arith.constant -1 : i32
    %88 = vector.broadcast %c-1_i32_40 : i32 to vector<1x512xi32>
    %89 = arith.addi %3, %88 : vector<1x512xi32>
    %c16_i32_41 = arith.constant 16 : i32
    %90 = vector.broadcast %c16_i32_41 : i32 to vector<1x512xi32>
    %91 = arith.cmpi slt, %89, %90 : vector<1x512xi32>
    %92 = arith.andi %87, %91 : vector<1x512xi1>
    %93 = arith.andi %83, %92 : vector<1x512xi1>
    %c0_42 = arith.constant 0 : index
    %c127 = arith.constant 127 : index
    %94 = vector.load %arg9[%c0_42, %c127] : memref<8x768xf32, #tpu.memory_space<vmem>>, vector<4x512xf32>
    %cst_43 = arith.constant 0.000000e+00 : f32
    %95 = vector.shape_cast %93 : vector<1x512xi1> to vector<1x512xi1>
    %96 = vector.broadcast %95 : vector<1x512xi1> to vector<4x512xi1>
    %97 = vector.broadcast %cst_43 : f32 to vector<4x512xf32>
    %98 = arith.select %96, %94, %97 : vector<4x512xi1>, vector<4x512xf32>
    %99 = vector.extract_strided_slice %5 {offsets = [3, 0, 0], sizes = [1, 8, 4], strides = [1, 1, 1]} : vector<9x8x4xf32> to vector<1x8x4xf32>
    %100 = vector.shape_cast %99 : vector<1x8x4xf32> to vector<8x4xf32>
    %cst_44 = arith.constant dense<0.000000e+00> : vector<8x512xf32>
    %101 = tpu.matmul %100, %98, %cst_44 {dimension_numbers = #tpu.dot_dimension_numbers<[1], [0], [0], [1], [0, 0, 1, 1], [], []>} : vector<8x4xf32>, vector<4x512xf32>, vector<8x512xf32> -> vector<8x512xf32>
    %102 = arith.addf %74, %101 : vector<8x512xf32>
    %c0_i32_45 = arith.constant 0 : i32
    %103 = vector.broadcast %c0_i32_45 : i32 to vector<1x512xi32>
    %104 = arith.addi %3, %103 : vector<1x512xi32>
    %c0_i32_46 = arith.constant 0 : i32
    %105 = vector.broadcast %c0_i32_46 : i32 to vector<1x512xi32>
    %106 = arith.cmpi sge, %104, %105 : vector<1x512xi32>
    %c0_i32_47 = arith.constant 0 : i32
    %107 = vector.broadcast %c0_i32_47 : i32 to vector<1x512xi32>
    %108 = arith.addi %3, %107 : vector<1x512xi32>
    %c16_i32_48 = arith.constant 16 : i32
    %109 = vector.broadcast %c16_i32_48 : i32 to vector<1x512xi32>
    %110 = arith.cmpi slt, %108, %109 : vector<1x512xi32>
    %111 = arith.andi %106, %110 : vector<1x512xi1>
    %112 = arith.andi %83, %111 : vector<1x512xi1>
    %c0_49 = arith.constant 0 : index
    %c128_50 = arith.constant 128 : index
    %113 = vector.load %arg9[%c0_49, %c128_50] : memref<8x768xf32, #tpu.memory_space<vmem>>, vector<4x512xf32>
    %cst_51 = arith.constant 0.000000e+00 : f32
    %114 = vector.shape_cast %112 : vector<1x512xi1> to vector<1x512xi1>
    %115 = vector.broadcast %114 : vector<1x512xi1> to vector<4x512xi1>
    %116 = vector.broadcast %cst_51 : f32 to vector<4x512xf32>
    %117 = arith.select %115, %113, %116 : vector<4x512xi1>, vector<4x512xf32>
    %118 = vector.extract_strided_slice %5 {offsets = [4, 0, 0], sizes = [1, 8, 4], strides = [1, 1, 1]} : vector<9x8x4xf32> to vector<1x8x4xf32>
    %119 = vector.shape_cast %118 : vector<1x8x4xf32> to vector<8x4xf32>
    %cst_52 = arith.constant dense<0.000000e+00> : vector<8x512xf32>
    %120 = tpu.matmul %119, %117, %cst_52 {dimension_numbers = #tpu.dot_dimension_numbers<[1], [0], [0], [1], [0, 0, 1, 1], [], []>} : vector<8x4xf32>, vector<4x512xf32>, vector<8x512xf32> -> vector<8x512xf32>
    %121 = arith.addf %102, %120 : vector<8x512xf32>
    %c1_i32_53 = arith.constant 1 : i32
    %122 = vector.broadcast %c1_i32_53 : i32 to vector<1x512xi32>
    %123 = arith.addi %3, %122 : vector<1x512xi32>
    %c0_i32_54 = arith.constant 0 : i32
    %124 = vector.broadcast %c0_i32_54 : i32 to vector<1x512xi32>
    %125 = arith.cmpi sge, %123, %124 : vector<1x512xi32>
    %c1_i32_55 = arith.constant 1 : i32
    %126 = vector.broadcast %c1_i32_55 : i32 to vector<1x512xi32>
    %127 = arith.addi %3, %126 : vector<1x512xi32>
    %c16_i32_56 = arith.constant 16 : i32
    %128 = vector.broadcast %c16_i32_56 : i32 to vector<1x512xi32>
    %129 = arith.cmpi slt, %127, %128 : vector<1x512xi32>
    %130 = arith.andi %125, %129 : vector<1x512xi1>
    %131 = arith.andi %83, %130 : vector<1x512xi1>
    %c0_57 = arith.constant 0 : index
    %c129 = arith.constant 129 : index
    %132 = vector.load %arg9[%c0_57, %c129] : memref<8x768xf32, #tpu.memory_space<vmem>>, vector<4x512xf32>
    %cst_58 = arith.constant 0.000000e+00 : f32
    %133 = vector.shape_cast %131 : vector<1x512xi1> to vector<1x512xi1>
    %134 = vector.broadcast %133 : vector<1x512xi1> to vector<4x512xi1>
    %135 = vector.broadcast %cst_58 : f32 to vector<4x512xf32>
    %136 = arith.select %134, %132, %135 : vector<4x512xi1>, vector<4x512xf32>
    %137 = vector.extract_strided_slice %5 {offsets = [5, 0, 0], sizes = [1, 8, 4], strides = [1, 1, 1]} : vector<9x8x4xf32> to vector<1x8x4xf32>
    %138 = vector.shape_cast %137 : vector<1x8x4xf32> to vector<8x4xf32>
    %cst_59 = arith.constant dense<0.000000e+00> : vector<8x512xf32>
    %139 = tpu.matmul %138, %136, %cst_59 {dimension_numbers = #tpu.dot_dimension_numbers<[1], [0], [0], [1], [0, 0, 1, 1], [], []>} : vector<8x4xf32>, vector<4x512xf32>, vector<8x512xf32> -> vector<8x512xf32>
    %140 = arith.addf %121, %139 : vector<8x512xf32>
    %c1_i32_60 = arith.constant 1 : i32
    %141 = vector.broadcast %c1_i32_60 : i32 to vector<1x512xi32>
    %142 = arith.addi %2, %141 : vector<1x512xi32>
    %c0_i32_61 = arith.constant 0 : i32
    %143 = vector.broadcast %c0_i32_61 : i32 to vector<1x512xi32>
    %144 = arith.cmpi sge, %142, %143 : vector<1x512xi32>
    %c1_i32_62 = arith.constant 1 : i32
    %145 = vector.broadcast %c1_i32_62 : i32 to vector<1x512xi32>
    %146 = arith.addi %2, %145 : vector<1x512xi32>
    %c16_i32_63 = arith.constant 16 : i32
    %147 = vector.broadcast %c16_i32_63 : i32 to vector<1x512xi32>
    %148 = arith.cmpi slt, %146, %147 : vector<1x512xi32>
    %149 = arith.andi %144, %148 : vector<1x512xi1>
    %c-1_i32_64 = arith.constant -1 : i32
    %150 = vector.broadcast %c-1_i32_64 : i32 to vector<1x512xi32>
    %151 = arith.addi %3, %150 : vector<1x512xi32>
    %c0_i32_65 = arith.constant 0 : i32
    %152 = vector.broadcast %c0_i32_65 : i32 to vector<1x512xi32>
    %153 = arith.cmpi sge, %151, %152 : vector<1x512xi32>
    %c-1_i32_66 = arith.constant -1 : i32
    %154 = vector.broadcast %c-1_i32_66 : i32 to vector<1x512xi32>
    %155 = arith.addi %3, %154 : vector<1x512xi32>
    %c16_i32_67 = arith.constant 16 : i32
    %156 = vector.broadcast %c16_i32_67 : i32 to vector<1x512xi32>
    %157 = arith.cmpi slt, %155, %156 : vector<1x512xi32>
    %158 = arith.andi %153, %157 : vector<1x512xi1>
    %159 = arith.andi %149, %158 : vector<1x512xi1>
    %c0_68 = arith.constant 0 : index
    %c143 = arith.constant 143 : index
    %160 = vector.load %arg9[%c0_68, %c143] : memref<8x768xf32, #tpu.memory_space<vmem>>, vector<4x512xf32>
    %cst_69 = arith.constant 0.000000e+00 : f32
    %161 = vector.shape_cast %159 : vector<1x512xi1> to vector<1x512xi1>
    %162 = vector.broadcast %161 : vector<1x512xi1> to vector<4x512xi1>
    %163 = vector.broadcast %cst_69 : f32 to vector<4x512xf32>
    %164 = arith.select %162, %160, %163 : vector<4x512xi1>, vector<4x512xf32>
    %165 = vector.extract_strided_slice %5 {offsets = [6, 0, 0], sizes = [1, 8, 4], strides = [1, 1, 1]} : vector<9x8x4xf32> to vector<1x8x4xf32>
    %166 = vector.shape_cast %165 : vector<1x8x4xf32> to vector<8x4xf32>
    %cst_70 = arith.constant dense<0.000000e+00> : vector<8x512xf32>
    %167 = tpu.matmul %166, %164, %cst_70 {dimension_numbers = #tpu.dot_dimension_numbers<[1], [0], [0], [1], [0, 0, 1, 1], [], []>} : vector<8x4xf32>, vector<4x512xf32>, vector<8x512xf32> -> vector<8x512xf32>
    %168 = arith.addf %140, %167 : vector<8x512xf32>
    %c0_i32_71 = arith.constant 0 : i32
    %169 = vector.broadcast %c0_i32_71 : i32 to vector<1x512xi32>
    %170 = arith.addi %3, %169 : vector<1x512xi32>
    %c0_i32_72 = arith.constant 0 : i32
    %171 = vector.broadcast %c0_i32_72 : i32 to vector<1x512xi32>
    %172 = arith.cmpi sge, %170, %171 : vector<1x512xi32>
    %c0_i32_73 = arith.constant 0 : i32
    %173 = vector.broadcast %c0_i32_73 : i32 to vector<1x512xi32>
    %174 = arith.addi %3, %173 : vector<1x512xi32>
    %c16_i32_74 = arith.constant 16 : i32
    %175 = vector.broadcast %c16_i32_74 : i32 to vector<1x512xi32>
    %176 = arith.cmpi slt, %174, %175 : vector<1x512xi32>
    %177 = arith.andi %172, %176 : vector<1x512xi1>
    %178 = arith.andi %149, %177 : vector<1x512xi1>
    %c0_75 = arith.constant 0 : index
    %c144 = arith.constant 144 : index
    %179 = vector.load %arg9[%c0_75, %c144] : memref<8x768xf32, #tpu.memory_space<vmem>>, vector<4x512xf32>
    %cst_76 = arith.constant 0.000000e+00 : f32
    %180 = vector.shape_cast %178 : vector<1x512xi1> to vector<1x512xi1>
    %181 = vector.broadcast %180 : vector<1x512xi1> to vector<4x512xi1>
    %182 = vector.broadcast %cst_76 : f32 to vector<4x512xf32>
    %183 = arith.select %181, %179, %182 : vector<4x512xi1>, vector<4x512xf32>
    %184 = vector.extract_strided_slice %5 {offsets = [7, 0, 0], sizes = [1, 8, 4], strides = [1, 1, 1]} : vector<9x8x4xf32> to vector<1x8x4xf32>
    %185 = vector.shape_cast %184 : vector<1x8x4xf32> to vector<8x4xf32>
    %cst_77 = arith.constant dense<0.000000e+00> : vector<8x512xf32>
    %186 = tpu.matmul %185, %183, %cst_77 {dimension_numbers = #tpu.dot_dimension_numbers<[1], [0], [0], [1], [0, 0, 1, 1], [], []>} : vector<8x4xf32>, vector<4x512xf32>, vector<8x512xf32> -> vector<8x512xf32>
    %187 = arith.addf %168, %186 : vector<8x512xf32>
    %c1_i32_78 = arith.constant 1 : i32
    %188 = vector.broadcast %c1_i32_78 : i32 to vector<1x512xi32>
    %189 = arith.addi %3, %188 : vector<1x512xi32>
    %c0_i32_79 = arith.constant 0 : i32
    %190 = vector.broadcast %c0_i32_79 : i32 to vector<1x512xi32>
    %191 = arith.cmpi sge, %189, %190 : vector<1x512xi32>
    %c1_i32_80 = arith.constant 1 : i32
    %192 = vector.broadcast %c1_i32_80 : i32 to vector<1x512xi32>
    %193 = arith.addi %3, %192 : vector<1x512xi32>
    %c16_i32_81 = arith.constant 16 : i32
    %194 = vector.broadcast %c16_i32_81 : i32 to vector<1x512xi32>
    %195 = arith.cmpi slt, %193, %194 : vector<1x512xi32>
    %196 = arith.andi %191, %195 : vector<1x512xi1>
    %197 = arith.andi %149, %196 : vector<1x512xi1>
    %c0_82 = arith.constant 0 : index
    %c145 = arith.constant 145 : index
    %198 = vector.load %arg9[%c0_82, %c145] : memref<8x768xf32, #tpu.memory_space<vmem>>, vector<4x512xf32>
    %cst_83 = arith.constant 0.000000e+00 : f32
    %199 = vector.shape_cast %197 : vector<1x512xi1> to vector<1x512xi1>
    %200 = vector.broadcast %199 : vector<1x512xi1> to vector<4x512xi1>
    %201 = vector.broadcast %cst_83 : f32 to vector<4x512xf32>
    %202 = arith.select %200, %198, %201 : vector<4x512xi1>, vector<4x512xf32>
    %203 = vector.extract_strided_slice %5 {offsets = [8, 0, 0], sizes = [1, 8, 4], strides = [1, 1, 1]} : vector<9x8x4xf32> to vector<1x8x4xf32>
    %204 = vector.shape_cast %203 : vector<1x8x4xf32> to vector<8x4xf32>
    %cst_84 = arith.constant dense<0.000000e+00> : vector<8x512xf32>
    %205 = tpu.matmul %204, %202, %cst_84 {dimension_numbers = #tpu.dot_dimension_numbers<[1], [0], [0], [1], [0, 0, 1, 1], [], []>} : vector<8x4xf32>, vector<4x512xf32>, vector<8x512xf32> -> vector<8x512xf32>
    %206 = arith.addf %187, %205 : vector<8x512xf32>
    %207 = vector.broadcast %6 : vector<8x1xf32> to vector<8x512xf32>
    %208 = arith.addf %206, %207 : vector<8x512xf32>
    %cst_85 = arith.constant 0.000000e+00 : f32
    %209 = vector.broadcast %cst_85 : f32 to vector<8x512xf32>
    %210 = arith.maximumf %208, %209 : vector<8x512xf32>
    %c0_86 = arith.constant 0 : index
    %c0_87 = arith.constant 0 : index
    %211 = vector.load %arg7[%c0_86, %c0_87] : memref<8x512xf32, #tpu.memory_space<vmem>>, vector<8x512xf32>
    tpu.vector_store %arg7[%c0_86, %c0_87], %210 {strides = array<i32>} : memref<8x512xf32, #tpu.memory_space<vmem>>, vector<8x512xf32>,
    %c0_88 = arith.constant 0 : index
    %c0_89 = arith.constant 0 : index
    %c0_90 = arith.constant 0 : index
    %212 = vector.load %arg5[%c0_88, %c0_89, %c0_90] : memref<9x4x8xf32, #tpu.memory_space<vmem>>, vector<9x4x8xf32>
    %c0_91 = arith.constant 0 : index
    %c0_92 = arith.constant 0 : index
    %213 = vector.load %arg6[%c0_91, %c0_92] : memref<4x1xf32, #tpu.memory_space<vmem>>, vector<4x1xf32>
    %c0_93 = arith.constant 0 : index
    %c128_94 = arith.constant 128 : index
    %214 = vector.load %arg9[%c0_93, %c128_94] : memref<8x768xf32, #tpu.memory_space<vmem>>, vector<8x512xf32>
    tpu.vector_store %arg9[%c0_93, %c128_94], %210 {strides = array<i32>} : memref<8x768xf32, #tpu.memory_space<vmem>>, vector<8x512xf32>,
    %cst_95 = arith.constant 0.000000e+00 : f32
    %215 = vector.broadcast %cst_95 : f32 to vector<4x512xf32>
    %c-1_i32_96 = arith.constant -1 : i32
    %216 = vector.broadcast %c-1_i32_96 : i32 to vector<1x512xi32>
    %217 = arith.addi %2, %216 : vector<1x512xi32>
    %c0_i32_97 = arith.constant 0 : i32
    %218 = vector.broadcast %c0_i32_97 : i32 to vector<1x512xi32>
    %219 = arith.cmpi sge, %217, %218 : vector<1x512xi32>
    %c-1_i32_98 = arith.constant -1 : i32
    %220 = vector.broadcast %c-1_i32_98 : i32 to vector<1x512xi32>
    %221 = arith.addi %2, %220 : vector<1x512xi32>
    %c16_i32_99 = arith.constant 16 : i32
    %222 = vector.broadcast %c16_i32_99 : i32 to vector<1x512xi32>
    %223 = arith.cmpi slt, %221, %222 : vector<1x512xi32>
    %224 = arith.andi %219, %223 : vector<1x512xi1>
    %c-1_i32_100 = arith.constant -1 : i32
    %225 = vector.broadcast %c-1_i32_100 : i32 to vector<1x512xi32>
    %226 = arith.addi %3, %225 : vector<1x512xi32>
    %c0_i32_101 = arith.constant 0 : i32
    %227 = vector.broadcast %c0_i32_101 : i32 to vector<1x512xi32>
    %228 = arith.cmpi sge, %226, %227 : vector<1x512xi32>
    %c-1_i32_102 = arith.constant -1 : i32
    %229 = vector.broadcast %c-1_i32_102 : i32 to vector<1x512xi32>
    %230 = arith.addi %3, %229 : vector<1x512xi32>
    %c16_i32_103 = arith.constant 16 : i32
    %231 = vector.broadcast %c16_i32_103 : i32 to vector<1x512xi32>
    %232 = arith.cmpi slt, %230, %231 : vector<1x512xi32>
    %233 = arith.andi %228, %232 : vector<1x512xi1>
    %234 = arith.andi %224, %233 : vector<1x512xi1>
    %c0_104 = arith.constant 0 : index
    %c111_105 = arith.constant 111 : index
    %235 = vector.load %arg9[%c0_104, %c111_105] : memref<8x768xf32, #tpu.memory_space<vmem>>, vector<8x512xf32>
    %cst_106 = arith.constant 0.000000e+00 : f32
    %236 = vector.shape_cast %234 : vector<1x512xi1> to vector<1x512xi1>
    %237 = vector.broadcast %236 : vector<1x512xi1> to vector<8x512xi1>
    %238 = vector.broadcast %cst_106 : f32 to vector<8x512xf32>
    %239 = arith.select %237, %235, %238 : vector<8x512xi1>, vector<8x512xf32>
    %240 = vector.extract_strided_slice %212 {offsets = [0, 0, 0], sizes = [1, 4, 8], strides = [1, 1, 1]} : vector<9x4x8xf32> to vector<1x4x8xf32>
    %241 = vector.shape_cast %240 : vector<1x4x8xf32> to vector<4x8xf32>
    %cst_107 = arith.constant dense<0.000000e+00> : vector<4x512xf32>
    %242 = tpu.matmul %241, %239, %cst_107 {dimension_numbers = #tpu.dot_dimension_numbers<[1], [0], [0], [1], [0, 0, 1, 1], [], []>} : vector<4x8xf32>, vector<8x512xf32>, vector<4x512xf32> -> vector<4x512xf32>
    %243 = arith.addf %215, %242 : vector<4x512xf32>
    %c0_i32_108 = arith.constant 0 : i32
    %244 = vector.broadcast %c0_i32_108 : i32 to vector<1x512xi32>
    %245 = arith.addi %3, %244 : vector<1x512xi32>
    %c0_i32_109 = arith.constant 0 : i32
    %246 = vector.broadcast %c0_i32_109 : i32 to vector<1x512xi32>
    %247 = arith.cmpi sge, %245, %246 : vector<1x512xi32>
    %c0_i32_110 = arith.constant 0 : i32
    %248 = vector.broadcast %c0_i32_110 : i32 to vector<1x512xi32>
    %249 = arith.addi %3, %248 : vector<1x512xi32>
    %c16_i32_111 = arith.constant 16 : i32
    %250 = vector.broadcast %c16_i32_111 : i32 to vector<1x512xi32>
    %251 = arith.cmpi slt, %249, %250 : vector<1x512xi32>
    %252 = arith.andi %247, %251 : vector<1x512xi1>
    %253 = arith.andi %224, %252 : vector<1x512xi1>
    %c0_112 = arith.constant 0 : index
    %c112_113 = arith.constant 112 : index
    %254 = vector.load %arg9[%c0_112, %c112_113] : memref<8x768xf32, #tpu.memory_space<vmem>>, vector<8x512xf32>
    %cst_114 = arith.constant 0.000000e+00 : f32
    %255 = vector.shape_cast %253 : vector<1x512xi1> to vector<1x512xi1>
    %256 = vector.broadcast %255 : vector<1x512xi1> to vector<8x512xi1>
    %257 = vector.broadcast %cst_114 : f32 to vector<8x512xf32>
    %258 = arith.select %256, %254, %257 : vector<8x512xi1>, vector<8x512xf32>
    %259 = vector.extract_strided_slice %212 {offsets = [1, 0, 0], sizes = [1, 4, 8], strides = [1, 1, 1]} : vector<9x4x8xf32> to vector<1x4x8xf32>
    %260 = vector.shape_cast %259 : vector<1x4x8xf32> to vector<4x8xf32>
    %cst_115 = arith.constant dense<0.000000e+00> : vector<4x512xf32>
    %261 = tpu.matmul %260, %258, %cst_115 {dimension_numbers = #tpu.dot_dimension_numbers<[1], [0], [0], [1], [0, 0, 1, 1], [], []>} : vector<4x8xf32>, vector<8x512xf32>, vector<4x512xf32> -> vector<4x512xf32>
    %262 = arith.addf %243, %261 : vector<4x512xf32>
    %c1_i32_116 = arith.constant 1 : i32
    %263 = vector.broadcast %c1_i32_116 : i32 to vector<1x512xi32>
    %264 = arith.addi %3, %263 : vector<1x512xi32>
    %c0_i32_117 = arith.constant 0 : i32
    %265 = vector.broadcast %c0_i32_117 : i32 to vector<1x512xi32>
    %266 = arith.cmpi sge, %264, %265 : vector<1x512xi32>
    %c1_i32_118 = arith.constant 1 : i32
    %267 = vector.broadcast %c1_i32_118 : i32 to vector<1x512xi32>
    %268 = arith.addi %3, %267 : vector<1x512xi32>
    %c16_i32_119 = arith.constant 16 : i32
    %269 = vector.broadcast %c16_i32_119 : i32 to vector<1x512xi32>
    %270 = arith.cmpi slt, %268, %269 : vector<1x512xi32>
    %271 = arith.andi %266, %270 : vector<1x512xi1>
    %272 = arith.andi %224, %271 : vector<1x512xi1>
    %c0_120 = arith.constant 0 : index
    %c113_121 = arith.constant 113 : index
    %273 = vector.load %arg9[%c0_120, %c113_121] : memref<8x768xf32, #tpu.memory_space<vmem>>, vector<8x512xf32>
    %cst_122 = arith.constant 0.000000e+00 : f32
    %274 = vector.shape_cast %272 : vector<1x512xi1> to vector<1x512xi1>
    %275 = vector.broadcast %274 : vector<1x512xi1> to vector<8x512xi1>
    %276 = vector.broadcast %cst_122 : f32 to vector<8x512xf32>
    %277 = arith.select %275, %273, %276 : vector<8x512xi1>, vector<8x512xf32>
    %278 = vector.extract_strided_slice %212 {offsets = [2, 0, 0], sizes = [1, 4, 8], strides = [1, 1, 1]} : vector<9x4x8xf32> to vector<1x4x8xf32>
    %279 = vector.shape_cast %278 : vector<1x4x8xf32> to vector<4x8xf32>
    %cst_123 = arith.constant dense<0.000000e+00> : vector<4x512xf32>
    %280 = tpu.matmul %279, %277, %cst_123 {dimension_numbers = #tpu.dot_dimension_numbers<[1], [0], [0], [1], [0, 0, 1, 1], [], []>} : vector<4x8xf32>, vector<8x512xf32>, vector<4x512xf32> -> vector<4x512xf32>
    %281 = arith.addf %262, %280 : vector<4x512xf32>
    %c0_i32_124 = arith.constant 0 : i32
    %282 = vector.broadcast %c0_i32_124 : i32 to vector<1x512xi32>
    %283 = arith.addi %2, %282 : vector<1x512xi32>
    %c0_i32_125 = arith.constant 0 : i32
    %284 = vector.broadcast %c0_i32_125 : i32 to vector<1x512xi32>
    %285 = arith.cmpi sge, %283, %284 : vector<1x512xi32>
    %c0_i32_126 = arith.constant 0 : i32
    %286 = vector.broadcast %c0_i32_126 : i32 to vector<1x512xi32>
    %287 = arith.addi %2, %286 : vector<1x512xi32>
    %c16_i32_127 = arith.constant 16 : i32
    %288 = vector.broadcast %c16_i32_127 : i32 to vector<1x512xi32>
    %289 = arith.cmpi slt, %287, %288 : vector<1x512xi32>
    %290 = arith.andi %285, %289 : vector<1x512xi1>
    %c-1_i32_128 = arith.constant -1 : i32
    %291 = vector.broadcast %c-1_i32_128 : i32 to vector<1x512xi32>
    %292 = arith.addi %3, %291 : vector<1x512xi32>
    %c0_i32_129 = arith.constant 0 : i32
    %293 = vector.broadcast %c0_i32_129 : i32 to vector<1x512xi32>
    %294 = arith.cmpi sge, %292, %293 : vector<1x512xi32>
    %c-1_i32_130 = arith.constant -1 : i32
    %295 = vector.broadcast %c-1_i32_130 : i32 to vector<1x512xi32>
    %296 = arith.addi %3, %295 : vector<1x512xi32>
    %c16_i32_131 = arith.constant 16 : i32
    %297 = vector.broadcast %c16_i32_131 : i32 to vector<1x512xi32>
    %298 = arith.cmpi slt, %296, %297 : vector<1x512xi32>
    %299 = arith.andi %294, %298 : vector<1x512xi1>
    %300 = arith.andi %290, %299 : vector<1x512xi1>
    %c0_132 = arith.constant 0 : index
    %c127_133 = arith.constant 127 : index
    %301 = vector.load %arg9[%c0_132, %c127_133] : memref<8x768xf32, #tpu.memory_space<vmem>>, vector<8x512xf32>
    %cst_134 = arith.constant 0.000000e+00 : f32
    %302 = vector.shape_cast %300 : vector<1x512xi1> to vector<1x512xi1>
    %303 = vector.broadcast %302 : vector<1x512xi1> to vector<8x512xi1>
    %304 = vector.broadcast %cst_134 : f32 to vector<8x512xf32>
    %305 = arith.select %303, %301, %304 : vector<8x512xi1>, vector<8x512xf32>
    %306 = vector.extract_strided_slice %212 {offsets = [3, 0, 0], sizes = [1, 4, 8], strides = [1, 1, 1]} : vector<9x4x8xf32> to vector<1x4x8xf32>
    %307 = vector.shape_cast %306 : vector<1x4x8xf32> to vector<4x8xf32>
    %cst_135 = arith.constant dense<0.000000e+00> : vector<4x512xf32>
    %308 = tpu.matmul %307, %305, %cst_135 {dimension_numbers = #tpu.dot_dimension_numbers<[1], [0], [0], [1], [0, 0, 1, 1], [], []>} : vector<4x8xf32>, vector<8x512xf32>, vector<4x512xf32> -> vector<4x512xf32>
    %309 = arith.addf %281, %308 : vector<4x512xf32>
    %c0_i32_136 = arith.constant 0 : i32
    %310 = vector.broadcast %c0_i32_136 : i32 to vector<1x512xi32>
    %311 = arith.addi %3, %310 : vector<1x512xi32>
    %c0_i32_137 = arith.constant 0 : i32
    %312 = vector.broadcast %c0_i32_137 : i32 to vector<1x512xi32>
    %313 = arith.cmpi sge, %311, %312 : vector<1x512xi32>
    %c0_i32_138 = arith.constant 0 : i32
    %314 = vector.broadcast %c0_i32_138 : i32 to vector<1x512xi32>
    %315 = arith.addi %3, %314 : vector<1x512xi32>
    %c16_i32_139 = arith.constant 16 : i32
    %316 = vector.broadcast %c16_i32_139 : i32 to vector<1x512xi32>
    %317 = arith.cmpi slt, %315, %316 : vector<1x512xi32>
    %318 = arith.andi %313, %317 : vector<1x512xi1>
    %319 = arith.andi %290, %318 : vector<1x512xi1>
    %c0_140 = arith.constant 0 : index
    %c128_141 = arith.constant 128 : index
    %320 = vector.load %arg9[%c0_140, %c128_141] : memref<8x768xf32, #tpu.memory_space<vmem>>, vector<8x512xf32>
    %cst_142 = arith.constant 0.000000e+00 : f32
    %321 = vector.shape_cast %319 : vector<1x512xi1> to vector<1x512xi1>
    %322 = vector.broadcast %321 : vector<1x512xi1> to vector<8x512xi1>
    %323 = vector.broadcast %cst_142 : f32 to vector<8x512xf32>
    %324 = arith.select %322, %320, %323 : vector<8x512xi1>, vector<8x512xf32>
    %325 = vector.extract_strided_slice %212 {offsets = [4, 0, 0], sizes = [1, 4, 8], strides = [1, 1, 1]} : vector<9x4x8xf32> to vector<1x4x8xf32>
    %326 = vector.shape_cast %325 : vector<1x4x8xf32> to vector<4x8xf32>
    %cst_143 = arith.constant dense<0.000000e+00> : vector<4x512xf32>
    %327 = tpu.matmul %326, %324, %cst_143 {dimension_numbers = #tpu.dot_dimension_numbers<[1], [0], [0], [1], [0, 0, 1, 1], [], []>} : vector<4x8xf32>, vector<8x512xf32>, vector<4x512xf32> -> vector<4x512xf32>
    %328 = arith.addf %309, %327 : vector<4x512xf32>
    %c1_i32_144 = arith.constant 1 : i32
    %329 = vector.broadcast %c1_i32_144 : i32 to vector<1x512xi32>
    %330 = arith.addi %3, %329 : vector<1x512xi32>
    %c0_i32_145 = arith.constant 0 : i32
    %331 = vector.broadcast %c0_i32_145 : i32 to vector<1x512xi32>
    %332 = arith.cmpi sge, %330, %331 : vector<1x512xi32>
    %c1_i32_146 = arith.constant 1 : i32
    %333 = vector.broadcast %c1_i32_146 : i32 to vector<1x512xi32>
    %334 = arith.addi %3, %333 : vector<1x512xi32>
    %c16_i32_147 = arith.constant 16 : i32
    %335 = vector.broadcast %c16_i32_147 : i32 to vector<1x512xi32>
    %336 = arith.cmpi slt, %334, %335 : vector<1x512xi32>
    %337 = arith.andi %332, %336 : vector<1x512xi1>
    %338 = arith.andi %290, %337 : vector<1x512xi1>
    %c0_148 = arith.constant 0 : index
    %c129_149 = arith.constant 129 : index
    %339 = vector.load %arg9[%c0_148, %c129_149] : memref<8x768xf32, #tpu.memory_space<vmem>>, vector<8x512xf32>
    %cst_150 = arith.constant 0.000000e+00 : f32
    %340 = vector.shape_cast %338 : vector<1x512xi1> to vector<1x512xi1>
    %341 = vector.broadcast %340 : vector<1x512xi1> to vector<8x512xi1>
    %342 = vector.broadcast %cst_150 : f32 to vector<8x512xf32>
    %343 = arith.select %341, %339, %342 : vector<8x512xi1>, vector<8x512xf32>
    %344 = vector.extract_strided_slice %212 {offsets = [5, 0, 0], sizes = [1, 4, 8], strides = [1, 1, 1]} : vector<9x4x8xf32> to vector<1x4x8xf32>
    %345 = vector.shape_cast %344 : vector<1x4x8xf32> to vector<4x8xf32>
    %cst_151 = arith.constant dense<0.000000e+00> : vector<4x512xf32>
    %346 = tpu.matmul %345, %343, %cst_151 {dimension_numbers = #tpu.dot_dimension_numbers<[1], [0], [0], [1], [0, 0, 1, 1], [], []>} : vector<4x8xf32>, vector<8x512xf32>, vector<4x512xf32> -> vector<4x512xf32>
    %347 = arith.addf %328, %346 : vector<4x512xf32>
    %c1_i32_152 = arith.constant 1 : i32
    %348 = vector.broadcast %c1_i32_152 : i32 to vector<1x512xi32>
    %349 = arith.addi %2, %348 : vector<1x512xi32>
    %c0_i32_153 = arith.constant 0 : i32
    %350 = vector.broadcast %c0_i32_153 : i32 to vector<1x512xi32>
    %351 = arith.cmpi sge, %349, %350 : vector<1x512xi32>
    %c1_i32_154 = arith.constant 1 : i32
    %352 = vector.broadcast %c1_i32_154 : i32 to vector<1x512xi32>
    %353 = arith.addi %2, %352 : vector<1x512xi32>
    %c16_i32_155 = arith.constant 16 : i32
    %354 = vector.broadcast %c16_i32_155 : i32 to vector<1x512xi32>
    %355 = arith.cmpi slt, %353, %354 : vector<1x512xi32>
    %356 = arith.andi %351, %355 : vector<1x512xi1>
    %c-1_i32_156 = arith.constant -1 : i32
    %357 = vector.broadcast %c-1_i32_156 : i32 to vector<1x512xi32>
    %358 = arith.addi %3, %357 : vector<1x512xi32>
    %c0_i32_157 = arith.constant 0 : i32
    %359 = vector.broadcast %c0_i32_157 : i32 to vector<1x512xi32>
    %360 = arith.cmpi sge, %358, %359 : vector<1x512xi32>
    %c-1_i32_158 = arith.constant -1 : i32
    %361 = vector.broadcast %c-1_i32_158 : i32 to vector<1x512xi32>
    %362 = arith.addi %3, %361 : vector<1x512xi32>
    %c16_i32_159 = arith.constant 16 : i32
    %363 = vector.broadcast %c16_i32_159 : i32 to vector<1x512xi32>
    %364 = arith.cmpi slt, %362, %363 : vector<1x512xi32>
    %365 = arith.andi %360, %364 : vector<1x512xi1>
    %366 = arith.andi %356, %365 : vector<1x512xi1>
    %c0_160 = arith.constant 0 : index
    %c143_161 = arith.constant 143 : index
    %367 = vector.load %arg9[%c0_160, %c143_161] : memref<8x768xf32, #tpu.memory_space<vmem>>, vector<8x512xf32>
    %cst_162 = arith.constant 0.000000e+00 : f32
    %368 = vector.shape_cast %366 : vector<1x512xi1> to vector<1x512xi1>
    %369 = vector.broadcast %368 : vector<1x512xi1> to vector<8x512xi1>
    %370 = vector.broadcast %cst_162 : f32 to vector<8x512xf32>
    %371 = arith.select %369, %367, %370 : vector<8x512xi1>, vector<8x512xf32>
    %372 = vector.extract_strided_slice %212 {offsets = [6, 0, 0], sizes = [1, 4, 8], strides = [1, 1, 1]} : vector<9x4x8xf32> to vector<1x4x8xf32>
    %373 = vector.shape_cast %372 : vector<1x4x8xf32> to vector<4x8xf32>
    %cst_163 = arith.constant dense<0.000000e+00> : vector<4x512xf32>
    %374 = tpu.matmul %373, %371, %cst_163 {dimension_numbers = #tpu.dot_dimension_numbers<[1], [0], [0], [1], [0, 0, 1, 1], [], []>} : vector<4x8xf32>, vector<8x512xf32>, vector<4x512xf32> -> vector<4x512xf32>
    %375 = arith.addf %347, %374 : vector<4x512xf32>
    %c0_i32_164 = arith.constant 0 : i32
    %376 = vector.broadcast %c0_i32_164 : i32 to vector<1x512xi32>
    %377 = arith.addi %3, %376 : vector<1x512xi32>
    %c0_i32_165 = arith.constant 0 : i32
    %378 = vector.broadcast %c0_i32_165 : i32 to vector<1x512xi32>
    %379 = arith.cmpi sge, %377, %378 : vector<1x512xi32>
    %c0_i32_166 = arith.constant 0 : i32
    %380 = vector.broadcast %c0_i32_166 : i32 to vector<1x512xi32>
    %381 = arith.addi %3, %380 : vector<1x512xi32>
    %c16_i32_167 = arith.constant 16 : i32
    %382 = vector.broadcast %c16_i32_167 : i32 to vector<1x512xi32>
    %383 = arith.cmpi slt, %381, %382 : vector<1x512xi32>
    %384 = arith.andi %379, %383 : vector<1x512xi1>
    %385 = arith.andi %356, %384 : vector<1x512xi1>
    %c0_168 = arith.constant 0 : index
    %c144_169 = arith.constant 144 : index
    %386 = vector.load %arg9[%c0_168, %c144_169] : memref<8x768xf32, #tpu.memory_space<vmem>>, vector<8x512xf32>
    %cst_170 = arith.constant 0.000000e+00 : f32
    %387 = vector.shape_cast %385 : vector<1x512xi1> to vector<1x512xi1>
    %388 = vector.broadcast %387 : vector<1x512xi1> to vector<8x512xi1>
    %389 = vector.broadcast %cst_170 : f32 to vector<8x512xf32>
    %390 = arith.select %388, %386, %389 : vector<8x512xi1>, vector<8x512xf32>
    %391 = vector.extract_strided_slice %212 {offsets = [7, 0, 0], sizes = [1, 4, 8], strides = [1, 1, 1]} : vector<9x4x8xf32> to vector<1x4x8xf32>
    %392 = vector.shape_cast %391 : vector<1x4x8xf32> to vector<4x8xf32>
    %cst_171 = arith.constant dense<0.000000e+00> : vector<4x512xf32>
    %393 = tpu.matmul %392, %390, %cst_171 {dimension_numbers = #tpu.dot_dimension_numbers<[1], [0], [0], [1], [0, 0, 1, 1], [], []>} : vector<4x8xf32>, vector<8x512xf32>, vector<4x512xf32> -> vector<4x512xf32>
    %394 = arith.addf %375, %393 : vector<4x512xf32>
    %c1_i32_172 = arith.constant 1 : i32
    %395 = vector.broadcast %c1_i32_172 : i32 to vector<1x512xi32>
    %396 = arith.addi %3, %395 : vector<1x512xi32>
    %c0_i32_173 = arith.constant 0 : i32
    %397 = vector.broadcast %c0_i32_173 : i32 to vector<1x512xi32>
    %398 = arith.cmpi sge, %396, %397 : vector<1x512xi32>
    %c1_i32_174 = arith.constant 1 : i32
    %399 = vector.broadcast %c1_i32_174 : i32 to vector<1x512xi32>
    %400 = arith.addi %3, %399 : vector<1x512xi32>
    %c16_i32_175 = arith.constant 16 : i32
    %401 = vector.broadcast %c16_i32_175 : i32 to vector<1x512xi32>
    %402 = arith.cmpi slt, %400, %401 : vector<1x512xi32>
    %403 = arith.andi %398, %402 : vector<1x512xi1>
    %404 = arith.andi %356, %403 : vector<1x512xi1>
    %c0_176 = arith.constant 0 : index
    %c145_177 = arith.constant 145 : index
    %405 = vector.load %arg9[%c0_176, %c145_177] : memref<8x768xf32, #tpu.memory_space<vmem>>, vector<8x512xf32>
    %cst_178 = arith.constant 0.000000e+00 : f32
    %406 = vector.shape_cast %404 : vector<1x512xi1> to vector<1x512xi1>
    %407 = vector.broadcast %406 : vector<1x512xi1> to vector<8x512xi1>
    %408 = vector.broadcast %cst_178 : f32 to vector<8x512xf32>
    %409 = arith.select %407, %405, %408 : vector<8x512xi1>, vector<8x512xf32>
    %410 = vector.extract_strided_slice %212 {offsets = [8, 0, 0], sizes = [1, 4, 8], strides = [1, 1, 1]} : vector<9x4x8xf32> to vector<1x4x8xf32>
    %411 = vector.shape_cast %410 : vector<1x4x8xf32> to vector<4x8xf32>
    %cst_179 = arith.constant dense<0.000000e+00> : vector<4x512xf32>
    %412 = tpu.matmul %411, %409, %cst_179 {dimension_numbers = #tpu.dot_dimension_numbers<[1], [0], [0], [1], [0, 0, 1, 1], [], []>} : vector<4x8xf32>, vector<8x512xf32>, vector<4x512xf32> -> vector<4x512xf32>
    %413 = arith.addf %394, %412 : vector<4x512xf32>
    %414 = vector.broadcast %213 : vector<4x1xf32> to vector<4x512xf32>
    %415 = arith.addf %413, %414 : vector<4x512xf32>
    %c0_180 = arith.constant 0 : index
    %c0_181 = arith.constant 0 : index
    %416 = vector.load %arg8[%c0_180, %c0_181] : memref<4x512xf32, #tpu.memory_space<vmem>>, vector<4x512xf32>
    tpu.vector_store %arg8[%c0_180, %c0_181], %415 {strides = array<i32>} : memref<4x512xf32, #tpu.memory_space<vmem>>, vector<4x512xf32>,
    return
  }
  func.func @transform_0(%arg0: i32) -> (i32, i32) {
    %c0_i32 = arith.constant 0 : i32
    %c0_i32_0 = arith.constant 0 : i32
    return %c0_i32, %arg0 : i32, i32
  }
  func.func @transform_1(%arg0: i32) -> (i32, i32) {
    %c0_i32 = arith.constant 0 : i32
    %c0_i32_0 = arith.constant 0 : i32
    return %c0_i32, %arg0 : i32, i32
  }
  func.func @transform_2(%arg0: i32) -> (i32, i32, i32) {
    %c0_i32 = arith.constant 0 : i32
    %c0_i32_0 = arith.constant 0 : i32
    %c0_i32_1 = arith.constant 0 : i32
    %c0_i32_2 = arith.constant 0 : i32
    return %c0_i32, %c0_i32_0, %c0_i32_1 : i32, i32, i32
  }
  func.func @transform_3(%arg0: i32) -> (i32, i32) {
    %c0_i32 = arith.constant 0 : i32
    %c0_i32_0 = arith.constant 0 : i32
    %c0_i32_1 = arith.constant 0 : i32
    return %c0_i32, %c0_i32_0 : i32, i32
  }
  func.func @transform_4(%arg0: i32) -> (i32, i32, i32) {
    %c0_i32 = arith.constant 0 : i32
    %c0_i32_0 = arith.constant 0 : i32
    %c0_i32_1 = arith.constant 0 : i32
    %c0_i32_2 = arith.constant 0 : i32
    return %c0_i32, %c0_i32_0, %c0_i32_1 : i32, i32, i32
  }
  func.func @transform_5(%arg0: i32) -> (i32, i32) {
    %c0_i32 = arith.constant 0 : i32
    %c0_i32_0 = arith.constant 0 : i32
    %c0_i32_1 = arith.constant 0 : i32
    return %c0_i32, %c0_i32_0 : i32, i32
  }
  func.func @transform_6(%arg0: i32) -> (i32, i32) {
    %c0_i32 = arith.constant 0 : i32
    %c0_i32_0 = arith.constant 0 : i32
    return %c0_i32, %arg0 : i32, i32
  }
  func.func @transform_7(%arg0: i32) -> (i32, i32) {
    %c0_i32 = arith.constant 0 : i32
    %c0_i32_0 = arith.constant 0 : i32
    return %c0_i32, %arg0 : i32, i32
  }
}

</mosaic_0001>

<bundles_post_ra>
// kernel: contrastive_net_ae_forward.4
= control target key start
LH: loop header
LB: loop body
LE: loop exit
PB: predicated region body
PF: predicated region fallthrough
CT: control target
= control target key end

     0   :  { %v3867_v0 = vmov 0.0   ;;  %v3868_v8 = vmov 0   ;;  %s3869_s23 = smov 16   ;;  %s3871_s24 = smov 15   ;;  %v83_v31 = vlaneseq  ;;  %vm238_vm9 = vcmask 130048   ;;  %s4936_s1 = inlined_call_operand.vmem [shape: f32[4,1024], index: 1, kind: input, shape index: {}]   ;;  %s4937_s0 = inlined_call_operand.vmem [shape: s32[2,1024], index: 0, kind: input, shape index: {}]   ;;  %s4938_s2 = inlined_call_operand.vmem [shape: f32[9,8,4], index: 2, kind: input, shape index: {}]   ;;  %s4939_s3 = inlined_call_operand.vmem [shape: f32[8,1], index: 3, kind: input, shape index: {}]   ;;  %s4940_s4 = inlined_call_operand.vmem [shape: f32[8,1024], index: 4, kind: output, shape index: {}]  }
   0x1   :  { %17 = vst [vmem:[#allocation2 + $0x30] sm:$0xff] %v3867_v0  ;;  %18 = vst [vmem:[#allocation2] sm:$0xff] %v3867_v0  ;;  %v31_v1 = vld [vmem:[%s4936_s1 + $0x8] sm:$0xff]  ;;  %v30_v2 = vld [vmem:[%s4936_s1] sm:$0xff]  ;;  %356 = vmatprep.mubr.f32.mxu0 %v3867_v0  ;;  %427 = vmatprep.mubr.f32.mxu1 %v3867_v0  ;;  %s3872_s25 = smov 1   ;;  %s3873_s26 = smov 127  }
   0x2   :  { %19 = vst [vmem:[#allocation2 + $0x18] sm:$0xff] %v3867_v0  ;;  %20 = vst [vmem:[#allocation2 + $0x10] sm:$0xff] %v3867_v0  ;;  %v32_v3 = vld [vmem:[%s4936_s1 + $0x10] sm:$0xff]  ;;  %v48_v4 = vcombine.high %v30_v2, %v30_v2  ;;  %v33_v5 = vld [vmem:[%s4936_s1 + $0x18] sm:$0xff]  ;;  %v49_v7 = vcombine.high %v31_v1, %v31_v1  ;;  %3861 = vset.pattern.permute.xlu0 %v3868_v8  ;;  %s3870_s1 = smov 17   ;;  %s3874_s27 = smov 113  }
   0x3   :  { %21 = vst [vmem:[#allocation2 + $0x48] sm:$0xff] %v3867_v0  ;;  %22 = vst [vmem:[#allocation2 + $0x28] sm:$0xff] %v3867_v0  ;;  %v50_v6 = vcombine.high %v32_v3, %v32_v3  ;;  %v51_v9 = vcombine.high %v33_v5, %v33_v5  ;;  %v4010_v28 = vld [vmem:[%s4937_s0] ss:$2 sm:$0xff]  ;;  %v4017_v29 = vld [vmem:[%s4937_s0 + $0x1] ss:$2 sm:$0xff] }
   0x4   :  { %23 = vst [vmem:[#allocation2 + $0x8] sm:$0xff] %v3867_v0  ;;  %24 = vst [vmem:[#allocation2 + $0x20] sm:$0xff] %v3867_v0  ;;  %v64_v30 = vadd.s32 4294967295, %v4010_v28  ;;  %vm175_vm0 = vcmp.ge.s32.totalorder %v4017_v29, 0  ;;  %vm176_vm1 = vcmp.lt.s32.totalorder %v4017_v29, 16  ;;  %s3875_s6 = smov 112  }
   0x5   :  { %25 = vst [vmem:[#allocation2 + $0x40] sm:$0xff] %v3867_v0  ;;  %26 = vst [vmem:[#allocation2 + $0x38] sm:$0xff] %v3867_v0  ;;  %v84_v34 = vshrl.u32 %v83_v31, 7  ;;  %v68_v36 = vadd.s32 4294967295, %v4017_v29  ;;  %vm267_vm10 = vcmask 1043456   ;;  %v35_v63 = vld [vmem:[%s4938_s2 + $0x8] sm:$0xff] }
   0x6   :  { %58 = vst [vmem:[#allocation2 + $0x10] sm:$0xf] %v31_v1  ;;  %56 = vst [vmem:[#allocation2] sm:$0xf] %v30_v2  ;;  %vm65_vm2 = vcmp.ge.s32.totalorder %v64_v30, 0  ;;  %vm66_vm3 = vcmp.lt.s32.totalorder %v64_v30, 16 }
   0x7   :  { %60 = vst [vmem:[#allocation2 + $0x28] sm:$0xf] %v32_v3  ;;  %62 = vst [vmem:[#allocation2 + $0x20] sm:$0xf] %v33_v5  ;;  %v4044_v35 = vsub.s32 1, %v84_v34  ;;  %v4047_v38 = vsub.s32 0, %v84_v34 }
   0x8   :  { %57 = vst [vmem:[#allocation2 + $0x18] sm:$0xf] %v48_v4  ;;  %61 = vst [vmem:[#allocation2 + $0x8] sm:$0xf] %v50_v6  ;;  %v73_v10 = vld [vmem:[#allocation2 + $0x30] sm:$0xf] }
   0x9   :  { %59 = vst [vmem:[#allocation2 + $0x48] sm:$0xf] %v49_v7  ;;  %63 = vst [vmem:[#allocation2 + $0x40] sm:$0xf] %v51_v9  ;;  %220 = vrot.lane.b32.xlu0 %v73_v10, %s3869_s23  ;;  %v4058_v42 = vsub.s32 5, %v84_v34  ;;  %vm69_vm7 = vcmp.ge.s32.totalorder %v68_v36, 0 }
   0xa   :  { %vm4026_vm4 = vmand %vm175_vm0, %vm176_vm1  ;;  %vm70_vm8 = vcmp.lt.s32.totalorder %v68_v36, 16  ;;  %v4062_v45 = vsub.s32 4, %v84_v34  ;;  %v4064_v46 = vsub.s32 3, %v84_v34  ;;  %v4066_v48 = vsub.s32 2, %v84_v34  ;;  %s3876_s8 = smov 111  }
   0xb   :  { %vm4032_vm5 = vmand %vm65_vm2, %vm66_vm3  ;;  %v4080_v51 = vsub.s32 6, %v84_v34  ;;  %v4084_v53 = vsub.s32 7, %v84_v34  ;;  %vm263_vm15 = vcmask 31744   ;;  %v887_v50 = vadd.s32 1, %v4017_v29 }
   0xc   :  { %v3999_v27 = vld [vmem:[#allocation2 + $0x38] sm:$0xf]  ;;  %vm178_vm6 = vmand %vm4032_vm5, %vm4026_vm4 }
   0xd   :  { %v3927_v11 = vld [vmem:[#allocation2 + $0x10] sm:$0xf]  ;;  %v3930_v12 = vld [vmem:[#allocation2] sm:$0xf]  ;;  %v4050_v40 = vsel %vm178_vm6, 1, %v3868_v8  ;;  %vm4070_vm11 = vmand %vm69_vm7, %vm70_vm8  ;;  %vm150_vm8 = vcmask 138240  }
   0xe   :  { %226 = vrot.lane.b32.xlu1 %v3927_v11, %s3869_s23  ;;  %v3932_v13 = vld [vmem:[#allocation2 + $0x28] sm:$0xf]  ;;  %222 = vrot.lane.b32.xlu0 %v3930_v12, %s3869_s23  ;;  %v3938_v15 = vld [vmem:[#allocation2 + $0x20] sm:$0xf]  ;;  %v3977_v20 = vld [vmem:[#allocation2 + $0x10] sm:$0xf]  ;;  %v187_v41 = vrot.slane %v4050_v40, %v4044_v35  ;;  %v183_v44 = vrot.slane %v4050_v40, %v4047_v38  ;;  %v203_v52 = vrot.slane %v4050_v40, %v4058_v42 }
   0xf   :  { %v3936_v14 = vld [vmem:[#allocation2 + $0x18] sm:$0xf]  ;;  %v3942_v16 = vld [vmem:[#allocation2 + $0x8] sm:$0xf]  ;;  %v3987_v23 = vld [vmem:[#allocation2] sm:$0xf]  ;;  %v199_v57 = vrot.slane %v4050_v40, %v4062_v45  ;;  %v195_v58 = vrot.slane %v4050_v40, %v4064_v46  ;;  %v191_v61 = vrot.slane %v4050_v40, %v4066_v48  ;;  %v211_v3 = vrot.slane %v4050_v40, %v4084_v53 }
  0x10   :  { %v3944_v17 = vld [vmem:[#allocation2 + $0x48] sm:$0xf]  ;;  %v3948_v18 = vld [vmem:[#allocation2 + $0x40] sm:$0xf]  ;;  %v3975_v19 = vld [vmem:[#allocation2 + $0x18] sm:$0xf]  ;;  %v207_v5 = vrot.slane %v4050_v40, %v4080_v51 }
  0x11   :  { %v3981_v21 = vld [vmem:[#allocation2 + $0x48] sm:$0xf]  ;;  %v3993_v25 = vld [vmem:[#allocation2 + $0x20] sm:$0xf]  ;;  %vm4076_vm12 = vcmp.eq.s32.totalorder %v187_v41, 1  ;;  %vm4087_vm13 = vcmp.eq.s32.totalorder %v183_v44, 1  ;;  %vm72_vm14 = vmand %vm4032_vm5, %vm4070_vm11 }
  0x12   :  { %230 = vrot.lane.b32.xlu1 %v3932_v13, %s3869_s23  ;;  %224 = vrot.lane.b32.xlu0 %v3936_v14, %s3869_s23  ;;  %v3983_v22 = vld [vmem:[#allocation2 + $0x28] sm:$0xf]  ;;  %v3995_v26 = vld [vmem:[#allocation2 + $0x40] sm:$0xf]  ;;  %vm4112_vm0 = vcmp.eq.s32.totalorder %v203_v52, 1  ;;  %vm4123_vm1 = vcmp.eq.s32.totalorder %v199_v57, 1 }
  0x13   :  { %v3989_v24 = vld [vmem:[#allocation2 + $0x8] sm:$0xf]  ;;  %vm4127_vm2 = vcmp.eq.s32.totalorder %v195_v58, 1  ;;  %v4137_v9 = vsel %vm72_vm14, 1, %v3868_v8  ;;  %vm4142_vm3 = vcmp.eq.s32.totalorder %v191_v61, 1  ;;  %vm4158_vm6 = vcmp.eq.s32.totalorder %v211_v3, 1 }
  0x14   :  { %vm4166_vm7 = vcmp.eq.s32.totalorder %v207_v5, 1  ;;  %v98_v57 = vrot.slane %v4137_v9, %v4064_v46  ;;  %v102_v6 = vrot.slane %v4137_v9, %v4062_v45 }
  0x16   :  { %234 = vrot.lane.b32.xlu1 %v3938_v15, %s3869_s23  ;;  %232 = vrot.lane.b32.xlu0 %v3942_v16, %s3869_s23  ;;  %vm4211_vm14 = vcmp.eq.s32.totalorder %v98_v57, 1 }
  0x1a   :  { %228 = vrot.lane.b32.xlu1 %v3944_v17, %s3869_s23  ;;  %236 = vrot.lane.b32.xlu0 %v3948_v18, %s3869_s23 }
  0x1e   :  { %134 = vrot.lane.b32.xlu1 %v3930_v12, %s3870_s1  ;;  %136 = vrot.lane.b32.xlu0 %v3936_v14, %s3870_s1 }
  0x22   :  { %138 = vrot.lane.b32.xlu1 %v3927_v11, %s3870_s1  ;;  %140 = vrot.lane.b32.xlu0 %v3944_v17, %s3870_s1 }
  0x26   :  { %132 = vrot.lane.b32.xlu1 %v73_v10, %s3870_s1  ;;  %142 = vrot.lane.b32.xlu0 %v3932_v13, %s3870_s1 }
  0x2a   :  { %144 = vrot.lane.b32.xlu1 %v3942_v16, %s3870_s1  ;;  %146 = vrot.lane.b32.xlu0 %v3938_v15, %s3870_s1 }
  0x2e   :  { %148 = vrot.lane.b32.xlu1 %v3948_v18, %s3870_s1  ;;  %935 = vrot.lane.b32.xlu0 %v3930_v12, %s3871_s24 }
  0x32   :  { %937 = vrot.lane.b32.xlu1 %v3936_v14, %s3871_s24  ;;  %939 = vrot.lane.b32.xlu0 %v3927_v11, %s3871_s24 }
  0x36   :  { %941 = vrot.lane.b32.xlu1 %v3944_v17, %s3871_s24  ;;  %933 = vrot.lane.b32.xlu0 %v73_v10, %s3871_s24 }
  0x3a   :  { %943 = vrot.lane.b32.xlu1 %v3932_v13, %s3871_s24  ;;  %945 = vrot.lane.b32.xlu0 %v3942_v16, %s3871_s24 }
  0x3e   :  { %947 = vrot.lane.b32.xlu1 %v3938_v15, %s3871_s24  ;;  %949 = vrot.lane.b32.xlu0 %v3948_v18, %s3871_s24 }
  0x42   :  { %1342 = vrot.lane.b32.xlu1 %v3930_v12, %s3872_s25  ;;  %1344 = vrot.lane.b32.xlu0 %v3936_v14, %s3872_s25 }
  0x46   :  { %1346 = vrot.lane.b32.xlu1 %v3927_v11, %s3872_s25  ;;  %1348 = vrot.lane.b32.xlu0 %v3944_v17, %s3872_s25 }
  0x4a   :  { %1340 = vrot.lane.b32.xlu1 %v73_v10, %s3872_s25  ;;  %1350 = vrot.lane.b32.xlu0 %v3932_v13, %s3872_s25 }
  0x4e   :  { %1352 = vrot.lane.b32.xlu1 %v3942_v16, %s3872_s25  ;;  %1354 = vrot.lane.b32.xlu0 %v3938_v15, %s3872_s25 }
  0x52   :  { %1356 = vrot.lane.b32.xlu1 %v3948_v18, %s3872_s25  ;;  %2133 = vrot.lane.b32.xlu0 %v3975_v19, %s3873_s26 }
  0x56   :  { %2135 = vrot.lane.b32.xlu1 %v3977_v20, %s3873_s26  ;;  %2137 = vrot.lane.b32.xlu0 %v3981_v21, %s3873_s26 }
  0x5a   :  { %2139 = vrot.lane.b32.xlu1 %v3983_v22, %s3873_s26  ;;  %2131 = vrot.lane.b32.xlu0 %v3987_v23, %s3873_s26 }
  0x5e   :  { %2141 = vrot.lane.b32.xlu1 %v3989_v24, %s3873_s26  ;;  %2143 = vrot.lane.b32.xlu0 %v3993_v25, %s3873_s26 }
  0x62   :  { %2145 = vrot.lane.b32.xlu1 %v3995_v26, %s3873_s26  ;;  %2147 = vrot.lane.b32.xlu0 %v3999_v27, %s3873_s26 }
  0x66   :  { %2541 = vrot.lane.b32.xlu1 %v3975_v19, %s3874_s27  ;;  %2543 = vrot.lane.b32.xlu0 %v3977_v20, %s3874_s27 }
  0x6a   :  { %2545 = vrot.lane.b32.xlu1 %v3981_v21, %s3874_s27  ;;  %2547 = vrot.lane.b32.xlu0 %v3983_v22, %s3874_s27 }
  0x6e   :  { %2539 = vrot.lane.b32.xlu1 %v3987_v23, %s3874_s27  ;;  %2549 = vrot.lane.b32.xlu0 %v3989_v24, %s3874_s27 }
  0x72   :  { %2551 = vrot.lane.b32.xlu1 %v3993_v25, %s3874_s27  ;;  %2553 = vrot.lane.b32.xlu0 %v3995_v26, %s3874_s27 }
  0x76   :  { %2555 = vrot.lane.b32.xlu1 %v3999_v27, %s3874_s27  ;;  %2945 = vrot.lane.b32.xlu0 %v3975_v19, %s3875_s6 }
  0x7a   :  { %2947 = vrot.lane.b32.xlu1 %v3977_v20, %s3875_s6  ;;  %2949 = vrot.lane.b32.xlu0 %v3981_v21, %s3875_s6 }
  0x7b   :  { %v221_v37 = vpop.permute.xlu0 %220 }
  0x7e   :  { %2951 = vrot.lane.b32.xlu1 %v3983_v22, %s3875_s6  ;;  %2943 = vrot.lane.b32.xlu0 %v3987_v23, %s3875_s6 }
  0x80   :  { %v227_v39 = vpop.permute.xlu1 %226  ;;  %v223_v43 = vpop.permute.xlu0 %222 }
  0x81   :  { %v239_v54 = vsel %vm238_vm9, %v221_v37, %v223_v43 }
  0x82   :  { %2953 = vrot.lane.b32.xlu1 %v3989_v24, %s3875_s6  ;;  %2955 = vrot.lane.b32.xlu0 %v3993_v25, %s3875_s6  ;;  %v255_v2 = vsel %vm4087_vm13, %v239_v54, 0.0  ;;  %vm889_vm13 = vcmp.lt.s32.totalorder %v887_v50, 16 }
  0x84   :  { %v231_v47 = vpop.permute.xlu1 %230  ;;  %v225_v55 = vpop.permute.xlu0 %224 }
  0x85   :  { %v240_v60 = vsel %vm238_vm9, %v223_v43, %v225_v55  ;;  %v241_v10 = vsel %vm238_vm9, %v225_v55, %v227_v39 }
  0x86   :  { %2957 = vrot.lane.b32.xlu1 %v3995_v26, %s3875_s6  ;;  %2959 = vrot.lane.b32.xlu0 %v3999_v27, %s3875_s6  ;;  %v256_v62 = vsel %vm4076_vm12, %v240_v60, 0.0  ;;  %vm888_vm12 = vcmp.ge.s32.totalorder %v887_v50, 0 }
  0x87   :  { %3743 = vmatprep.subr.msk.mxu0 %vm267_vm10, %v256_v62 }
  0x88   :  { %v235_v59 = vpop.permute.xlu1 %234  ;;  %v233_v4 = vpop.permute.xlu0 %232  ;;  %3744 = vmatpush1.msk.msra.mxu0 %vm267_vm10, %v255_v2 }
  0x89   :  { %3745 = vmatmul.mubr.msk.f32.vlgmr.msra.gmra.mxu0 %vm263_vm15, %v35_v63  ;;  %v245_v44 = vsel %vm238_vm9, %v233_v4, %v235_v59 }
  0x8a   :  { %3349 = vrot.lane.b32.xlu1 %v3975_v19, %s3876_s8  ;;  %v244_v19 = vsel %vm238_vm9, %v231_v47, %v233_v4  ;;  %3351 = vrot.lane.b32.xlu0 %v3977_v20, %s3876_s8  ;;  %v90_v20 = vrot.slane %v4137_v9, %v4044_v35  ;;  %v261_v56 = vsel %vm4166_vm7, %v245_v44, 0.0  ;;  %vm4264_vm7 = vcmp.eq.s32.totalorder %v102_v6, 1 }
  0x8b   :  { %v260_v34 = vsel %vm4112_vm0, %v244_v19, 0.0  ;;  %498 = vmatprep.mubr.f32.mxu0 %v3867_v0  ;;  %vm4215_vm0 = vmand %vm888_vm12, %vm889_vm13  ;;  %v34_v19 = vld [vmem:[%s4938_s2] sm:$0xff]  ;;  %vm951_vm12 = vcmask 121856  }
  0x8c   :  { %v229_v30 = vpop.permute.xlu1 %228  ;;  %3749 = vmatprep.subr.msk.mxu0 %vm267_vm10, %v260_v34 }
  0x8d   :  { %v243_v36 = vsel %vm238_vm9, %v229_v30, %v231_v47  ;;  %v242_v37 = vsel %vm238_vm9, %v227_v39, %v229_v30  ;;  %v237_v47 = vpop.permute.xlu0 %236 }
  0x8e   :  { %v259_v40 = vsel %vm4123_vm1, %v243_v36, 0.0  ;;  %3353 = vrot.lane.b32.xlu1 %v3981_v21, %s3876_s8  ;;  %v258_v43 = vsel %vm4127_vm2, %v242_v37, 0.0  ;;  %v257_v21 = vsel %vm4142_vm3, %v241_v10, 0.0  ;;  %v246_v52 = vsel %vm238_vm9, %v235_v59, %v237_v47  ;;  %3355 = vrot.lane.b32.xlu0 %v3983_v22, %s3876_s8  ;;  %vm891_vm3 = vmand %vm4032_vm5, %vm4215_vm0  ;;  %v43_v37 = vld [vmem:[%s4939_s3] sm:$0xff] }
  0x8f   :  { %3746 = vmatprep.subr.msk.mxu1 %vm267_vm10, %v258_v43  ;;  %3750 = vmatpush1.msk.msra.mxu0 %vm267_vm10, %v259_v40  ;;  %v262_v55 = vsel %vm4158_vm6, %v246_v52, 0.0  ;;  %vm4189_vm9 = vcmp.eq.s32.totalorder %v90_v20, 1  ;;  %v94_v22 = vrot.slane %v4137_v9, %v4066_v48  ;;  %v86_v59 = vrot.slane %v4137_v9, %v4047_v38 }
  0x90   :  { %v135_v54 = vpop.permute.xlu1 %134  ;;  %3747 = vmatpush1.msk.msra.mxu1 %vm267_vm10, %v257_v21  ;;  %3751 = vmatmul.mubr.msk.f32.vlgmr.msra.gmra.mxu0 %vm263_vm15, %v35_v63  ;;  %v114_v36 = vrot.slane %v4137_v9, %v4084_v53  ;;  %v110_v43 = vrot.slane %v4137_v9, %v4080_v51  ;;  %v4278_v20 = vsel %vm891_vm3, 1, %v3868_v8 }
  0x91   :  { %3748 = vmatmul.mubr.msk.f32.vlgmr.msra.gmra.mxu1 %vm263_vm15, %v35_v63  ;;  %3752 = vmatprep.subr.msk.mxu1 %vm267_vm10, %v262_v55  ;;  %v137_v58 = vpop.permute.xlu0 %136  ;;  %vm4219_vm1 = vcmp.eq.s32.totalorder %v94_v22, 1  ;;  %vm4224_vm2 = vcmp.eq.s32.totalorder %v86_v59, 1  ;;  %v900_v47 = vrot.slane %v4278_v20, %v4044_v35  ;;  %v908_v57 = vrot.slane %v4278_v20, %v4064_v46 }
  0x92   :  { %3347 = vrot.lane.b32.xlu1 %v3987_v23, %s3876_s8  ;;  %3753 = vmatpush1.msk.msra.mxu1 %vm267_vm10, %v261_v56  ;;  %v152_v23 = vsel %vm150_vm8, %v135_v54, %v137_v58  ;;  %vm122_vm5 = vcmp.eq.s32.totalorder %v114_v36, 1  ;;  %v904_v22 = vrot.slane %v4278_v20, %v4066_v48  ;;  %v912_v6 = vrot.slane %v4278_v20, %v4062_v45 }
  0x93   :  { %569 = vmatprep.mubr.f32.mxu1 %v3867_v0  ;;  %667 = vmatprep.mubr.f32.mxu0 %v3867_v0  ;;  %v168_v61 = vsel %vm4189_vm9, %v152_v23, 0.0  ;;  %vm4291_vm9 = vcmp.eq.s32.totalorder %v110_v43, 1  ;;  %vm926_vm13 = vcmp.eq.s32.totalorder %v900_v47, 1 }
  0x94   :  { %v139_v60 = vpop.permute.xlu1 %138  ;;  %3357 = vrot.lane.b32.xlu0 %v3989_v24, %s3876_s8  ;;  %3755 = vmatprep.subr.msk.mxu0 %vm267_vm10, %v168_v61 }
  0x95   :  { %3754 = vmatmul.mubr.msk.f32.vlgmr.msra.gmra.mxu1 %vm263_vm15, %v35_v63  ;;  %v153_v24 = vsel %vm150_vm8, %v137_v58, %v139_v60  ;;  %v141_v63 = vpop.permute.xlu0 %140 }
  0x96   :  { %3359 = vrot.lane.b32.xlu1 %v3993_v25, %s3876_s8  ;;  %v106_v25 = vrot.slane %v4137_v9, %v4058_v42  ;;  %738 = vmatprep.mubr.f32.mxu1 %v3867_v0  ;;  %v154_v4 = vsel %vm150_vm8, %v139_v60, %v141_v63  ;;  %v169_v30 = vsel %vm4219_vm1, %v153_v24, 0.0  ;;  %v896_v60 = vrot.slane %v4278_v20, %v4047_v38 }
  0x97   :  { %v170_v7 = vsel %vm4211_vm14, %v154_v4, 0.0  ;;  %vm1296_vm14 = vcmp.lt.s32.totalorder %v4010_v28, 16  ;;  %vm928_vm1 = vcmp.eq.s32.totalorder %v908_v57, 1 }
  0x98   :  { %v133_v5 = vpop.permute.xlu1 %132  ;;  %3361 = vrot.lane.b32.xlu0 %v3995_v26, %s3876_s8  ;;  %3758 = vmatprep.subr.msk.mxu1 %vm267_vm10, %v170_v7  ;;  %vm4255_vm6 = vcmp.eq.s32.totalorder %v106_v25, 1  ;;  %v916_v25 = vrot.slane %v4278_v20, %v4058_v42 }
  0x99   :  { %v151_v10 = vsel %vm150_vm8, %v133_v5, %v135_v54  ;;  %v143_v26 = vpop.permute.xlu0 %142  ;;  %3759 = vmatpush1.msk.msra.mxu1 %vm267_vm10, %v169_v30 }
  0x9a   :  { %v167_v31 = vsel %vm4224_vm2, %v151_v10, 0.0  ;;  %3363 = vrot.lane.b32.xlu1 %v3999_v27, %s3876_s8  ;;  %v155_v40 = vsel %vm150_vm8, %v141_v63, %v143_v26  ;;  %3760 = vmatmul.mubr.msk.f32.vlgmr.msra.gmra.mxu1 %vm263_vm15, %v34_v19  ;;  %vm927_vm2 = vcmp.eq.s32.totalorder %v904_v22, 1 }
  0x9b   :  { %3756 = vmatpush1.msk.msra.mxu0 %vm267_vm10, %v167_v31  ;;  %880 = vmatprep.mubr.f32.mxu1 %v3867_v0  ;;  %v171_v33 = vsel %vm4264_vm7, %v155_v40, 0.0  ;;  %v924_v31 = vrot.slane %v4278_v20, %v4084_v53 }
  0x9c   :  { %v145_v41 = vpop.permute.xlu1 %144  ;;  %3757 = vmatmul.mubr.msk.f32.vlgmr.msra.gmra.mxu0 %vm263_vm15, %v34_v19  ;;  %3711 = vperm.xlu0 %3861, %v43_v37   ;;  %v920_v37 = vrot.slane %v4278_v20, %v4080_v51 }
  0x9d   :  { %v156_v39 = vsel %vm150_vm8, %v143_v26, %v145_v41  ;;  %809 = vmatprep.mubr.f32.mxu0 %v3867_v0  ;;  %v147_v44 = vpop.permute.xlu0 %146 }
  0x9e   :  { %v172_v9 = vsel %vm4255_vm6, %v156_v39, 0.0  ;;  %v157_v50 = vsel %vm150_vm8, %v145_v41, %v147_v44  ;;  %vm925_vm6 = vcmp.eq.s32.totalorder %v896_v60, 1 }
  0x9f   :  { %3761 = vmatprep.subr.msk.mxu0 %vm267_vm10, %v172_v9  ;;  %v173_v56 = vsel %vm4291_vm9, %v157_v50, 0.0  ;;  %vm4341_vm9 = vcmp.eq.s32.totalorder %v912_v6, 1 }
  0xa0   :  { %v149_v52 = vpop.permute.xlu1 %148  ;;  %3762 = vmatpush1.msk.msra.mxu0 %vm267_vm10, %v171_v33 }
  0xa1   :  { %v158_v54 = vsel %vm150_vm8, %v147_v44, %v149_v52  ;;  %3763 = vmatmul.mubr.msk.f32.vlgmr.msra.gmra.mxu0 %vm263_vm15, %v34_v19  ;;  %v936_v29 = vpop.permute.xlu0 %935  ;;  %vm1295_vm8 = vcmp.ge.s32.totalorder %v4010_v28, 0 }
  0xa2   :  { %v174_v55 = vsel %vm122_vm5, %v158_v54, 0.0  ;;  %1067 = vmatprep.mubr.f32.mxu0 %v3867_v0  ;;  %vm4318_vm3 = vmand %vm1295_vm8, %vm1296_vm14  ;;  %vm930_vm5 = vcmp.eq.s32.totalorder %v916_v25, 1  ;;  %vm4359_vm8 = vcmp.eq.s32.totalorder %v920_v37, 1  ;;  %vm1358_vm14 = vcmask 7168  }
  0xa3   :  { %3764 = vmatprep.subr.msk.mxu1 %vm267_vm10, %v174_v55  ;;  %vm1298_vm7 = vmand %vm4318_vm3, %vm4070_vm11 }
  0xa4   :  { %v938_v58 = vpop.permute.xlu1 %937  ;;  %3765 = vmatpush1.msk.msra.mxu1 %vm267_vm10, %v173_v56  ;;  %v4350_v27 = vsel %vm1298_vm7, 1, %v3868_v8 }
  0xa5   :  { %v953_v59 = vsel %vm951_vm12, %v936_v29, %v938_v58  ;;  %3766 = vmatmul.mubr.msk.f32.vlgmr.msra.gmra.mxu1 %vm263_vm15, %v34_v19  ;;  %v940_v61 = vpop.permute.xlu0 %939  ;;  %v36_v19 = vld [vmem:[%s4938_s2 + $0x10] sm:$0xff]  ;;  %v1307_v20 = vrot.slane %v4350_v27, %v4044_v35  ;;  %v1311_v54 = vrot.slane %v4350_v27, %v4066_v48  ;;  %v1315_v55 = vrot.slane %v4350_v27, %v4064_v46 }
  0xa6   :  { %v969_v23 = vsel %vm926_vm13, %v953_v59, 0.0  ;;  %1138 = vmatprep.mubr.f32.mxu1 %v3867_v0  ;;  %v954_v62 = vsel %vm951_vm12, %v938_v58, %v940_v61  ;;  %vm932_vm13 = vcmp.eq.s32.totalorder %v924_v31, 1  ;;  %v1327_v31 = vrot.slane %v4350_v27, %v4080_v51 }
  0xa7   :  { %3767 = vmatprep.subr.msk.mxu0 %vm267_vm10, %v969_v23  ;;  %v970_v4 = vsel %vm927_vm2, %v954_v62, 0.0  ;;  %vm1333_vm2 = vcmp.eq.s32.totalorder %v1307_v20, 1  ;;  %v1323_v62 = vrot.slane %v4350_v27, %v4058_v42 }
  0xa8   :  { %v942_v2 = vpop.permute.xlu1 %941 }
  0xa9   :  { %v955_v24 = vsel %vm951_vm12, %v940_v61, %v942_v2  ;;  %v934_v5 = vpop.permute.xlu0 %933  ;;  %v1319_v61 = vrot.slane %v4350_v27, %v4062_v45 }
  0xaa   :  { %v971_v3 = vsel %vm928_vm1, %v955_v24, 0.0  ;;  %v952_v7 = vsel %vm951_vm12, %v934_v5, %v936_v29  ;;  %vm1702_vm1 = vmand %vm4318_vm3, %vm4026_vm4  ;;  %v1303_v29 = vrot.slane %v4350_v27, %v4047_v38 }
  0xab   :  { %3770 = vmatprep.subr.msk.mxu1 %vm267_vm10, %v971_v3  ;;  %v968_v30 = vsel %vm925_vm6, %v952_v7, 0.0  ;;  %v4385_v22 = vsel %vm1702_vm1, 1, %v3868_v8  ;;  %vm4393_vm6 = vcmp.eq.s32.totalorder %v1315_v55, 1 }
  0xac   :  { %v944_v10 = vpop.permute.xlu1 %943  ;;  %3771 = vmatpush1.msk.msra.mxu1 %vm267_vm10, %v970_v4  ;;  %3768 = vmatpush1.msk.msra.mxu0 %vm267_vm10, %v968_v30  ;;  %vm4402_vm7 = vcmp.eq.s32.totalorder %v1303_v29, 1  ;;  %v1711_v25 = vrot.slane %v4385_v22, %v4044_v35  ;;  %v1707_v4 = vrot.slane %v4385_v22, %v4047_v38  ;;  %v1727_v7 = vrot.slane %v4385_v22, %v4058_v42  ;;  %v4423_v30 = vld [vmem:[%s4938_s2 + $0x18] sm:$0xff] }
  0xad   :  { %3772 = vmatmul.mubr.msk.f32.vlgmr.msra.gmra.mxu1 %vm263_vm15, %v36_v19  ;;  %v956_v34 = vsel %vm951_vm12, %v942_v2, %v944_v10  ;;  %v946_v36 = vpop.permute.xlu0 %945  ;;  %3769 = vmatmul.mubr.msk.f32.vlgmr.msra.gmra.mxu0 %vm263_vm15, %v36_v19 }
  0xae   :  { %1280 = vmatprep.mubr.f32.mxu1 %v3867_v0  ;;  %v957_v40 = vsel %vm951_vm12, %v944_v10, %v946_v36  ;;  %1209 = vmatprep.mubr.f32.mxu0 %v3867_v0  ;;  %v972_v39 = vsel %vm4341_vm9, %v956_v34, 0.0  ;;  %vm4432_vm9 = vcmp.eq.s32.totalorder %v1319_v61, 1  ;;  %vm4456_vm1 = vcmp.eq.s32.totalorder %v1707_v4, 1 }
  0xaf   :  { %v973_v43 = vsel %vm930_vm5, %v957_v40, 0.0  ;;  %vm2071_vm5 = vmand %vm4318_vm3, %vm4215_vm0  ;;  %vm4474_vm3 = vcmp.eq.s32.totalorder %v1327_v31, 1  ;;  %v2493_v4 = vadd.s32 1, %v4010_v28 }
  0xb0   :  { %v948_v41 = vpop.permute.xlu1 %947  ;;  %3773 = vmatprep.subr.msk.mxu0 %vm267_vm10, %v973_v43 }
  0xb1   :  { %v958_v33 = vsel %vm951_vm12, %v946_v36, %v948_v41  ;;  %v950_v44 = vpop.permute.xlu0 %949  ;;  %3774 = vmatpush1.msk.msra.mxu0 %vm267_vm10, %v972_v39  ;;  %v4454_v39 = vsel %vm2071_vm5, 1, %v3868_v8  ;;  %vm2149_vm5 = vcmask 1039360  }
  0xb2   :  { %v959_v47 = vsel %vm951_vm12, %v948_v41, %v950_v44  ;;  %3775 = vmatmul.mubr.msk.f32.vlgmr.msra.gmra.mxu0 %vm263_vm15, %v36_v19  ;;  %v974_v52 = vsel %vm4359_vm8, %v958_v33, 0.0  ;;  %vm4388_vm12 = vcmp.eq.s32.totalorder %v1311_v54, 1  ;;  %v1331_v41 = vrot.slane %v4350_v27, %v4084_v53 }
  0xb3   :  { %v975_v50 = vsel %vm932_vm13, %v959_v47, 0.0  ;;  %1474 = vmatprep.mubr.f32.mxu0 %v3867_v0  ;;  %vm4436_vm13 = vcmp.eq.s32.totalorder %v1323_v62, 1  ;;  %vm4444_vm8 = vcmp.eq.s32.totalorder %v1711_v25, 1  ;;  %v1723_v27 = vrot.slane %v4385_v22, %v4062_v45  ;;  %v4671_v25 = vld [vmem:[#allocation2 + $0x30] sm:$0xff] }
  0xb4   :  { %v1343_v21 = vpop.permute.xlu1 %1342  ;;  %3776 = vmatprep.subr.msk.mxu1 %vm267_vm10, %v975_v50  ;;  %v1719_v44 = vrot.slane %v4385_v22, %v4064_v46  ;;  %v1715_v50 = vrot.slane %v4385_v22, %v4066_v48  ;;  %v1745_v54 = vsel %vm4444_vm8, %v3936_v14, 0.0  ;;  %v2089_v55 = vrot.slane %v4454_v39, %v4044_v35 }
  0xb5   :  { %v1345_v56 = vpop.permute.xlu0 %1344  ;;  %3777 = vmatpush1.msk.msra.mxu1 %vm267_vm10, %v974_v52  ;;  %v1744_v14 = vsel %vm4456_vm1, %v3930_v12, 0.0  ;;  %v1731_v12 = vrot.slane %v4385_v22, %v4080_v51  ;;  %v2085_v36 = vrot.slane %v4454_v39, %v4047_v38  ;;  %vm2494_vm1 = vcmp.ge.s32.totalorder %v2493_v4, 0 }
  0xb6   :  { %v1360_v57 = vsel %vm1358_vm14, %v1343_v21, %v1345_v56  ;;  %3778 = vmatmul.mubr.msk.f32.vlgmr.msra.gmra.mxu1 %vm263_vm15, %v36_v19  ;;  %v2105_v63 = vrot.slane %v4454_v39, %v4058_v42  ;;  %v2113_v49 = vrot.slane %v4454_v39, %v4084_v53 }
  0xb7   :  { %v1376_v59 = vsel %vm1333_vm2, %v1360_v57, 0.0  ;;  %1545 = vmatprep.mubr.f32.mxu1 %v3867_v0  ;;  %vm4465_vm2 = vcmp.eq.s32.totalorder %v1727_v7, 1  ;;  %vm4556_vm8 = vcmp.eq.s32.totalorder %v1731_v12, 1 }
  0xb8   :  { %v1347_v58 = vpop.permute.xlu1 %1346  ;;  %3779 = vmatprep.subr.msk.mxu0 %vm267_vm10, %v1376_v59  ;;  %v1749_v59 = vsel %vm4465_vm2, %v3942_v16, 0.0  ;;  %vm2495_vm2 = vcmp.lt.s32.totalorder %v2493_v4, 16 }
  0xb9   :  { %v1361_v2 = vsel %vm1358_vm14, %v1345_v56, %v1347_v58  ;;  %v1349_v24 = vpop.permute.xlu0 %1348  ;;  %v1735_v56 = vrot.slane %v4385_v22, %v4084_v53  ;;  %v38_v22 = vld [vmem:[%s4938_s2 + $0x20] sm:$0xff] }
  0xba   :  { %v1362_v5 = vsel %vm1358_vm14, %v1347_v58, %v1349_v24  ;;  %v1377_v26 = vsel %vm4388_vm12, %v1361_v2, 0.0  ;;  %vm4494_vm12 = vcmp.eq.s32.totalorder %v1331_v41, 1  ;;  %v2109_v58 = vrot.slane %v4454_v39, %v4080_v51 }
  0xbb   :  { %v1378_v10 = vsel %vm4393_vm6, %v1362_v5, 0.0  ;;  %vm4506_vm6 = vcmp.eq.s32.totalorder %v1723_v27, 1 }
  0xbc   :  { %v1341_v6 = vpop.permute.xlu1 %1340  ;;  %3782 = vmatprep.subr.msk.mxu1 %vm267_vm10, %v1378_v10  ;;  %v1748_v7 = vsel %vm4506_vm6, %v3932_v13, 0.0  ;;  %vm4593_vm6 = vmand %vm2494_vm1, %vm2495_vm2  ;;  %vm2557_vm1 = vcmask 924672  }
  0xbd   :  { %v1359_v19 = vsel %vm1358_vm14, %v1341_v6, %v1343_v21  ;;  %v1351_v40 = vpop.permute.xlu0 %1350  ;;  %3783 = vmatpush1.msk.msra.mxu1 %vm267_vm10, %v1377_v26 }
  0xbe   :  { %v1375_v34 = vsel %vm4402_vm7, %v1359_v19, 0.0  ;;  %v1363_v9 = vsel %vm1358_vm14, %v1349_v24, %v1351_v40  ;;  %3784 = vmatmul.mubr.msk.f32.vlgmr.msra.gmra.mxu1 %vm263_vm15, %v4423_v30  ;;  %vm4510_vm7 = vcmp.eq.s32.totalorder %v1719_v44, 1  ;;  %v2097_v19 = vrot.slane %v4454_v39, %v4064_v46 }
  0xbf   :  { %3780 = vmatpush1.msk.msra.mxu0 %vm267_vm10, %v1375_v34  ;;  %1687 = vmatprep.mubr.f32.mxu1 %v3867_v0  ;;  %v1379_v29 = vsel %vm4432_vm9, %v1363_v9, 0.0  ;;  %vm4520_vm9 = vcmp.eq.s32.totalorder %v1715_v50, 1  ;;  %v1747_v10 = vsel %vm4510_vm7, %v3944_v17, 0.0  ;;  %v2093_v17 = vrot.slane %v4454_v39, %v4066_v48  ;;  %v39_v50 = vld [vmem:[%s4938_s2 + $0x28] sm:$0xff] }
  0xc0   :  { %v1353_v33 = vpop.permute.xlu1 %1352  ;;  %3781 = vmatmul.mubr.msk.f32.vlgmr.msra.gmra.mxu0 %vm263_vm15, %v4423_v30  ;;  %v1746_v31 = vsel %vm4520_vm9, %v3927_v11, 0.0  ;;  %vm4601_vm7 = vcmp.eq.s32.totalorder %v2085_v36, 1  ;;  %v2101_v44 = vrot.slane %v4454_v39, %v4062_v45  ;;  %vm2497_vm9 = vmand %vm4593_vm6, %vm4070_vm11 }
  0xc1   :  { %v1364_v47 = vsel %vm1358_vm14, %v1351_v40, %v1353_v33  ;;  %1616 = vmatprep.mubr.f32.mxu0 %v3867_v0  ;;  %v1355_v57 = vpop.permute.xlu0 %1354 }
  0xc2   :  { %v1380_v52 = vsel %vm4436_vm13, %v1364_v47, 0.0  ;;  %v1365_v23 = vsel %vm1358_vm14, %v1353_v33, %v1355_v57  ;;  %vm4526_vm13 = vcmp.eq.s32.totalorder %v2089_v55, 1  ;;  %vm4634_vm11 = vcmp.eq.s32.totalorder %v2101_v44, 1 }
  0xc3   :  { %3785 = vmatprep.subr.msk.mxu0 %vm267_vm10, %v1380_v52  ;;  %v1381_v5 = vsel %vm4474_vm3, %v1365_v23, 0.0  ;;  %vm4576_vm3 = vcmp.eq.s32.totalorder %v2097_v19, 1 }
  0xc4   :  { %v1357_v60 = vpop.permute.xlu1 %1356  ;;  %3786 = vmatpush1.msk.msra.mxu0 %vm267_vm10, %v1379_v29 }
  0xc5   :  { %v1366_v2 = vsel %vm1358_vm14, %v1355_v57, %v1357_v60  ;;  %3787 = vmatmul.mubr.msk.f32.vlgmr.msra.gmra.mxu0 %vm263_vm15, %v4423_v30  ;;  %3791 = vmatprep.subr.msk.mxu0 %vm267_vm10, %v1745_v54  ;;  %vm4535_vm14 = vcmp.eq.s32.totalorder %v1735_v56, 1  ;;  %v2134_v6 = vpop.permute.xlu0 %2133 }
  0xc6   :  { %v1382_v24 = vsel %vm4494_vm12, %v1366_v2, 0.0  ;;  %3792 = vmatpush1.msk.msra.mxu0 %vm267_vm10, %v1744_v14  ;;  %1843 = vmatprep.mubr.f32.mxu0 %v3867_v0  ;;  %v1751_v34 = vsel %vm4535_vm14, %v3948_v18, 0.0  ;;  %v1750_v18 = vsel %vm4556_vm8, %v3938_v15, 0.0  ;;  %vm4586_vm12 = vcmp.eq.s32.totalorder %v2093_v17, 1 }
  0xc7   :  { %3788 = vmatprep.subr.msk.mxu1 %vm267_vm10, %v1382_v24  ;;  %3797 = vmatprep.subr.msk.mxu0 %vm267_vm10, %v1749_v59  ;;  %v4644_v14 = vsel %vm2497_vm9, 1, %v3868_v8  ;;  %vm4654_vm14 = vcmp.eq.s32.totalorder %v2113_v49, 1  ;;  %vm4661_vm8 = vcmp.eq.s32.totalorder %v2109_v58, 1 }
  0xc8   :  { %v2136_v28 = vpop.permute.xlu1 %2135  ;;  %3789 = vmatpush1.msk.msra.mxu1 %vm267_vm10, %v1381_v5  ;;  %v2506_v62 = vrot.slane %v4644_v14, %v4044_v35  ;;  %v2514_v4 = vrot.slane %v4644_v14, %v4064_v46  ;;  %v2530_v32 = vrot.slane %v4644_v14, %v4084_v53  ;;  %v2526_v44 = vrot.slane %v4644_v14, %v4080_v51 }
  0xc9   :  { %v2151_v13 = vsel %vm2149_vm5, %v2134_v6, %v2136_v28  ;;  %3790 = vmatmul.mubr.msk.f32.vlgmr.msra.gmra.mxu1 %vm263_vm15, %v4423_v30  ;;  %3793 = vmatmul.mubr.msk.f32.vlgmr.msra.gmra.mxu0 %vm263_vm15, %v38_v22  ;;  %v2138_v30 = vpop.permute.xlu0 %2137 }
  0xca   :  { %v2167_v11 = vsel %vm4526_vm13, %v2151_v13, 0.0  ;;  %3798 = vmatpush1.msk.msra.mxu0 %vm267_vm10, %v1748_v7  ;;  %3794 = vmatprep.subr.msk.mxu1 %vm267_vm10, %v1747_v10  ;;  %v2152_v15 = vsel %vm2149_vm5, %v2136_v28, %v2138_v30  ;;  %vm4628_vm13 = vcmp.eq.s32.totalorder %v2105_v63, 1  ;;  %vm2532_vm2 = vcmp.eq.s32.totalorder %v2506_v62, 1 }
  0xcb   :  { %3803 = vmatprep.subr.msk.mxu0 %vm267_vm10, %v2167_v11  ;;  %3795 = vmatpush1.msk.msra.mxu1 %vm267_vm10, %v1746_v31  ;;  %v2168_v52 = vsel %vm4586_vm12, %v2152_v15, 0.0  ;;  %v2502_v7 = vrot.slane %v4644_v14, %v4047_v38 }
  0xcc   :  { %v2140_v40 = vpop.permute.xlu1 %2139  ;;  %1914 = vmatprep.mubr.f32.mxu1 %v3867_v0  ;;  %3800 = vmatprep.subr.msk.mxu1 %vm267_vm10, %v1751_v34  ;;  %v2522_v34 = vrot.slane %v4644_v14, %v4058_v42 }
  0xcd   :  { %v2153_v43 = vsel %vm2149_vm5, %v2138_v30, %v2140_v40  ;;  %3796 = vmatmul.mubr.msk.f32.vlgmr.msra.gmra.mxu1 %vm263_vm15, %v38_v22  ;;  %1985 = vmatprep.mubr.f32.mxu0 %v3867_v0  ;;  %v2132_v27 = vpop.permute.xlu0 %2131  ;;  %vm2531_vm12 = vcmp.eq.s32.totalorder %v2502_v7, 1  ;;  %v2518_v30 = vrot.slane %v4644_v14, %v4062_v45 }
  0xce   :  { %v2169_v9 = vsel %vm4576_vm3, %v2153_v43, 0.0  ;;  %3801 = vmatpush1.msk.msra.mxu1 %vm267_vm10, %v1750_v18  ;;  %2056 = vmatprep.mubr.f32.mxu1 %v3867_v0  ;;  %v2150_v47 = vsel %vm2149_vm5, %v2132_v27, %v2134_v6  ;;  %v2510_v6 = vrot.slane %v4644_v14, %v4066_v48  ;;  %vm4717_vm9 = vcmp.eq.s32.totalorder %v2522_v34, 1 }
  0xcf   :  { %3806 = vmatprep.subr.msk.mxu1 %vm267_vm10, %v2169_v9  ;;  %3799 = vmatmul.mubr.msk.f32.vlgmr.msra.gmra.mxu0 %vm263_vm15, %v38_v22  ;;  %v2166_v54 = vsel %vm4601_vm7, %v2150_v47, 0.0  ;;  %vm2901_vm7 = vmand %vm4593_vm6, %vm4026_vm4  ;;  %vm2538_vm4 = vcmp.eq.s32.totalorder %v2530_v32, 1 }
  0xd0   :  { %v2142_v21 = vpop.permute.xlu1 %2141  ;;  %2265 = vmatprep.mubr.f32.mxu0 %v3867_v0  ;;  %3804 = vmatpush1.msk.msra.mxu0 %vm267_vm10, %v2166_v54  ;;  %vm4692_vm3 = vcmp.eq.s32.totalorder %v2510_v6, 1  ;;  %v4733_v47 = vsel %vm2901_vm7, 1, %v3868_v8 }
  0xd1   :  { %3802 = vmatmul.mubr.msk.f32.vlgmr.msra.gmra.mxu1 %vm263_vm15, %v38_v22  ;;  %v2154_v29 = vsel %vm2149_vm5, %v2140_v40, %v2142_v21  ;;  %v2144_v57 = vpop.permute.xlu0 %2143  ;;  %v40_v40 = vld [vmem:[%s4938_s2 + $0x30] sm:$0xff]  ;;  %v2910_v55 = vrot.slane %v4733_v47, %v4044_v35  ;;  %v2906_v12 = vrot.slane %v4733_v47, %v4047_v38  ;;  %v2922_v7 = vrot.slane %v4733_v47, %v4062_v45 }
  0xd2   :  { %3807 = vmatpush1.msk.msra.mxu1 %vm267_vm10, %v2168_v52  ;;  %2336 = vmatprep.mubr.f32.mxu1 %v3867_v0  ;;  %v2155_v59 = vsel %vm2149_vm5, %v2142_v21, %v2144_v57  ;;  %v2170_v39 = vsel %vm4634_vm11, %v2154_v29, 0.0  ;;  %vm4745_vm11 = vcmp.eq.s32.totalorder %v2526_v44, 1  ;;  %v2934_v31 = vrot.slane %v4733_v47, %v4084_v53 }
  0xd3   :  { %3805 = vmatmul.mubr.msk.f32.vlgmr.msra.gmra.mxu0 %vm263_vm15, %v39_v50  ;;  %v2171_v60 = vsel %vm4628_vm13, %v2155_v59, 0.0  ;;  %vm4723_vm13 = vcmp.eq.s32.totalorder %v2518_v30, 1  ;;  %vm4789_vm7 = vcmp.eq.s32.totalorder %v2922_v7, 1  ;;  %v2930_v20 = vrot.slane %v4733_v47, %v4080_v51 }
  0xd4   :  { %v2146_v23 = vpop.permute.xlu1 %2145  ;;  %2407 = vmatprep.mubr.f32.mxu0 %v3867_v0  ;;  %3809 = vmatprep.subr.msk.mxu0 %vm267_vm10, %v2171_v60 }
  0xd5   :  { %3808 = vmatmul.mubr.msk.f32.vlgmr.msra.gmra.mxu1 %vm263_vm15, %v39_v50  ;;  %v2156_v2 = vsel %vm2149_vm5, %v2144_v57, %v2146_v23  ;;  %v2148_v16 = vpop.permute.xlu0 %2147  ;;  %3810 = vmatpush1.msk.msra.mxu0 %vm267_vm10, %v2170_v39  ;;  %v2914_v39 = vrot.slane %v4733_v47, %v4066_v48 }
  0xd6   :  { %2478 = vmatprep.mubr.f32.mxu1 %v3867_v0  ;;  %v2157_v24 = vsel %vm2149_vm5, %v2146_v23, %v2148_v16  ;;  %v2172_v0 = vsel %vm4661_vm8, %v2156_v2, 0.0  ;;  %vm4688_vm5 = vcmp.eq.s32.totalorder %v2514_v4, 1  ;;  %vm2936_vm8 = vcmp.eq.s32.totalorder %v2910_v55, 1 }
  0xd7   :  { %3811 = vmatmul.mubr.msk.f32.vlgmr.msra.gmra.mxu0 %vm263_vm15, %v39_v50  ;;  %v2173_v22 = vsel %vm4654_vm14, %v2157_v24, 0.0  ;;  %vm2961_vm14 = vcmask 916480   ;;  %v2918_v23 = vrot.slane %v4733_v47, %v4064_v46  ;;  %v2926_v4 = vrot.slane %v4733_v47, %v4058_v42 }
  0xd8   :  { %v2542_v3 = vpop.permute.xlu1 %2541  ;;  %2673 = vmatprep.mubr.f32.mxu0 %v4671_v25  ;;  %3812 = vmatprep.subr.msk.mxu1 %vm267_vm10, %v2173_v22 }
  0xd9   :  { %v2544_v5 = vpop.permute.xlu0 %2543  ;;  %3813 = vmatpush1.msk.msra.mxu1 %vm267_vm10, %v2172_v0  ;;  %v41_v0 = vld [vmem:[%s4938_s2 + $0x38] sm:$0xff] }
  0xda   :  { %v2559_v10 = vsel %vm2557_vm1, %v2542_v3, %v2544_v5  ;;  %3814 = vmatmul.mubr.msk.f32.vlgmr.msra.gmra.mxu1 %vm263_vm15, %v39_v50 }
  0xdb   :  { %v2575_v28 = vsel %vm2532_vm2, %v2559_v10, 0.0  ;;  %2744 = vmatprep.mubr.f32.mxu1 %v4671_v25  ;;  %vm2937_vm2 = vcmp.eq.s32.totalorder %v2914_v39, 1 }
  0xdc   :  { %v2546_v19 = vpop.permute.xlu1 %2545  ;;  %3815 = vmatprep.subr.msk.mxu0 %vm267_vm10, %v2575_v28 }
  0xdd   :  { %v2560_v13 = vsel %vm2557_vm1, %v2544_v5, %v2546_v19  ;;  %v2548_v17 = vpop.permute.xlu0 %2547 }
  0xde   :  { %v2561_v11 = vsel %vm2557_vm1, %v2546_v19, %v2548_v17  ;;  %v2576_v41 = vsel %vm4692_vm3, %v2560_v13, 0.0  ;;  %vm3305_vm3 = vmand %vm4593_vm6, %vm4215_vm0  ;;  %vm2942_vm0 = vcmp.eq.s32.totalorder %v2934_v31, 1  ;;  %vm4807_vm6 = vcmp.eq.s32.totalorder %v2930_v20, 1 }
  0xdf   :  { %v2577_v37 = vsel %vm4688_vm5, %v2561_v11, 0.0  ;;  %vm2935_vm5 = vcmp.eq.s32.totalorder %v2906_v12, 1 }
  0xe0   :  { %v2540_v36 = vpop.permute.xlu1 %2539  ;;  %3818 = vmatprep.subr.msk.mxu1 %vm267_vm10, %v2577_v37 }
  0xe1   :  { %v2558_v18 = vsel %vm2557_vm1, %v2540_v36, %v2542_v3  ;;  %v2550_v15 = vpop.permute.xlu0 %2549  ;;  %3819 = vmatpush1.msk.msra.mxu1 %vm267_vm10, %v2576_v41 }
  0xe2   :  { %v2574_v43 = vsel %vm2531_vm12, %v2558_v18, 0.0  ;;  %v2562_v63 = vsel %vm2557_vm1, %v2548_v17, %v2550_v15  ;;  %3820 = vmatmul.mubr.msk.f32.vlgmr.msra.gmra.mxu1 %vm263_vm15, %v40_v40  ;;  %vm2940_vm12 = vcmp.eq.s32.totalorder %v2926_v4, 1  ;;  %v4798_v17 = vsel %vm3305_vm3, 1, %v3868_v8 }
  0xe3   :  { %3816 = vmatpush1.msk.msra.mxu0 %vm267_vm10, %v2574_v43  ;;  %2886 = vmatprep.mubr.f32.mxu1 %v4671_v25  ;;  %v2578_v52 = vsel %vm4723_vm13, %v2562_v63, 0.0  ;;  %v3314_v37 = vrot.slane %v4798_v17, %v4044_v35  ;;  %v3322_v9 = vrot.slane %v4798_v17, %v4064_v46  ;;  %v3318_v33 = vrot.slane %v4798_v17, %v4066_v48 }
  0xe4   :  { %v2552_v27 = vpop.permute.xlu1 %2551  ;;  %3817 = vmatmul.mubr.msk.f32.vlgmr.msra.gmra.mxu0 %vm263_vm15, %v40_v40  ;;  %v3310_v63 = vrot.slane %v4798_v17, %v4047_v38  ;;  %v3330_v38 = vrot.slane %v4798_v17, %v4058_v42 }
  0xe5   :  { %v2563_v21 = vsel %vm2557_vm1, %v2550_v15, %v2552_v27  ;;  %2815 = vmatprep.mubr.f32.mxu0 %v4671_v25  ;;  %v2554_v54 = vpop.permute.xlu0 %2553  ;;  %vm3340_vm13 = vcmp.eq.s32.totalorder %v3314_v37, 1 }
  0xe6   :  { %v2579_v50 = vsel %vm4717_vm9, %v2563_v21, 0.0  ;;  %v2564_v56 = vsel %vm2557_vm1, %v2552_v27, %v2554_v54  ;;  %vm3365_vm9 = vcmask 908288  }
  0xe7   :  { %3821 = vmatprep.subr.msk.mxu0 %vm267_vm10, %v2579_v50  ;;  %v2580_v14 = vsel %vm4745_vm11, %v2564_v56, 0.0  ;;  %vm4830_vm11 = vcmp.eq.s32.totalorder %v3318_v33, 1  ;;  %v42_v56 = vld [vmem:[%s4938_s2 + $0x40] sm:$0xff] }
  0xe8   :  { %v2556_v29 = vpop.permute.xlu1 %2555  ;;  %3822 = vmatpush1.msk.msra.mxu0 %vm267_vm10, %v2578_v52 }
  0xe9   :  { %v2565_v57 = vsel %vm2557_vm1, %v2554_v54, %v2556_v29  ;;  %3823 = vmatmul.mubr.msk.f32.vlgmr.msra.gmra.mxu0 %vm263_vm15, %v40_v40  ;;  %v2946_v59 = vpop.permute.xlu0 %2945  ;;  %vm2938_vm1 = vcmp.eq.s32.totalorder %v2918_v23, 1  ;;  %v3326_v54 = vrot.slane %v4798_v17, %v4062_v45  ;;  %v3338_v45 = vrot.slane %v4798_v17, %v4084_v53 }
  0xea   :  { %v2581_v58 = vsel %vm2538_vm4, %v2565_v57, 0.0  ;;  %3077 = vmatprep.mubr.f32.mxu0 %v4671_v25  ;;  %vm3342_vm4 = vcmp.eq.s32.totalorder %v3322_v9, 1  ;;  %v3334_v23 = vrot.slane %v4798_v17, %v4080_v51 }
  0xeb   :  { %3824 = vmatprep.subr.msk.mxu1 %vm267_vm10, %v2581_v58 }
  0xec   :  { %v2948_v60 = vpop.permute.xlu1 %2947  ;;  %3825 = vmatpush1.msk.msra.mxu1 %vm267_vm10, %v2580_v14 }
  0xed   :  { %v2963_v61 = vsel %vm2961_vm14, %v2946_v59, %v2948_v60  ;;  %3826 = vmatmul.mubr.msk.f32.vlgmr.msra.gmra.mxu1 %vm263_vm15, %v40_v40  ;;  %v2950_v2 = vpop.permute.xlu0 %2949 }
  0xee   :  { %v2979_v62 = vsel %vm2936_vm8, %v2963_v61, 0.0  ;;  %3148 = vmatprep.mubr.f32.mxu1 %v4671_v25  ;;  %v2964_v16 = vsel %vm2961_vm14, %v2948_v60, %v2950_v2  ;;  %vm3344_vm8 = vcmp.eq.s32.totalorder %v3330_v38, 1 }
  0xef   :  { %3827 = vmatprep.subr.msk.mxu0 %vm267_vm10, %v2979_v62  ;;  %v2980_v5 = vsel %vm2937_vm2, %v2964_v16, 0.0  ;;  %vm3346_vm2 = vcmp.eq.s32.totalorder %v3338_v45, 1 }
  0xf0   :  { %v2952_v24 = vpop.permute.xlu1 %2951 }
  0xf1   :  { %v2965_v3 = vsel %vm2961_vm14, %v2950_v2, %v2952_v24  ;;  %v2944_v6 = vpop.permute.xlu0 %2943 }
  0xf2   :  { %v2981_v22 = vsel %vm2938_vm1, %v2965_v3, 0.0  ;;  %v2962_v10 = vsel %vm2961_vm14, %v2944_v6, %v2946_v59  ;;  %vm4851_vm1 = vcmp.eq.s32.totalorder %v3326_v54, 1 }
  0xf3   :  { %3830 = vmatprep.subr.msk.mxu1 %vm267_vm10, %v2981_v22  ;;  %v2978_v28 = vsel %vm2935_vm5, %v2962_v10, 0.0  ;;  %vm3345_vm5 = vcmp.eq.s32.totalorder %v3334_v23, 1 }
  0xf4   :  { %v2954_v19 = vpop.permute.xlu1 %2953  ;;  %3831 = vmatpush1.msk.msra.mxu1 %vm267_vm10, %v2980_v5  ;;  %3828 = vmatpush1.msk.msra.mxu0 %vm267_vm10, %v2978_v28 }
  0xf5   :  { %3832 = vmatmul.mubr.msk.f32.vlgmr.msra.gmra.mxu1 %vm263_vm15, %v41_v0  ;;  %v2966_v1 = vsel %vm2961_vm14, %v2952_v24, %v2954_v19  ;;  %v2956_v13 = vpop.permute.xlu0 %2955  ;;  %3829 = vmatmul.mubr.msk.f32.vlgmr.msra.gmra.mxu0 %vm263_vm15, %v41_v0 }
  0xf6   :  { %3290 = vmatprep.mubr.f32.mxu1 %v4671_v25  ;;  %v2967_v34 = vsel %vm2961_vm14, %v2954_v19, %v2956_v13  ;;  %3219 = vmatprep.mubr.f32.mxu0 %v4671_v25  ;;  %v2982_v30 = vsel %vm4789_vm7, %v2966_v1, 0.0 }
  0xf7   :  { %v2983_v36 = vsel %vm2940_vm12, %v2967_v34, 0.0 }
  0xf8   :  { %v2958_v11 = vpop.permute.xlu1 %2957  ;;  %3833 = vmatprep.subr.msk.mxu0 %vm267_vm10, %v2983_v36 }
  0xf9   :  { %v2968_v8 = vsel %vm2961_vm14, %v2956_v13, %v2958_v11  ;;  %v2960_v40 = vpop.permute.xlu0 %2959  ;;  %3834 = vmatpush1.msk.msra.mxu0 %vm267_vm10, %v2982_v30 }
  0xfa   :  { %v2969_v41 = vsel %vm2961_vm14, %v2958_v11, %v2960_v40  ;;  %3835 = vmatmul.mubr.msk.f32.vlgmr.msra.gmra.mxu0 %vm263_vm15, %v41_v0  ;;  %v2984_v35 = vsel %vm4807_vm6, %v2968_v8, 0.0  ;;  %vm3339_vm14 = vcmp.eq.s32.totalorder %v3310_v63, 1 }
  0xfb   :  { %v2985_v15 = vsel %vm2942_vm0, %v2969_v41, 0.0  ;;  %3481 = vmatprep.mubr.f32.mxu0 %v4671_v25 }
  0xfc   :  { %v3350_v43 = vpop.permute.xlu1 %3349  ;;  %3836 = vmatprep.subr.msk.mxu1 %vm267_vm10, %v2985_v15 }
  0xfd   :  { %v3352_v32 = vpop.permute.xlu0 %3351  ;;  %3837 = vmatpush1.msk.msra.mxu1 %vm267_vm10, %v2984_v35 }
  0xfe   :  { %v3367_v27 = vsel %vm3365_vm9, %v3350_v43, %v3352_v32  ;;  %3838 = vmatmul.mubr.msk.f32.vlgmr.msra.gmra.mxu1 %vm263_vm15, %v41_v0 }
  0xff   :  { %v3383_v47 = vsel %vm3340_vm13, %v3367_v27, 0.0  ;;  %3552 = vmatprep.mubr.f32.mxu1 %v4671_v25 }
 0x100   :  { %v3354_v44 = vpop.permute.xlu1 %3353  ;;  %3839 = vmatprep.subr.msk.mxu0 %vm267_vm10, %v3383_v47 }
 0x101   :  { %v3368_v48 = vsel %vm3365_vm9, %v3352_v32, %v3354_v44  ;;  %v3356_v21 = vpop.permute.xlu0 %3355 }
 0x102   :  { %v3369_v50 = vsel %vm3365_vm9, %v3354_v44, %v3356_v21  ;;  %v3384_v29 = vsel %vm4830_vm11, %v3368_v48, 0.0 }
 0x103   :  { %v3385_v55 = vsel %vm3342_vm4, %v3369_v50, 0.0 }
 0x104   :  { %v3348_v52 = vpop.permute.xlu1 %3347  ;;  %3842 = vmatprep.subr.msk.mxu1 %vm267_vm10, %v3385_v55 }
 0x105   :  { %v3366_v49 = vsel %vm3365_vm9, %v3348_v52, %v3350_v43  ;;  %3843 = vmatpush1.msk.msra.mxu1 %vm267_vm10, %v3384_v29 }
 0x106   :  { %v3382_v57 = vsel %vm3339_vm14, %v3366_v49, 0.0  ;;  %v3358_v42 = vpop.permute.xlu0 %3357  ;;  %3844 = vmatmul.mubr.msk.f32.vlgmr.msra.gmra.mxu1 %vm263_vm15, %v42_v56 }
 0x107   :  { %3840 = vmatpush1.msk.msra.mxu0 %vm267_vm10, %v3382_v57  ;;  %v3370_v14 = vsel %vm3365_vm9, %v3356_v21, %v3358_v42  ;;  %3694 = vmatprep.mubr.f32.mxu1 %v4671_v25 }
 0x108   :  { %v3360_v59 = vpop.permute.xlu1 %3359  ;;  %3841 = vmatmul.mubr.msk.f32.vlgmr.msra.gmra.mxu0 %vm263_vm15, %v42_v56  ;;  %v3386_v39 = vsel %vm4851_vm1, %v3370_v14, 0.0 }
 0x109   :  { %v3371_v60 = vsel %vm3365_vm9, %v3358_v42, %v3360_v59  ;;  %3623 = vmatprep.mubr.f32.mxu0 %v4671_v25 }
 0x10a   :  { %v3387_v53 = vsel %vm3344_vm8, %v3371_v60, 0.0  ;;  %v3362_v61 = vpop.permute.xlu0 %3361 }
 0x10b   :  { %3845 = vmatprep.subr.msk.mxu0 %vm267_vm10, %v3387_v53  ;;  %v3372_v62 = vsel %vm3365_vm9, %v3360_v59, %v3362_v61 }
 0x10c   :  { %v3364_v12 = vpop.permute.xlu1 %3363  ;;  %3846 = vmatpush1.msk.msra.mxu0 %vm267_vm10, %v3386_v39  ;;  %v3388_v25 = vsel %vm3345_vm5, %v3372_v62, 0.0 }
 0x10d   :  { %v3373_v51 = vsel %vm3365_vm9, %v3362_v61, %v3364_v12  ;;  %3847 = vmatmul.mubr.msk.f32.vlgmr.msra.gmra.mxu0 %vm263_vm15, %v42_v56 }
 0x10e   :  { %v3389_v2 = vsel %vm3346_vm2, %v3373_v51, 0.0 }
 0x10f   :  { %3848 = vmatprep.subr.msk.mxu1 %vm267_vm10, %v3389_v2 }
 0x110   :  { %3849 = vmatpush1.msk.msra.mxu1 %vm267_vm10, %v3388_v25 }
 0x111   :  { %3850 = vmatmul.mubr.msk.f32.vlgmr.msra.gmra.mxu1 %vm263_vm15, %v42_v56 }
 0x149   :  { %v358_v16 = vpop.f32.mrf.mxu0 }
 0x14b   :  { %v360_v3 = vpop.f32.mrf.mxu0 }
 0x150   :  { %v500_v0 = vpop.f32.mrf.mxu0 }
 0x151   :  { %v429_v24 = vpop.f32.mrf.mxu1 }
 0x152   :  { %v502_v5 = vpop.f32.mrf.mxu0 }
 0x153   :  { %v431_v22 = vpop.f32.mrf.mxu1 }
 0x155   :  { %v4873_v4 = vpop.f32.mrf.mxu1 }
 0x157   :  { %v4875_v6 = vpop.f32.mrf.mxu1 }
 0x15a   :  { %v740_v10 = vpop.f32.mrf.mxu1 }
 0x15b   :  { %v741_v14 = vadd.f32 %v740_v10, %v429_v24 }
 0x15c   :  { %v669_v7 = vpop.f32.mrf.mxu0  ;;  %v742_v28 = vpop.f32.mrf.mxu1 }
 0x15d   :  { %v670_v58 = vadd.f32 %v669_v7, %v358_v16  ;;  %v743_v39 = vadd.f32 %v742_v28, %v431_v22 }
 0x15e   :  { %v671_v19 = vpop.f32.mrf.mxu0 }
 0x15f   :  { %v672_v60 = vadd.f32 %v671_v19, %v360_v3 }
 0x161   :  { %v811_v31 = vpop.f32.mrf.mxu0 }
 0x162   :  { %v812_v12 = vadd.f32 %v811_v31, %v500_v0 }
 0x163   :  { %v813_v1 = vpop.f32.mrf.mxu0 }
 0x164   :  { %v814_v25 = vadd.f32 %v813_v1, %v502_v5 }
 0x165   :  { %v882_v26 = vpop.f32.mrf.mxu1 }
 0x166   :  { %v883_v3 = vadd.f32 %v882_v26, %v4873_v4 }
 0x167   :  { %v4877_v13 = vpop.f32.mrf.mxu1 }
 0x168   :  { %v885_v0 = vadd.f32 %v4877_v13, %v4875_v6 }
 0x16d   :  { %v1069_v20 = vpop.f32.mrf.mxu0  ;;  %v1140_v17 = vpop.f32.mrf.mxu1 }
 0x16e   :  { %v1287_v61 = vadd.f32 %v1069_v20, %v670_v58  ;;  %v1289_v62 = vadd.f32 %v1140_v17, %v741_v14 }
 0x16f   :  { %v1071_v34 = vpop.f32.mrf.mxu0  ;;  %v1142_v11 = vpop.f32.mrf.mxu1 }
 0x170   :  { %v1288_v2 = vadd.f32 %v1071_v34, %v672_v60 }
 0x172   :  { %v1211_v36 = vpop.f32.mrf.mxu0 }
 0x173   :  { %v1291_v16 = vadd.f32 %v1211_v36, %v812_v12 }
 0x174   :  { %v1213_v37 = vpop.f32.mrf.mxu0 }
 0x175   :  { %v1292_v10 = vadd.f32 %v1213_v37, %v814_v25 }
 0x176   :  { %v1282_v30 = vpop.f32.mrf.mxu1 }
 0x177   :  { %v1293_v17 = vadd.f32 %v1282_v30, %v883_v3 }
 0x178   :  { %v4879_v18 = vpop.f32.mrf.mxu1 }
 0x179   :  { %v1294_v4 = vadd.f32 %v4879_v18, %v885_v0 }
 0x17e   :  { %v1547_v41 = vpop.f32.mrf.mxu1 }
 0x180   :  { %v1476_v8 = vpop.f32.mrf.mxu0  ;;  %v1549_v15 = vpop.f32.mrf.mxu1 }
 0x182   :  { %v1478_v40 = vpop.f32.mrf.mxu0 }
 0x183   :  { %v1695_v7 = vadd.f32 %v1478_v40, %v1288_v2 }
 0x185   :  { %v1618_v43 = vpop.f32.mrf.mxu0 }
 0x186   :  { %v1698_v5 = vadd.f32 %v1618_v43, %v1291_v16 }
 0x187   :  { %v1620_v35 = vpop.f32.mrf.mxu0 }
 0x188   :  { %v1699_v34 = vadd.f32 %v1620_v35, %v1292_v10 }
 0x189   :  { %v4881_v9 = vpop.f32.mrf.mxu1  ;;  %v1845_v32 = vpop.f32.mrf.mxu0 }
 0x18b   :  { %v4883_v33 = vpop.f32.mrf.mxu1  ;;  %v1847_v63 = vpop.f32.mrf.mxu0 }
 0x18c   :  { %v2064_v1 = vadd.f32 %v1847_v63, %v1695_v7 }
 0x18d   :  { %v1916_v27 = vpop.f32.mrf.mxu1 }
 0x18f   :  { %v1987_v44 = vpop.f32.mrf.mxu0  ;;  %v1918_v47 = vpop.f32.mrf.mxu1 }
 0x190   :  { %v2067_v26 = vadd.f32 %v1987_v44, %v1698_v5 }
 0x191   :  { %v1989_v46 = vpop.f32.mrf.mxu0  ;;  %v4885_v48 = vpop.f32.mrf.mxu1 }
 0x192   :  { %5051 = vst [vmem:[#allocation3_spill] sm:$0xff] %v4885_v48  ;;  %v1696_v48 = vadd.f32 %v1547_v41, %v1289_v62  ;;  %v2068_v6 = vadd.f32 %v1989_v46, %v1699_v34 }
 0x193   :  { %v2267_v21 = vpop.f32.mrf.mxu0  ;;  %v4887_v38 = vpop.f32.mrf.mxu1 }
 0x194   :  { %5052 = vst [vmem:[#allocation4_spill] sm:$0xff] %v4887_v38  ;;  %v2065_v20 = vadd.f32 %v1916_v27, %v1696_v48  ;;  %v1700_v48 = vadd.f32 %v4881_v9, %v1293_v17 }
 0x195   :  { %v2269_v50 = vpop.f32.mrf.mxu0  ;;  %v2338_v52 = vpop.f32.mrf.mxu1 }
 0x196   :  { %v2487_v40 = vadd.f32 %v2338_v52, %v2065_v20  ;;  %v2486_v37 = vadd.f32 %v2269_v50, %v2064_v1 }
 0x197   :  { %v2409_v54 = vpop.f32.mrf.mxu0  ;;  %v2340_v55 = vpop.f32.mrf.mxu1 }
 0x199   :  { %v4889_v49 = vpop.f32.mrf.mxu0 }
 0x19a   :  { %5053 = vst [vmem:[#allocation5_spill] sm:$0xff] %v4889_v49  ;;  %v4891_v56 = vpop.f32.mrf.mxu1  ;;  %v1694_v49 = vadd.f32 %v1476_v8, %v1287_v61 }
 0x19b   :  { %5054 = vst [vmem:[#allocation6_spill] sm:$0xff] %v4891_v56  ;;  %v5058_v62 = vld [vmem:[#allocation4_spill] sm:$0xff] }
 0x19c   :  { %v4893_v57 = vpop.f32.mrf.mxu1  ;;  %v2063_v28 = vadd.f32 %v1845_v32, %v1694_v49 }
 0x19d   :  { %5055 = vst [vmem:[#allocation7_spill] sm:$0xff] %v4893_v57  ;;  %v1290_v57 = vadd.f32 %v1142_v11, %v743_v39 }
 0x19e   :  { %v2485_v41 = vadd.f32 %v2267_v21, %v2063_v28  ;;  %v2489_v21 = vadd.f32 %v2409_v54, %v2067_v26 }
 0x19f   :  { %v1697_v22 = vadd.f32 %v1549_v15, %v1290_v57  ;;  %v3712_v57 = vpop.permute.xlu0 %3711 }
 0x1a1   :  { %v2066_v36 = vadd.f32 %v1918_v47, %v1697_v22  ;;  %v1701_v47 = vadd.f32 %v4883_v33, %v1294_v4  ;;  %v5057_v9 = vld [vmem:[#allocation5_spill] sm:$0xff] }
 0x1a2   :  { %v2746_v42 = vpop.f32.mrf.mxu1  ;;  %v2490_v46 = vadd.f32 %v5057_v9, %v2068_v6  ;;  %v5059_v54 = vld [vmem:[#allocation6_spill] sm:$0xff] }
 0x1a3   :  { %v2488_v15 = vadd.f32 %v2340_v55, %v2066_v36  ;;  %v2895_v27 = vadd.f32 %v2746_v42, %v2487_v40  ;;  %v5056_v42 = vld [vmem:[#allocation3_spill] sm:$0xff]  ;;  %v2070_v33 = vadd.f32 %v5058_v62, %v1701_v47 }
 0x1a4   :  { %v2675_v29 = vpop.f32.mrf.mxu0  ;;  %v2748_v59 = vpop.f32.mrf.mxu1  ;;  %v2069_v58 = vadd.f32 %v5056_v42, %v1700_v48 }
 0x1a5   :  { %v2893_v32 = vadd.f32 %v2675_v29, %v2485_v41  ;;  %v2896_v30 = vadd.f32 %v2748_v59, %v2488_v15 }
 0x1a6   :  { %v2677_v45 = vpop.f32.mrf.mxu0  ;;  %v2491_v12 = vadd.f32 %v5059_v54, %v2069_v58 }
 0x1a7   :  { %v2894_v63 = vadd.f32 %v2677_v45, %v2486_v37 }
 0x1a9   :  { %v2817_v23 = vpop.f32.mrf.mxu0 }
 0x1aa   :  { %v2897_v14 = vadd.f32 %v2817_v23, %v2489_v21 }
 0x1ab   :  { %v2819_v51 = vpop.f32.mrf.mxu0 }
 0x1ac   :  { %v2898_v2 = vadd.f32 %v2819_v51, %v2490_v46 }
 0x1ad   :  { %v4895_v53 = vpop.f32.mrf.mxu1 }
 0x1ae   :  { %v2899_v23 = vadd.f32 %v4895_v53, %v2491_v12 }
 0x1af   :  { %v4897_v56 = vpop.f32.mrf.mxu1 }
 0x1b5   :  { %v3079_v38 = vpop.f32.mrf.mxu0  ;;  %v3150_v24 = vpop.f32.mrf.mxu1 }
 0x1b6   :  { %v3299_v35 = vadd.f32 %v3150_v24, %v2895_v27  ;;  %v3297_v49 = vadd.f32 %v3079_v38, %v2893_v32 }
 0x1b7   :  { %v3081_v19 = vpop.f32.mrf.mxu0  ;;  %v3152_v31 = vpop.f32.mrf.mxu1 }
 0x1b8   :  { %v3300_v44 = vadd.f32 %v3152_v31, %v2896_v30  ;;  %v3298_v50 = vadd.f32 %v3081_v19, %v2894_v63  ;;  %v5060_v19 = vld [vmem:[#allocation7_spill] sm:$0xff] }
 0x1b9   :  { %v2492_v22 = vadd.f32 %v5060_v19, %v2070_v33 }
 0x1ba   :  { %v3221_v11 = vpop.f32.mrf.mxu0 }
 0x1bb   :  { %v3301_v25 = vadd.f32 %v3221_v11, %v2897_v14  ;;  %v2900_v31 = vadd.f32 %v4897_v56, %v2492_v22 }
 0x1bc   :  { %v3223_v13 = vpop.f32.mrf.mxu0 }
 0x1bd   :  { %v3302_v28 = vadd.f32 %v3223_v13, %v2898_v2 }
 0x1be   :  { %v3292_v8 = vpop.f32.mrf.mxu1 }
 0x1bf   :  { %v3303_v1 = vadd.f32 %v3292_v8, %v2899_v23 }
 0x1c0   :  { %v3294_v43 = vpop.f32.mrf.mxu1 }
 0x1c1   :  { %v3304_v11 = vadd.f32 %v3294_v43, %v2900_v31 }
 0x1c6   :  { %v3554_v18 = vpop.f32.mrf.mxu1 }
 0x1c7   :  { %v3703_v29 = vadd.f32 %v3554_v18, %v3299_v35 }
 0x1c8   :  { %v3483_v52 = vpop.f32.mrf.mxu0  ;;  %v3556_v45 = vpop.f32.mrf.mxu1 }
 0x1c9   :  { %v3701_v55 = vadd.f32 %v3483_v52, %v3297_v49  ;;  %v3716_v39 = vadd.f32 %v3712_v57, %v3703_v29  ;;  %v3704_v61 = vadd.f32 %v3556_v45, %v3300_v44 }
 0x1ca   :  { %v3485_v60 = vpop.f32.mrf.mxu0 }
 0x1cb   :  { %v3714_v59 = vadd.f32 %v3712_v57, %v3701_v55  ;;  %v3702_v38 = vadd.f32 %v3485_v60, %v3298_v50  ;;  %v3724_v24 = vmax.f32 %v3716_v39, 0.0  ;;  %v3717_v3 = vadd.f32 %v3712_v57, %v3704_v61 }
 0x1cd   :  { %v3722_v16 = vmax.f32 %v3714_v59, 0.0  ;;  %v3715_v7 = vadd.f32 %v3712_v57, %v3702_v38  ;;  %v3625_v10 = vpop.f32.mrf.mxu0  ;;  %3732 = vst [vmem:[%s4940_s4 + $0x10] sm:$0xff] %v3724_v24  ;;  %v3725_v0 = vmax.f32 %v3717_v3, 0.0 }
 0x1ce   :  { %v3705_v20 = vadd.f32 %v3625_v10, %v3301_v25 }
 0x1cf   :  { %3730 = vst [vmem:[%s4940_s4] sm:$0xff] %v3722_v16  ;;  %v3723_v51 = vmax.f32 %v3715_v7, 0.0  ;;  %v3627_v5 = vpop.f32.mrf.mxu0  ;;  %3733 = vst [vmem:[%s4940_s4 + $0x18] sm:$0xff] %v3725_v0 }
 0x1d0   :  { %v3718_v17 = vadd.f32 %v3712_v57, %v3705_v20  ;;  %v3706_v34 = vadd.f32 %v3627_v5, %v3302_v28 }
 0x1d1   :  { %3731 = vst [vmem:[%s4940_s4 + $0x8] sm:$0xff] %v3723_v51  ;;  %v3696_v53 = vpop.f32.mrf.mxu1 }
 0x1d2   :  { %v3726_v36 = vmax.f32 %v3718_v17, 0.0  ;;  %v3719_v41 = vadd.f32 %v3712_v57, %v3706_v34  ;;  %v3707_v40 = vadd.f32 %v3696_v53, %v3303_v1 }
 0x1d3   :  { %v3698_v4 = vpop.f32.mrf.mxu1 }
 0x1d4   :  { %3734 = vst [vmem:[%s4940_s4 + $0x20] sm:$0xff] %v3726_v36  ;;  %v3727_v56 = vmax.f32 %v3719_v41, 0.0  ;;  %v3720_v8 = vadd.f32 %v3712_v57, %v3707_v40  ;;  %v3708_v26 = vadd.f32 %v3698_v4, %v3304_v11 }
 0x1d6   :  { %3735 = vst [vmem:[%s4940_s4 + $0x28] sm:$0xff] %v3727_v56  ;;  %v3728_v37 = vmax.f32 %v3720_v8, 0.0  ;;  %v3721_v15 = vadd.f32 %v3712_v57, %v3708_v26 }
 0x1d8   :  { %3736 = vst [vmem:[%s4940_s4 + $0x30] sm:$0xff] %v3728_v37  ;;  %v3729_v32 = vmax.f32 %v3721_v15, 0.0 }
 0x1da   :  { %3737 = vst [vmem:[%s4940_s4 + $0x38] sm:$0xff] %v3729_v32 }

// kernel: contrastive_net_ae_forward.3
= control target key start
LH: loop header
LB: loop body
LE: loop exit
PB: predicated region body
PF: predicated region fallthrough
CT: control target
= control target key end

     0   :  { %v3642_v0 = vmov 0.0   ;;  %v3643_v5 = vmov 0   ;;  %s3644_s28 = smov 16   ;;  %s3646_s29 = smov 15   ;;  %v71_v20 = vlaneseq  ;;  %v4655_v59 = vmov 0  ;;  %s4587_s1 = inlined_call_operand.vmem [shape: f32[4,512], index: 1, kind: input, shape index: {}]   ;;  %s4588_s0 = inlined_call_operand.vmem [shape: s32[2,512], index: 0, kind: input, shape index: {}]   ;;  %s4589_s3 = inlined_call_operand.vmem [shape: f32[8,1], index: 3, kind: input, shape index: {}]   ;;  %s4590_s2 = inlined_call_operand.vmem [shape: f32[9,8,4], index: 2, kind: input, shape index: {}]   ;;  %s4591_s6 = inlined_call_operand.vmem [shape: f32[8,512], index: 6, kind: output, shape index: {0}]   ;;  %s4592_s5 = inlined_call_operand.vmem [shape: f32[4,1], index: 5, kind: input, shape index: {}]   ;;  %s4593_s4 = inlined_call_operand.vmem [shape: f32[9,4,8], index: 4, kind: input, shape index: {}]   ;;  %s4594_s7 = inlined_call_operand.vmem [shape: f32[4,512], index: 7, kind: output, shape index: {1}]  }
   0x1   :  { %25 = vst [vmem:[#allocation2 + $0x28] sm:$0xff] %v3642_v0  ;;  %26 = vst [vmem:[#allocation2 + $0x10] sm:$0xff] %v3642_v0  ;;  %v35_v1 = vld [vmem:[%s4587_s1 + $0x8] sm:$0xff]  ;;  %v34_v2 = vld [vmem:[%s4587_s1] sm:$0xff]  ;;  %248 = vmatprep.mubr.f32.mxu0 %v3642_v0  ;;  %319 = vmatprep.mubr.f32.mxu1 %v3642_v0  ;;  %s3645_s1 = smov 17   ;;  %s3647_s30 = smov 1  }
   0x2   :  { %27 = vst [vmem:[#allocation2 + $0x8] sm:$0xff] %v3642_v0  ;;  %28 = vst [vmem:[#allocation2] sm:$0xff] %v3642_v0  ;;  %v48_v3 = vcombine.high %v34_v2, %v34_v2  ;;  %v49_v4 = vcombine.high %v35_v1, %v35_v1  ;;  %3638 = vset.pattern.permute.xlu0 %v3643_v5  ;;  %s3648_s8 = smov 127   ;;  %v3519_v16 = vld [vmem:[%s4588_s0 + $0x1] ss:$2 sm:$0xf] }
   0x3   :  { %29 = vst [vmem:[#allocation2 + $0x18] sm:$0xff] %v3642_v0  ;;  %30 = vst [vmem:[#allocation2 + $0x20] sm:$0xff] %v3642_v0  ;;  %v3761_v17 = vld [vmem:[%s4588_s0] ss:$2 sm:$0xf]  ;;  %v483_v18 = vadd.s32 1, %v3519_v16 }
   0x4   :  { %54 = vst [vmem:[#allocation2] sm:$0xf] %v35_v1  ;;  %52 = vst [vmem:[#allocation2 + $0x10] sm:$0xf] %v34_v2  ;;  %v1305_v19 = vadd.s32 1, %v3761_v17  ;;  %s3649_s13 = smov 113  }
   0x5   :  { %53 = vst [vmem:[#allocation2 + $0x8] sm:$0xf] %v48_v3  ;;  %55 = vst [vmem:[#allocation2 + $0x18] sm:$0xf] %v49_v4  ;;  %vm484_vm0 = vcmp.ge.s32.totalorder %v483_v18, 0  ;;  %vm485_vm1 = vcmp.lt.s32.totalorder %v483_v18, 16 }
   0x6   :  { %vm1306_vm2 = vcmp.ge.s32.totalorder %v1305_v19, 0  ;;  %vm1307_vm3 = vcmp.lt.s32.totalorder %v1305_v19, 16  ;;  %v72_v21 = vshrl.u32 %v71_v20, 7  ;;  %vm3768_vm4 = vmand %vm484_vm0, %vm485_vm1  ;;  %s3650_s0 = smov 112   ;;  %s3651_s14 = smov 111   ;;  %v45_v33 = vld [vmem:[%s4589_s3] sm:$0xff] }
   0x7   :  { %vm3772_vm5 = vmand %vm1306_vm2, %vm1307_vm3  ;;  %v56_v34 = vadd.s32 4294967295, %v3761_v17  ;;  %vm119_vm7 = vcmp.ge.s32.totalorder %v3519_v16, 0  ;;  %vm120_vm8 = vcmp.lt.s32.totalorder %v3519_v16, 16  ;;  %v60_v35 = vadd.s32 4294967295, %v3519_v16  ;;  %v37_v58 = vld [vmem:[%s4590_s2 + $0x8] sm:$0xff] }
   0x8   :  { %v65_v6 = vld [vmem:[#allocation2 + $0x28] sm:$0xf]  ;;  %v3776_v24 = vsub.s32 1, %v72_v21  ;;  %vm1721_vm6 = vmand %vm3772_vm5, %vm3768_vm4  ;;  %v3783_v25 = vsub.s32 2, %v72_v21  ;;  %v3793_v29 = vsub.s32 3, %v72_v21  ;;  %v3796_v30 = vsub.s32 0, %v72_v21 }
   0x9   :  { %144 = vrot.lane.b32.xlu0 %v65_v6, %s3644_s28  ;;  %v3786_v26 = vsel %vm1721_vm6, 1, %v3643_v5  ;;  %vm57_vm9 = vcmp.ge.s32.totalorder %v56_v34, 0  ;;  %vm58_vm10 = vcmp.lt.s32.totalorder %v56_v34, 16  ;;  %vm3827_vm11 = vmand %vm119_vm7, %vm120_vm8  ;;  %vm61_vm13 = vcmp.ge.s32.totalorder %v60_v35, 0  ;;  %v1944_v47 = vld [vmem:[%s4593_s4] sm:$0xf] }
   0xa   :  { %v1094_v14 = vld [vmem:[#allocation2 + $0x20] sm:$0xf]  ;;  %v1730_v27 = vrot.slane %v3786_v26, %v3776_v24  ;;  %v1734_v28 = vrot.slane %v3786_v26, %v3783_v25  ;;  %v1738_v31 = vrot.slane %v3786_v26, %v3793_v29  ;;  %v1726_v32 = vrot.slane %v3786_v26, %v3796_v30  ;;  %vm3831_vm12 = vmand %vm57_vm9, %vm58_vm10 }
   0xb   :  { %v3708_v7 = vld [vmem:[#allocation2] sm:$0xf]  ;;  %v3712_v8 = vld [vmem:[#allocation2 + $0x10] sm:$0xf]  ;;  %vm62_vm14 = vcmp.lt.s32.totalorder %v60_v35, 16  ;;  %vm122_vm15 = vmand %vm3831_vm12, %vm3827_vm11  ;;  %vm4596_vm2 = vcmask 130048  }
   0xc   :  { %150 = vrot.lane.b32.xlu1 %v3708_v7, %s3644_s28  ;;  %v3718_v9 = vld [vmem:[#allocation2 + $0x8] sm:$0xf]  ;;  %v3724_v10 = vld [vmem:[#allocation2 + $0x18] sm:$0xf]  ;;  %v1092_v12 = vld [vmem:[#allocation2] sm:$0xf] }
   0xd   :  { %146 = vrot.lane.b32.xlu0 %v3712_v8, %s3644_s28  ;;  %v1091_v11 = vld [vmem:[#allocation2 + $0x8] sm:$0xf]  ;;  %v1093_v13 = vld [vmem:[#allocation2 + $0x18] sm:$0xf]  ;;  %v1090_v15 = vld [vmem:[#allocation2 + $0x10] sm:$0xf] }
   0xe   :  { %vm3839_vm0 = vmand %vm61_vm13, %vm62_vm14  ;;  %v123_v41 = vsel %vm122_vm15, 1, %v3643_v5  ;;  %vm4604_vm6 = vcmask 1043456   ;;  %vm4600_vm8 = vcmask 138240   ;;  %vm4595_vm9 = vcmask 31744  }
   0xf   :  { %vm64_vm1 = vmand %vm3831_vm12, %vm3839_vm0  ;;  %v131_v42 = vrot.slane %v123_v41, %v3776_v24  ;;  %v127_v45 = vrot.slane %v123_v41, %v3796_v30  ;;  %v139_v52 = vrot.slane %v123_v41, %v3793_v29  ;;  %v135_v55 = vrot.slane %v123_v41, %v3783_v25 }
  0x10   :  { %98 = vrot.lane.b32.xlu1 %v3712_v8, %s3645_s1  ;;  %v70_v44 = vsel %vm64_vm1, 1, %v3643_v5  ;;  %vm487_vm10 = vmand %vm3831_vm12, %vm3768_vm4  ;;  %v4657_v63 = vmov 0  ;;  %v4665_v20 = vmov 0 }
  0x11   :  { %148 = vrot.lane.b32.xlu0 %v3718_v9, %s3644_s28  ;;  %vm3851_vm3 = vcmp.eq.s32.totalorder %v131_v42, 1  ;;  %v78_v48 = vrot.slane %v70_v44, %v3776_v24  ;;  %vm3857_vm7 = vcmp.eq.s32.totalorder %v127_v45, 1  ;;  %v82_v57 = vrot.slane %v70_v44, %v3783_v25  ;;  %v36_v42 = vld [vmem:[%s4590_s2] sm:$0xff] }
  0x12   :  { %v86_v61 = vrot.slane %v70_v44, %v3793_v29  ;;  %vm3883_vm14 = vcmp.eq.s32.totalorder %v139_v52, 1  ;;  %v74_v1 = vrot.slane %v70_v44, %v3796_v30  ;;  %vm3890_vm12 = vcmp.eq.s32.totalorder %v135_v55, 1 }
  0x13   :  { %vm3875_vm13 = vcmp.eq.s32.totalorder %v78_v48, 1  ;;  %v4658_v63 = vsel %vm3883_vm14, 4294967295, %v4657_v63  ;;  %vm3896_vm15 = vcmp.eq.s32.totalorder %v82_v57, 1  ;;  %v4670_v44 = vmov 0 }
  0x14   :  { %102 = vrot.lane.b32.xlu1 %v3708_v7, %s3645_s1  ;;  %v4656_v59 = vsel %vm3875_vm13, 4294967295, %v4655_v59  ;;  %vm3905_vm1 = vcmp.eq.s32.totalorder %v86_v61, 1 }
  0x15   :  { %100 = vrot.lane.b32.xlu0 %v3718_v9, %s3645_s1 }
  0x18   :  { %152 = vrot.lane.b32.xlu1 %v3724_v10, %s3644_s28 }
  0x19   :  { %104 = vrot.lane.b32.xlu0 %v3724_v10, %s3645_s1 }
  0x1c   :  { %96 = vrot.lane.b32.xlu1 %v65_v6, %s3645_s1 }
  0x1d   :  { %511 = vrot.lane.b32.xlu0 %v3712_v8, %s3646_s29 }
  0x20   :  { %513 = vrot.lane.b32.xlu1 %v3718_v9, %s3646_s29 }
  0x21   :  { %515 = vrot.lane.b32.xlu0 %v3708_v7, %s3646_s29 }
  0x24   :  { %517 = vrot.lane.b32.xlu1 %v3724_v10, %s3646_s29 }
  0x25   :  { %509 = vrot.lane.b32.xlu0 %v65_v6, %s3646_s29 }
  0x28   :  { %720 = vrot.lane.b32.xlu1 %v3712_v8, %s3647_s30 }
  0x29   :  { %722 = vrot.lane.b32.xlu0 %v3718_v9, %s3647_s30 }
  0x2c   :  { %724 = vrot.lane.b32.xlu1 %v3708_v7, %s3647_s30 }
  0x2d   :  { %726 = vrot.lane.b32.xlu0 %v3724_v10, %s3647_s30 }
  0x30   :  { %718 = vrot.lane.b32.xlu1 %v65_v6, %s3647_s30  ;;  %v4659_v6 = vmov 0 }
  0x31   :  { %1123 = vrot.lane.b32.xlu0 %v1091_v11, %s3648_s8  ;;  %v4660_v6 = vsel %vm3890_vm12, 4294967295, %v4659_v6 }
  0x34   :  { %1125 = vrot.lane.b32.xlu1 %v1092_v12, %s3648_s8 }
  0x35   :  { %1127 = vrot.lane.b32.xlu0 %v1093_v13, %s3648_s8 }
  0x38   :  { %1129 = vrot.lane.b32.xlu1 %v1094_v14, %s3648_s8 }
  0x39   :  { %1121 = vrot.lane.b32.xlu0 %v1090_v15, %s3648_s8 }
  0x3c   :  { %1333 = vrot.lane.b32.xlu1 %v1091_v11, %s3649_s13 }
  0x3d   :  { %1335 = vrot.lane.b32.xlu0 %v1092_v12, %s3649_s13 }
  0x40   :  { %1337 = vrot.lane.b32.xlu1 %v1093_v13, %s3649_s13 }
  0x41   :  { %1339 = vrot.lane.b32.xlu0 %v1094_v14, %s3649_s13 }
  0x44   :  { %1331 = vrot.lane.b32.xlu1 %v1090_v15, %s3649_s13 }
  0x45   :  { %1539 = vrot.lane.b32.xlu0 %v1091_v11, %s3650_s0 }
  0x48   :  { %1541 = vrot.lane.b32.xlu1 %v1092_v12, %s3650_s0 }
  0x49   :  { %1543 = vrot.lane.b32.xlu0 %v1093_v13, %s3650_s0 }
  0x4c   :  { %1545 = vrot.lane.b32.xlu1 %v1094_v14, %s3650_s0 }
  0x4d   :  { %1537 = vrot.lane.b32.xlu0 %v1090_v15, %s3650_s0 }
  0x50   :  { %1745 = vrot.lane.b32.xlu1 %v1091_v11, %s3651_s14  ;;  %v488_v11 = vsel %vm487_vm10, 1, %v3643_v5  ;;  %vm693_vm10 = vcmp.ge.s32.totalorder %v3761_v17, 0 }
  0x51   :  { %1747 = vrot.lane.b32.xlu0 %v1092_v12, %s3651_s14  ;;  %v4661_v12 = vmov 0  ;;  %v504_v45 = vrot.slane %v488_v11, %v3793_v29  ;;  %v500_v48 = vrot.slane %v488_v11, %v3783_v25  ;;  %v492_v52 = vrot.slane %v488_v11, %v3796_v30 }
  0x52   :  { %v4662_v12 = vsel %vm3896_vm15, 4294967295, %v4661_v12 }
  0x54   :  { %1749 = vrot.lane.b32.xlu1 %v1093_v13, %s3651_s14 }
  0x55   :  { %1751 = vrot.lane.b32.xlu0 %v1094_v14, %s3651_s14 }
  0x58   :  { %1743 = vrot.lane.b32.xlu1 %v1090_v15, %s3651_s14  ;;  %v4663_v15 = vmov 0 }
  0x59   :  { %1929 = vperm.xlu0 %3638, %v45_v33   ;;  %v4664_v15 = vsel %vm3905_vm1, 4294967295, %v4663_v15  ;;  %v496_v33 = vrot.slane %v488_v11, %v3776_v24 }
  0x5c   :  { %1968 = vrot.lane.b32.xlu1 %v3642_v0, %s3645_s1 }
  0x5d   :  { %1990 = vrot.lane.b32.xlu0 %v3642_v0, %s3644_s28 }
  0x60   :  { %2474 = vrot.lane.b32.xlu1 %v3642_v0, %s3647_s30 }
  0x61   :  { %2303 = vrot.lane.b32.xlu0 %v3642_v0, %s3646_s29 }
  0x64   :  { %2816 = vrot.lane.b32.xlu1 %v3642_v0, %s3648_s8 }
  0x65   :  { %2987 = vrot.lane.b32.xlu0 %v3642_v0, %s3649_s13 }
  0x7b   :  { %v145_v39 = vpop.permute.xlu0 %144 }
  0x7e   :  { %v151_v40 = vpop.permute.xlu1 %150 }
  0x7f   :  { %v147_v43 = vpop.permute.xlu0 %146 }
  0x80   :  { %v155_v49 = vsel %vm4596_vm2, %v145_v39, %v147_v43 }
  0x81   :  { %v163_v60 = vsel %vm3857_vm7, %v155_v49, 0.0 }
  0x82   :  { %v99_v46 = vpop.permute.xlu1 %98 }
  0x83   :  { %v149_v50 = vpop.permute.xlu0 %148 }
  0x84   :  { %v156_v54 = vsel %vm4596_vm2, %v147_v43, %v149_v50  ;;  %v157_v2 = vsel %vm4596_vm2, %v149_v50, %v151_v40 }
  0x85   :  { %v164_v56 = vsel %vm3851_vm3, %v156_v54, 0.0  ;;  %v165_v21 = vsel %vm3890_vm12, %v157_v2, 0.0  ;;  %vm4601_vm12 = vcmask 121856   ;;  %v4673_v54 = vmov 0  ;;  %v38_v2 = vld [vmem:[%s4590_s2 + $0x10] sm:$0xff] }
  0x86   :  { %v103_v53 = vpop.permute.xlu1 %102  ;;  %3520 = vmatprep.subr.msk.mxu0 %vm4604_vm6, %v164_v56  ;;  %v4675_v56 = vmov 0 }
  0x87   :  { %v101_v62 = vpop.permute.xlu0 %100  ;;  %3521 = vmatpush1.msk.msra.mxu0 %vm4604_vm6, %v163_v60 }
  0x88   :  { %v108_v3 = vsel %vm4600_vm8, %v99_v46, %v101_v62  ;;  %3522 = vmatmul.mubr.msk.f32.vlgmr.msra.gmra.mxu0 %vm4595_vm9, %v37_v58  ;;  %vm694_vm9 = vcmp.lt.s32.totalorder %v3761_v17, 16  ;;  %v109_v18 = vsel %vm4600_vm8, %v101_v62, %v103_v53 }
  0x89   :  { %v116_v13 = vsel %vm3875_vm13, %v108_v3, 0.0  ;;  %405 = vmatprep.mubr.f32.mxu0 %v3642_v0  ;;  %vm3928_vm13 = vmand %vm693_vm10, %vm694_vm9  ;;  %vm3943_vm9 = vcmp.eq.s32.totalorder %v496_v33, 1 }
  0x8a   :  { %v153_v4 = vpop.permute.xlu1 %152  ;;  %3526 = vmatprep.subr.msk.mxu0 %vm4604_vm6, %v116_v13  ;;  %v4671_v44 = vsel %vm3943_vm9, 4294967295, %v4670_v44  ;;  %vm696_vm10 = vmand %vm3928_vm13, %vm3839_vm0 }
  0x8b   :  { %v158_v14 = vsel %vm4596_vm2, %v151_v40, %v153_v4  ;;  %v105_v19 = vpop.permute.xlu0 %104  ;;  %vm3915_vm2 = vcmp.eq.s32.totalorder %v74_v1, 1  ;;  %v117_v40 = vsel %vm3896_vm15, %v109_v18, 0.0  ;;  %v697_v55 = vsel %vm696_vm10, 1, %v3643_v5 }
  0x8c   :  { %v166_v16 = vsel %vm3883_vm14, %v158_v14, 0.0  ;;  %v4666_v20 = vsel %vm3915_vm2, 4294967295, %v4665_v20  ;;  %v110_v34 = vsel %vm4600_vm8, %v103_v53, %v105_v19  ;;  %vm4667_vm14 = vcmask 31744  }
  0x8d   :  { %3523 = vmatprep.subr.msk.mxu1 %vm4604_vm6, %v166_v16  ;;  %v118_v17 = vsel %vm3905_vm1, %v110_v34, 0.0  ;;  %v705_v1 = vrot.slane %v697_v55, %v3776_v24  ;;  %vm4681_vm10 = vcmask 1043456   ;;  %vm4684_vm1 = vcmask 31744  }
  0x8e   :  { %v97_v35 = vpop.permute.xlu1 %96  ;;  %3524 = vmatpush1.msk.msra.mxu1 %vm4604_vm6, %v165_v21  ;;  %v4686_v18 = vmov 0  ;;  %v709_v19 = vrot.slane %v697_v55, %v3783_v25  ;;  %v713_v21 = vrot.slane %v697_v55, %v3793_v29  ;;  %v701_v22 = vrot.slane %v697_v55, %v3796_v30 }
  0x8f   :  { %v107_v37 = vsel %vm4600_vm8, %v97_v35, %v99_v46  ;;  %3525 = vmatmul.mubr.msk.f32.vlgmr.msra.gmra.mxu1 %vm4667_vm14, %v37_v58  ;;  %3529 = vmatprep.subr.msk.mxu1 %vm4604_vm6, %v118_v17  ;;  %v512_v43 = vpop.permute.xlu0 %511  ;;  %vm4672_vm8 = vmmov %vm4667_vm14 }
  0x90   :  { %v115_v41 = vsel %vm3915_vm2, %v107_v37, 0.0  ;;  %476 = vmatprep.mubr.f32.mxu1 %v3642_v0  ;;  %3530 = vmatpush1.msk.msra.mxu1 %vm4604_vm6, %v117_v40 }
  0x91   :  { %3527 = vmatpush1.msk.msra.mxu0 %vm4604_vm6, %v115_v41 }
  0x92   :  { %v514_v46 = vpop.permute.xlu1 %513  ;;  %3528 = vmatmul.mubr.msk.f32.vlgmr.msra.gmra.mxu0 %vm4667_vm14, %v36_v42  ;;  %vm3962_vm14 = vcmp.eq.s32.totalorder %v504_v45, 1  ;;  %v4690_v45 = vmov 0 }
  0x93   :  { %v521_v49 = vsel %vm4601_vm12, %v512_v43, %v514_v46  ;;  %3531 = vmatmul.mubr.msk.f32.vlgmr.msra.gmra.mxu1 %vm4672_vm8, %v36_v42  ;;  %611 = vmatprep.mubr.f32.mxu0 %v3642_v0  ;;  %v516_v53 = vpop.permute.xlu0 %515  ;;  %v4674_v54 = vsel %vm3962_vm14, 4294967295, %v4673_v54  ;;  %vm3967_vm12 = vcmp.eq.s32.totalorder %v500_v48, 1  ;;  %vm4677_vm8 = vcmask 121856  }
  0x94   :  { %v529_v50 = vsel %vm3943_vm9, %v521_v49, 0.0  ;;  %682 = vmatprep.mubr.f32.mxu1 %v3642_v0  ;;  %v4676_v56 = vsel %vm3967_vm12, 4294967295, %v4675_v56  ;;  %v522_v57 = vsel %vm4677_vm8, %v514_v46, %v516_v53  ;;  %vm902_vm9 = vmand %vm3928_vm13, %vm3827_vm11  ;;  %v4692_v46 = vmov 0 }
  0x95   :  { %3532 = vmatprep.subr.msk.mxu0 %vm4604_vm6, %v529_v50  ;;  %vm4678_vm15 = vmmov %vm4677_vm8  ;;  %vm3979_vm6 = vcmp.eq.s32.totalorder %v492_v52, 1  ;;  %v530_v3 = vsel %vm3967_vm12, %v522_v57, 0.0  ;;  %v903_v11 = vsel %vm902_vm9, 1, %v3643_v5  ;;  %vm4033_vm9 = vcmp.eq.s32.totalorder %v701_v22, 1 }
  0x96   :  { %v518_v58 = vpop.permute.xlu1 %517  ;;  %vm1089_vm12 = vmand %vm3928_vm13, %vm3768_vm4  ;;  %v911_v33 = vrot.slane %v903_v11, %v3776_v24  ;;  %v907_v35 = vrot.slane %v903_v11, %v3796_v30  ;;  %v919_v40 = vrot.slane %v903_v11, %v3793_v29  ;;  %v915_v42 = vrot.slane %v903_v11, %v3783_v25 }
  0x97   :  { %v523_v60 = vsel %vm4678_vm15, %v516_v53, %v518_v58  ;;  %v510_v4 = vpop.permute.xlu0 %509  ;;  %vm4682_vm15 = vmmov %vm4677_vm8  ;;  %v1095_v39 = vsel %vm1089_vm12, 1, %v3643_v5  ;;  %vm4019_vm4 = vcmp.eq.s32.totalorder %v709_v19, 1  ;;  %vm4024_vm13 = vcmp.eq.s32.totalorder %v713_v21, 1 }
  0x98   :  { %v531_v61 = vsel %vm3962_vm14, %v523_v60, 0.0  ;;  %v520_v13 = vsel %vm4682_vm15, %v510_v4, %v512_v43  ;;  %vm4683_vm8 = vmmov %vm4681_vm10  ;;  %vm4609_vm14 = vcmask 7168   ;;  %v4688_v43 = vmov 0 }
  0x99   :  { %3535 = vmatprep.subr.msk.mxu1 %vm4681_vm10, %v531_v61  ;;  %v528_v16 = vsel %vm3979_vm6, %v520_v13, 0.0  ;;  %vm4685_vm2 = vmmov %vm4683_vm8  ;;  %vm4001_vm10 = vcmp.eq.s32.totalorder %v705_v1, 1  ;;  %v4689_v43 = vsel %vm4019_vm4, 4294967295, %v4688_v43  ;;  %v4691_v45 = vsel %vm4024_vm13, 4294967295, %v4690_v45 }
  0x9a   :  { %v721_v14 = vpop.permute.xlu1 %720  ;;  %3536 = vmatpush1.msk.msra.mxu1 %vm4683_vm8, %v530_v3  ;;  %3533 = vmatpush1.msk.msra.mxu0 %vm4685_vm2, %v528_v16  ;;  %v4687_v18 = vsel %vm4001_vm10, 4294967295, %v4686_v18  ;;  %vm4028_vm12 = vcmp.eq.s32.totalorder %v911_v33, 1  ;;  %v1103_v52 = vrot.slane %v1095_v39, %v3776_v24  ;;  %vm4038_vm15 = vcmp.eq.s32.totalorder %v907_v35, 1 }
  0x9b   :  { %3537 = vmatmul.mubr.msk.f32.vlgmr.msra.gmra.mxu1 %vm4684_vm1, %v38_v2  ;;  %v723_v34 = vpop.permute.xlu0 %722  ;;  %3534 = vmatmul.mubr.msk.f32.vlgmr.msra.gmra.mxu0 %vm4684_vm1, %v38_v2  ;;  %v4693_v46 = vsel %vm4028_vm12, 4294967295, %v4692_v46  ;;  %vm4043_vm8 = vcmp.eq.s32.totalorder %v919_v40, 1  ;;  %v4698_v58 = vmov 0  ;;  %v925_v1 = vsel %vm4028_vm12, %v3718_v9, 0.0  ;;  %v39_v2 = vld [vmem:[%s4590_s2 + $0x18] sm:$0xff]  ;;  %vm4703_vm12 = vmmov %vm4685_vm2 }
  0x9c   :  { %891 = vmatprep.mubr.f32.mxu1 %v3642_v0  ;;  %v730_v17 = vsel %vm4609_vm14, %v721_v14, %v723_v34  ;;  %820 = vmatprep.mubr.f32.mxu0 %v3642_v0  ;;  %v4699_v58 = vsel %vm4043_vm8, 4294967295, %v4698_v58  ;;  %vm4056_vm1 = vcmp.eq.s32.totalorder %v915_v42, 1  ;;  %v4700_v3 = vmov 0 }
  0x9d   :  { %v738_v41 = vsel %vm4001_vm10, %v730_v17, 0.0  ;;  %v4701_v3 = vsel %vm4056_vm1, 4294967295, %v4700_v3  ;;  %v924_v9 = vsel %vm4038_vm15, %v3712_v8, 0.0  ;;  %vm4070_vm10 = vcmp.eq.s32.totalorder %v1103_v52, 1 }
  0x9e   :  { %v725_v37 = vpop.permute.xlu1 %724  ;;  %3538 = vmatprep.subr.msk.mxu0 %vm4685_vm2, %v738_v41  ;;  %v1111_v16 = vrot.slane %v1095_v39, %v3793_v29  ;;  %v927_v19 = vsel %vm4043_vm8, %v3724_v10, 0.0  ;;  %v1107_v8 = vrot.slane %v1095_v39, %v3783_v25  ;;  %v926_v33 = vsel %vm4056_vm1, %v3708_v7, 0.0  ;;  %v40_v7 = vld [vmem:[%s4590_s2 + $0x20] sm:$0xff] }
  0x9f   :  { %v731_v48 = vsel %vm4609_vm14, %v723_v34, %v725_v37  ;;  %v727_v49 = vpop.permute.xlu0 %726  ;;  %v1099_v22 = vrot.slane %v1095_v39, %v3796_v30 }
  0xa0   :  { %v732_v55 = vsel %vm4609_vm14, %v725_v37, %v727_v49  ;;  %v739_v4 = vsel %vm4019_vm4, %v731_v48, 0.0  ;;  %vm4708_vm4 = vmmov %vm4685_vm2  ;;  %v4715_v37 = vmov 0 }
  0xa1   :  { %v740_v60 = vsel %vm4024_vm13, %v732_v55, 0.0  ;;  %vm4702_vm13 = vmmov %vm4685_vm2 }
  0xa2   :  { %v719_v57 = vpop.permute.xlu1 %718  ;;  %3541 = vmatprep.subr.msk.mxu1 %vm4685_vm2, %v740_v60 }
  0xa3   :  { %v729_v61 = vsel %vm4609_vm14, %v719_v57, %v721_v14  ;;  %v1124_v13 = vpop.permute.xlu0 %1123  ;;  %3542 = vmatpush1.msk.msra.mxu1 %vm4703_vm12, %v739_v4  ;;  %vm4706_vm14 = vcmask 31744   ;;  %vm4707_vm12 = vcmask 1039360  }
  0xa4   :  { %v737_v11 = vsel %vm4033_vm9, %v729_v61, 0.0  ;;  %vm4709_vm8 = vmmov %vm4706_vm14  ;;  %v41_v61 = vld [vmem:[%s4590_s2 + $0x28] sm:$0xff] }
  0xa5   :  { %3539 = vmatpush1.msk.msra.mxu0 %vm4702_vm13, %v737_v11  ;;  %vm1309_vm13 = vmand %vm3772_vm5, %vm3839_vm0  ;;  %3543 = vmatmul.mubr.msk.f32.vlgmr.msra.gmra.mxu1 %vm4709_vm8, %v39_v2  ;;  %vm4106_vm8 = vcmp.eq.s32.totalorder %v1107_v8, 1  ;;  %v4733_v8 = vmov 0 }
  0xa6   :  { %v1126_v21 = vpop.permute.xlu1 %1125  ;;  %3544 = vmatprep.subr.msk.mxu0 %vm4685_vm2, %v925_v1  ;;  %3540 = vmatmul.mubr.msk.f32.vlgmr.msra.gmra.mxu0 %vm4706_vm14, %v39_v2  ;;  %vm4710_vm14 = vmmov %vm4685_vm2  ;;  %v1310_v17 = vsel %vm1309_vm13, 1, %v3643_v5  ;;  %v4716_v37 = vsel %vm4106_vm8, 4294967295, %v4715_v37  ;;  %vm4722_vm13 = vcmask 1043456   ;;  %v4726_v2 = vmov 0 }
  0xa7   :  { %v1133_v34 = vsel %vm4707_vm12, %v1124_v13, %v1126_v21  ;;  %3545 = vmatpush1.msk.msra.mxu0 %vm4708_vm4, %v924_v9  ;;  %3547 = vmatprep.subr.msk.mxu1 %vm4710_vm14, %v927_v19  ;;  %v1128_v38 = vpop.permute.xlu0 %1127  ;;  %vm4711_vm0 = vmmov %vm4685_vm2  ;;  %vm4100_vm2 = vcmp.eq.s32.totalorder %v1111_v16, 1  ;;  %v1318_v49 = vrot.slane %v1310_v17, %v3776_v24  ;;  %v1326_v4 = vrot.slane %v1310_v17, %v3793_v29 }
  0xa8   :  { %v1141_v10 = vsel %vm4070_vm10, %v1133_v34, 0.0  ;;  %1078 = vmatprep.mubr.f32.mxu1 %v3642_v0  ;;  %vm4714_vm4 = vmmov %vm4711_vm0  ;;  %v1134_v39 = vsel %vm4707_vm12, %v1126_v21, %v1128_v38  ;;  %1007 = vmatprep.mubr.f32.mxu0 %v3642_v0  ;;  %v1322_v9 = vrot.slane %v1310_v17, %v3783_v25  ;;  %v1314_v36 = vrot.slane %v1310_v17, %v3796_v30 }
  0xa9   :  { %3550 = vmatprep.subr.msk.mxu0 %vm4711_vm0, %v1141_v10  ;;  %3548 = vmatpush1.msk.msra.mxu1 %vm4714_vm4, %v926_v33  ;;  %vm4717_vm14 = vmmov %vm4707_vm12  ;;  %vm4718_vm0 = vcmask 31744   ;;  %vm4117_vm4 = vcmp.eq.s32.totalorder %v1099_v22, 1  ;;  %v1142_v52 = vsel %vm4106_vm8, %v1134_v39, 0.0  ;;  %v4730_v21 = vmov 0  ;;  %v42_v39 = vld [vmem:[%s4590_s2 + $0x30] sm:$0xff] }
  0xaa   :  { %v1130_v40 = vpop.permute.xlu1 %1129  ;;  %3549 = vmatmul.mubr.msk.f32.vlgmr.msra.gmra.mxu1 %vm4718_vm0, %v40_v7  ;;  %vm4719_vm1 = vmmov %vm4718_vm0  ;;  %v4736_v10 = vmov 0 }
  0xab   :  { %v1135_v41 = vsel %vm4717_vm14, %v1128_v38, %v1130_v40  ;;  %3546 = vmatmul.mubr.msk.f32.vlgmr.msra.gmra.mxu0 %vm4719_vm1, %v40_v7  ;;  %1294 = vmatprep.mubr.f32.mxu1 %v3642_v0  ;;  %v1122_v55 = vpop.permute.xlu0 %1121  ;;  %vm4723_vm1 = vmmov %vm4707_vm12  ;;  %vm4619_vm14 = vcmask 924672  }
  0xac   :  { %v1143_v42 = vsel %vm4100_vm2, %v1135_v41, 0.0  ;;  %1223 = vmatprep.mubr.f32.mxu0 %v3642_v0  ;;  %v1132_v57 = vsel %vm4723_vm1, %v1122_v55, %v1124_v13  ;;  %vm4724_vm12 = vmmov %vm4722_vm13  ;;  %vm4140_vm1 = vcmp.eq.s32.totalorder %v1318_v49, 1  ;;  %v4741_v49 = vmov 0 }
  0xad   :  { %3553 = vmatprep.subr.msk.mxu1 %vm4722_vm13, %v1143_v42  ;;  %v1140_v1 = vsel %vm4117_vm4, %v1132_v57, 0.0  ;;  %vm1515_vm13 = vmand %vm3772_vm5, %vm3827_vm11  ;;  %v4727_v2 = vsel %vm4140_vm1, 4294967295, %v4726_v2  ;;  %vm4155_vm11 = vcmp.eq.s32.totalorder %v1326_v4, 1 }
  0xae   :  { %v1334_v60 = vpop.permute.xlu1 %1333  ;;  %3554 = vmatpush1.msk.msra.mxu1 %vm4724_vm12, %v1142_v52  ;;  %vm4725_vm8 = vmmov %vm4724_vm12  ;;  %v1516_v16 = vsel %vm1515_vm13, 1, %v3643_v5  ;;  %v4731_v21 = vsel %vm4155_vm11, 4294967295, %v4730_v21 }
  0xaf   :  { %3555 = vmatmul.mubr.msk.f32.vlgmr.msra.gmra.mxu1 %vm4718_vm0, %v41_v61  ;;  %3551 = vmatpush1.msk.msra.mxu0 %vm4725_vm8, %v1140_v1  ;;  %v1336_v11 = vpop.permute.xlu0 %1335  ;;  %vm4728_vm12 = vmmov %vm4718_vm0  ;;  %4732 = vst [vmem:[#allocation3_spill] sm:$0xff] %v4731_v21  ;;  %vm4164_vm0 = vcmp.eq.s32.totalorder %v1314_v36, 1  ;;  %v1524_v5 = vrot.slane %v1516_v16, %v3776_v24  ;;  %v1532_v52 = vrot.slane %v1516_v16, %v3793_v29  ;;  %v4762_v24 = vmov 0 }
  0xb0   :  { %1504 = vmatprep.mubr.f32.mxu1 %v3642_v0  ;;  %3552 = vmatmul.mubr.msk.f32.vlgmr.msra.gmra.mxu0 %vm4728_vm12, %v41_v61  ;;  %v1343_v23 = vsel %vm4619_vm14, %v1334_v60, %v1336_v11  ;;  %vm4729_vm5 = vmmov %vm4725_vm8  ;;  %vm4159_vm8 = vcmp.eq.s32.totalorder %v1322_v9, 1  ;;  %v4737_v10 = vsel %vm4164_vm0, 4294967295, %v4736_v10  ;;  %vm4625_vm12 = vcmask 916480  }
  0xb1   :  { %1433 = vmatprep.mubr.f32.mxu0 %v3642_v0  ;;  %v1351_v19 = vsel %vm4140_vm1, %v1343_v23, 0.0  ;;  %v4734_v8 = vsel %vm4159_vm8, 4294967295, %v4733_v8  ;;  %4738 = vst [vmem:[#allocation5_spill] sm:$0xff] %v4737_v10  ;;  %vm4739_vm13 = vmmov %vm4729_vm5  ;;  %v1528_v57 = vrot.slane %v1516_v16, %v3783_v25  ;;  %v1520_v1 = vrot.slane %v1516_v16, %v3796_v30 }
  0xb2   :  { %v1338_v13 = vpop.permute.xlu1 %1337  ;;  %3556 = vmatprep.subr.msk.mxu0 %vm4729_vm5, %v1351_v19  ;;  %4735 = vst [vmem:[#allocation4_spill] sm:$0xff] %v4734_v8  ;;  %vm4740_vm1 = vmmov %vm4729_vm5  ;;  %v4749_v9 = vmov 0  ;;  %v4752_v16 = vmov 0 }
  0xb3   :  { %v1344_v33 = vsel %vm4619_vm14, %v1336_v11, %v1338_v13  ;;  %v1340_v34 = vpop.permute.xlu0 %1339  ;;  %v4746_v11 = vmov 0 }
  0xb4   :  { %v1345_v22 = vsel %vm4619_vm14, %v1338_v13, %v1340_v34  ;;  %v1352_v40 = vsel %vm4159_vm8, %v1344_v33, 0.0  ;;  %v43_v33 = vld [vmem:[%s4590_s2 + $0x38] sm:$0xff] }
  0xb5   :  { %v1353_v38 = vsel %vm4155_vm11, %v1345_v22, 0.0  ;;  %vm4183_vm11 = vcmp.eq.s32.totalorder %v1524_v5, 1 }
  0xb6   :  { %v1332_v7 = vpop.permute.xlu1 %1331  ;;  %3559 = vmatprep.subr.msk.mxu1 %vm4739_vm13, %v1353_v38  ;;  %v4742_v49 = vsel %vm4183_vm11, 4294967295, %v4741_v49  ;;  %vm4198_vm13 = vcmp.eq.s32.totalorder %v1532_v52, 1 }
  0xb7   :  { %v1342_v17 = vsel %vm4619_vm14, %v1332_v7, %v1334_v60  ;;  %v1540_v42 = vpop.permute.xlu0 %1539  ;;  %3560 = vmatpush1.msk.msra.mxu1 %vm4740_vm1, %v1352_v40  ;;  %4743 = vst [vmem:[#allocation6_spill] sm:$0xff] %v4742_v49  ;;  %vm4744_vm14 = vcmask 31744   ;;  %v4747_v11 = vsel %vm4198_vm13, 4294967295, %v4746_v11 }
  0xb8   :  { %v1350_v41 = vsel %vm4164_vm0, %v1342_v17, 0.0  ;;  %vm4745_vm8 = vmmov %vm4744_vm14  ;;  %4748 = vst [vmem:[#allocation7_spill] sm:$0xff] %v4747_v11  ;;  %v4758_v17 = vmov 0 }
  0xb9   :  { %3557 = vmatpush1.msk.msra.mxu0 %vm4729_vm5, %v1350_v41  ;;  %3561 = vmatmul.mubr.msk.f32.vlgmr.msra.gmra.mxu1 %vm4745_vm8, %v42_v39  ;;  %vm4210_vm8 = vcmp.eq.s32.totalorder %v1520_v1, 1  ;;  %vm4755_vm5 = vmmov %vm4740_vm1 }
  0xba   :  { %v1542_v55 = vpop.permute.xlu1 %1541  ;;  %3558 = vmatmul.mubr.msk.f32.vlgmr.msra.gmra.mxu0 %vm4744_vm14, %v42_v39  ;;  %1710 = vmatprep.mubr.f32.mxu1 %v3642_v0  ;;  %vm4202_vm14 = vcmp.eq.s32.totalorder %v1528_v57, 1  ;;  %v4753_v16 = vsel %vm4210_vm8, 4294967295, %v4752_v16  ;;  %vm4757_vm0 = vmmov %vm4740_vm1  ;;  %v4768_v57 = vmov 0 }
  0xbb   :  { %v1549_v60 = vsel %vm4625_vm12, %v1540_v42, %v1542_v55  ;;  %1639 = vmatprep.mubr.f32.mxu0 %v3642_v0  ;;  %v1544_v4 = vpop.permute.xlu0 %1543  ;;  %v4750_v9 = vsel %vm4202_vm14, 4294967295, %v4749_v9  ;;  %4754 = vst [vmem:[#allocation9_spill] sm:$0xff] %v4753_v16 }
  0xbc   :  { %v1557_v61 = vsel %vm4183_vm11, %v1549_v60, 0.0  ;;  %4751 = vst [vmem:[#allocation8_spill] sm:$0xff] %v4750_v9  ;;  %v1550_v36 = vsel %vm4625_vm12, %v1542_v55, %v1544_v4  ;;  %vm4640_vm11 = vcmask 908288   ;;  %v44_v60 = vld [vmem:[%s4590_s2 + $0x40] sm:$0xff] }
  0xbd   :  { %3562 = vmatprep.subr.msk.mxu0 %vm4740_vm1, %v1557_v61  ;;  %v1558_v34 = vsel %vm4202_vm14, %v1550_v36, 0.0  ;;  %vm4229_vm14 = vcmp.eq.s32.totalorder %v1730_v27, 1  ;;  %v4765_v27 = vmov 0 }
  0xbe   :  { %v1546_v23 = vpop.permute.xlu1 %1545  ;;  %v4759_v17 = vsel %vm4229_vm14, 4294967295, %v4758_v17 }
  0xbf   :  { %v1551_v13 = vsel %vm4625_vm12, %v1544_v4, %v1546_v23  ;;  %v1538_v5 = vpop.permute.xlu0 %1537  ;;  %4760 = vst [vmem:[#allocation10_spill] sm:$0xff] %v4759_v17 }
  0xc0   :  { %v1559_v19 = vsel %vm4198_vm13, %v1551_v13, 0.0  ;;  %v1548_v22 = vsel %vm4625_vm12, %v1538_v5, %v1540_v42  ;;  %vm4756_vm13 = vcmask 31744   ;;  %vm4771_vm12 = vmmov %vm4757_vm0 }
  0xc1   :  { %3565 = vmatprep.subr.msk.mxu1 %vm4755_vm5, %v1559_v19  ;;  %v1556_v38 = vsel %vm4210_vm8, %v1548_v22, 0.0  ;;  %vm4761_vm5 = vmmov %vm4756_vm13  ;;  %vm4773_vm8 = vcmask 31744  }
  0xc2   :  { %v1746_v7 = vpop.permute.xlu1 %1745  ;;  %3566 = vmatpush1.msk.msra.mxu1 %vm4740_vm1, %v1558_v34  ;;  %3563 = vmatpush1.msk.msra.mxu0 %vm4757_vm0, %v1556_v38  ;;  %vm4250_vm1 = vcmp.eq.s32.totalorder %v1734_v28, 1 }
  0xc3   :  { %3567 = vmatmul.mubr.msk.f32.vlgmr.msra.gmra.mxu1 %vm4756_vm13, %v43_v33  ;;  %v1748_v39 = vpop.permute.xlu0 %1747  ;;  %3564 = vmatmul.mubr.msk.f32.vlgmr.msra.gmra.mxu0 %vm4761_vm5, %v43_v33  ;;  %vm4243_vm13 = vcmp.eq.s32.totalorder %v1738_v31, 1  ;;  %v4766_v27 = vsel %vm4250_vm1, 4294967295, %v4765_v27  ;;  %vm4258_vm5 = vcmp.eq.s32.totalorder %v1726_v32, 1 }
  0xc4   :  { %1916 = vmatprep.mubr.f32.mxu1 %v3642_v0  ;;  %v1755_v40 = vsel %vm4640_vm11, %v1746_v7, %v1748_v39  ;;  %1845 = vmatprep.mubr.f32.mxu0 %v3642_v0  ;;  %v4763_v24 = vsel %vm4243_vm13, 4294967295, %v4762_v24  ;;  %4767 = vst [vmem:[#allocation12_spill] sm:$0xff] %v4766_v27  ;;  %v4769_v57 = vsel %vm4258_vm5, 4294967295, %v4768_v57 }
  0xc5   :  { %v1763_v42 = vsel %vm4229_vm14, %v1755_v40, 0.0  ;;  %4764 = vst [vmem:[#allocation11_spill] sm:$0xff] %v4763_v24  ;;  %4770 = vst [vmem:[#allocation13_spill] sm:$0xff] %v4769_v57 }
  0xc6   :  { %v1750_v41 = vpop.permute.xlu1 %1749  ;;  %3568 = vmatprep.subr.msk.mxu0 %vm4757_vm0, %v1763_v42  ;;  %vm4772_vm14 = vmmov %vm4757_vm0 }
  0xc7   :  { %v1756_v52 = vsel %vm4640_vm11, %v1748_v39, %v1750_v41  ;;  %v1752_v55 = vpop.permute.xlu0 %1751 }
  0xc8   :  { %v1757_v29 = vsel %vm4640_vm11, %v1750_v41, %v1752_v55  ;;  %v1764_v61 = vsel %vm4250_vm1, %v1756_v52, 0.0 }
  0xc9   :  { %v1765_v25 = vsel %vm4243_vm13, %v1757_v29, 0.0  ;;  %vm4774_vm13 = vmmov %vm4773_vm8 }
  0xca   :  { %v1744_v31 = vpop.permute.xlu1 %1743  ;;  %3571 = vmatprep.subr.msk.mxu1 %vm4757_vm0, %v1765_v25 }
  0xcb   :  { %v1754_v28 = vsel %vm4640_vm11, %v1744_v31, %v1746_v7  ;;  %3572 = vmatpush1.msk.msra.mxu1 %vm4772_vm14, %v1764_v61  ;;  %vm2012_vm14 = vcmask 64512  }
  0xcc   :  { %v1762_v26 = vsel %vm4258_vm5, %v1754_v28, 0.0  ;;  %3573 = vmatmul.mubr.msk.f32.vlgmr.msra.gmra.mxu1 %vm4774_vm13, %v44_v60  ;;  %vm4777_vm13 = vcmask 138240  }
  0xcd   :  { %3569 = vmatpush1.msk.msra.mxu0 %vm4771_vm12, %v1762_v26  ;;  %2151 = vmatprep.mubr.f32.mxu1 %v3642_v0  ;;  %vm4775_vm12 = vcmask 130048   ;;  %vm4778_vm0 = vmmov %vm4777_vm13 }
  0xce   :  { %3570 = vmatmul.mubr.msk.f32.vlgmr.msra.gmra.mxu0 %vm4773_vm8, %v44_v60  ;;  %vm4776_vm8 = vmmov %vm4775_vm12 }
  0xcf   :  { %2080 = vmatprep.mubr.f32.mxu0 %v3642_v0  ;;  %vm4780_vm11 = vmmov %vm4776_vm8 }
 0x148   :  { %v250_v32 = vpop.f32.mrf.mxu0 }
 0x14a   :  { %v252_v4 = vpop.f32.mrf.mxu0 }
 0x14f   :  { %v321_v30 = vpop.f32.mrf.mxu1 }
 0x151   :  { %v323_v1 = vpop.f32.mrf.mxu1 }
 0x152   :  { %v407_v23 = vpop.f32.mrf.mxu0 }
 0x153   :  { %v478_v36 = vpop.f32.mrf.mxu1  ;;  %v408_v29 = vadd.f32 %v407_v23, %v250_v32 }
 0x154   :  { %v409_v19 = vpop.f32.mrf.mxu0  ;;  %v479_v0 = vadd.f32 %v478_v36, %v321_v30 }
 0x155   :  { %v480_v13 = vpop.f32.mrf.mxu1  ;;  %v410_v28 = vadd.f32 %v409_v19, %v252_v4 }
 0x156   :  { %v481_v31 = vadd.f32 %v480_v13, %v323_v1 }
 0x15b   :  { %v684_v33 = vpop.f32.mrf.mxu1  ;;  %v613_v34 = vpop.f32.mrf.mxu0 }
 0x15c   :  { %v691_v60 = vadd.f32 %v684_v33, %v479_v0  ;;  %v689_v26 = vadd.f32 %v613_v34, %v408_v29 }
 0x15d   :  { %v686_v5 = vpop.f32.mrf.mxu1  ;;  %v615_v22 = vpop.f32.mrf.mxu0 }
 0x15e   :  { %v692_v57 = vadd.f32 %v686_v5, %v481_v31  ;;  %v690_v24 = vadd.f32 %v615_v22, %v410_v28 }
 0x165   :  { %v893_v7 = vpop.f32.mrf.mxu1 }
 0x166   :  { %v822_v38 = vpop.f32.mrf.mxu0  ;;  %v900_v17 = vadd.f32 %v893_v7, %v691_v60 }
 0x167   :  { %v895_v39 = vpop.f32.mrf.mxu1  ;;  %v898_v11 = vadd.f32 %v822_v38, %v689_v26  ;;  %v4358_v26 = vld [vmem:[#allocation2 + $0x28] sm:$0xff] }
 0x168   :  { %v824_v40 = vpop.f32.mrf.mxu0  ;;  %v901_v8 = vadd.f32 %v895_v39, %v692_v57 }
 0x169   :  { %v899_v49 = vadd.f32 %v824_v40, %v690_v24 }
 0x16a   :  { %v1080_v41 = vpop.f32.mrf.mxu1 }
 0x16b   :  { %v1009_v42 = vpop.f32.mrf.mxu0  ;;  %v1087_v10 = vadd.f32 %v1080_v41, %v900_v17  ;;  %v1930_v17 = vpop.permute.xlu0 %1929 }
 0x16c   :  { %v1082_v52 = vpop.f32.mrf.mxu1  ;;  %v1085_v30 = vadd.f32 %v1009_v42, %v898_v11 }
 0x16d   :  { %v1011_v55 = vpop.f32.mrf.mxu0  ;;  %v1088_v36 = vadd.f32 %v1082_v52, %v901_v8 }
 0x16e   :  { %v1086_v23 = vadd.f32 %v1011_v55, %v899_v49 }
 0x16f   :  { %v1296_v25 = vpop.f32.mrf.mxu1 }
 0x170   :  { %v1225_v61 = vpop.f32.mrf.mxu0  ;;  %v1303_v4 = vadd.f32 %v1296_v25, %v1087_v10 }
 0x171   :  { %v1298_v27 = vpop.f32.mrf.mxu1  ;;  %v1301_v33 = vadd.f32 %v1225_v61, %v1085_v30  ;;  %v1953_v30 = vld [vmem:[%s4592_s5] sm:$0xf] }
 0x172   :  { %v1227_v9 = vpop.f32.mrf.mxu0  ;;  %v1304_v34 = vadd.f32 %v1298_v27, %v1088_v36  ;;  %v1969_v36 = vpop.permute.xlu1 %1968 }
 0x173   :  { %v1302_v5 = vadd.f32 %v1227_v9, %v1086_v23 }
 0x179   :  { %v1506_v16 = vpop.f32.mrf.mxu1 }
 0x17a   :  { %v1435_v21 = vpop.f32.mrf.mxu0  ;;  %v1513_v7 = vadd.f32 %v1506_v16, %v1303_v4 }
 0x17b   :  { %v1508_v1 = vpop.f32.mrf.mxu1  ;;  %v1511_v22 = vadd.f32 %v1435_v21, %v1301_v33 }
 0x17c   :  { %v1437_v32 = vpop.f32.mrf.mxu0  ;;  %v1514_v39 = vadd.f32 %v1508_v1, %v1304_v34  ;;  %v2475_v1 = vpop.permute.xlu1 %2474 }
 0x17d   :  { %v1512_v57 = vadd.f32 %v1437_v32, %v1302_v5  ;;  %v1991_v32 = vpop.permute.xlu0 %1990 }
 0x180   :  { %v4381_v4 = vpop.permute.xlu1 %2816 }
 0x181   :  { %v2304_v23 = vpop.permute.xlu0 %2303 }
 0x183   :  { %v1712_v13 = vpop.f32.mrf.mxu1  ;;  %v1641_v19 = vpop.f32.mrf.mxu0 }
 0x184   :  { %v1719_v29 = vadd.f32 %v1712_v13, %v1513_v7  ;;  %v1717_v24 = vadd.f32 %v1641_v19, %v1511_v22 }
 0x185   :  { %v1714_v0 = vpop.f32.mrf.mxu1  ;;  %v1643_v38 = vpop.f32.mrf.mxu0 }
 0x186   :  { %v1720_v40 = vadd.f32 %v1714_v0, %v1514_v39  ;;  %v1718_v41 = vadd.f32 %v1643_v38, %v1512_v57  ;;  %v4383_v13 = vpop.permute.xlu0 %2987 }
 0x18c   :  { %v1918_v8 = vpop.f32.mrf.mxu1 }
 0x18d   :  { %v1925_v10 = vadd.f32 %v1918_v8, %v1719_v29 }
 0x18e   :  { %v1847_v11 = vpop.f32.mrf.mxu0  ;;  %v1920_v52 = vpop.f32.mrf.mxu1 }
 0x18f   :  { %v1923_v49 = vadd.f32 %v1847_v11, %v1717_v24  ;;  %v1934_v27 = vadd.f32 %v1930_v17, %v1925_v10  ;;  %v1926_v21 = vadd.f32 %v1920_v52, %v1720_v40 }
 0x190   :  { %v1849_v42 = vpop.f32.mrf.mxu0 }
 0x191   :  { %v1932_v55 = vadd.f32 %v1930_v17, %v1923_v49  ;;  %v1924_v9 = vadd.f32 %v1849_v42, %v1718_v41  ;;  %v4282_v31 = vmax.f32 %v1934_v27, 0.0  ;;  %v1935_v28 = vadd.f32 %v1930_v17, %v1926_v21  ;;  %v1945_v49 = vld [vmem:[%s4593_s4 + $0x4] sm:$0xf] }
 0x193   :  { %v4280_v16 = vmax.f32 %v1932_v55, 0.0  ;;  %v1933_v25 = vadd.f32 %v1930_v17, %v1924_v9  ;;  %1942 = vst [vmem:[%s4591_s6 + $0x10] sm:$0xff] %v4282_v31  ;;  %1956 = vst [vmem:[#allocation2] sm:$0xff] %v4282_v31  ;;  %v4296_v61 = vmax.f32 %v1935_v28, 0.0  ;;  %1996 = vrot.lane.b32.xlu0 %v4282_v31, %s3644_s28 }
 0x195   :  { %1940 = vst [vmem:[%s4591_s6] sm:$0xff] %v4280_v16  ;;  %1954 = vst [vmem:[#allocation2 + $0x10] sm:$0xff] %v4280_v16  ;;  %v4294_v60 = vmax.f32 %v1933_v25, 0.0  ;;  %1992 = vrot.lane.b32.xlu1 %v4280_v16, %s3644_s28 }
 0x196   :  { %1943 = vst [vmem:[%s4591_s6 + $0x18] sm:$0xff] %v4296_v61  ;;  %1957 = vst [vmem:[#allocation2 + $0x18] sm:$0xff] %v4296_v61 }
 0x197   :  { %1941 = vst [vmem:[%s4591_s6 + $0x8] sm:$0xff] %v4294_v60  ;;  %1955 = vst [vmem:[#allocation2 + $0x8] sm:$0xff] %v4294_v60  ;;  %2305 = vrot.lane.b32.xlu0 %v4280_v16, %s3646_s29 }
 0x199   :  { %1970 = vrot.lane.b32.xlu1 %v4280_v16, %s3645_s1 }
 0x19b   :  { %2309 = vrot.lane.b32.xlu0 %v4282_v31, %s3646_s29 }
 0x19d   :  { %1974 = vrot.lane.b32.xlu1 %v4282_v31, %s3645_s1 }
 0x19f   :  { %2808 = vrot.lane.b32.xlu0 %v4280_v16, %s3648_s8 }
 0x1a1   :  { %2476 = vrot.lane.b32.xlu1 %v4280_v16, %s3647_s30 }
 0x1a3   :  { %2983 = vrot.lane.b32.xlu0 %v4282_v31, %s3649_s13 }
 0x1a5   :  { %2480 = vrot.lane.b32.xlu1 %v4282_v31, %s3647_s30 }
 0x1a7   :  { %1972 = vrot.lane.b32.xlu0 %v4294_v60, %s3645_s1 }
 0x1a9   :  { %2812 = vrot.lane.b32.xlu1 %v4282_v31, %s3648_s8 }
 0x1ab   :  { %1976 = vrot.lane.b32.xlu0 %v4296_v61, %s3645_s1 }
 0x1ad   :  { %2979 = vrot.lane.b32.xlu1 %v4280_v16, %s3649_s13 }
 0x1af   :  { %3150 = vrot.lane.b32.xlu0 %v4280_v16, %s3650_s0 }
 0x1b1   :  { %1994 = vrot.lane.b32.xlu1 %v4294_v60, %s3644_s28 }
 0x1b3   :  { %3325 = vrot.lane.b32.xlu0 %v4282_v31, %s3651_s14 }
 0x1b5   :  { %1998 = vrot.lane.b32.xlu1 %v4296_v61, %s3644_s28 }
 0x1b7   :  { %2478 = vrot.lane.b32.xlu0 %v4294_v60, %s3647_s30 }
 0x1b9   :  { %2307 = vrot.lane.b32.xlu1 %v4294_v60, %s3646_s29 }
 0x1bb   :  { %2482 = vrot.lane.b32.xlu0 %v4296_v61, %s3647_s30 }
 0x1bd   :  { %2311 = vrot.lane.b32.xlu1 %v4296_v61, %s3646_s29 }
 0x1bf   :  { %2810 = vrot.lane.b32.xlu0 %v4294_v60, %s3648_s8 }
 0x1c1   :  { %3154 = vrot.lane.b32.xlu1 %v4282_v31, %s3650_s0 }
 0x1c3   :  { %2814 = vrot.lane.b32.xlu0 %v4296_v61, %s3648_s8 }
 0x1c5   :  { %3158 = vrot.lane.b32.xlu1 %v4358_v26, %s3650_s0 }
 0x1c7   :  { %3152 = vrot.lane.b32.xlu0 %v4294_v60, %s3650_s0 }
 0x1c9   :  { %2981 = vrot.lane.b32.xlu1 %v4294_v60, %s3649_s13 }
 0x1cb   :  { %3156 = vrot.lane.b32.xlu0 %v4296_v61, %s3650_s0 }
 0x1cd   :  { %2985 = vrot.lane.b32.xlu1 %v4296_v61, %s3649_s13 }
 0x1cf   :  { %3329 = vrot.lane.b32.xlu0 %v4358_v26, %s3651_s14 }
 0x1d1   :  { %3323 = vrot.lane.b32.xlu1 %v4294_v60, %s3651_s14 }
 0x1d3   :  { %3494 = vperm.xlu0 %3638, %v1953_v30  }
 0x1d5   :  { %3327 = vrot.lane.b32.xlu1 %v4296_v61, %s3651_s14 }
 0x1d9   :  { %3321 = vrot.lane.b32.xlu1 %v4280_v16, %s3651_s14 }
 0x205   :  { %v1997_v19 = vpop.permute.xlu0 %1996 }
 0x207   :  { %v1993_v33 = vpop.permute.xlu1 %1992 }
 0x208   :  { %v2000_v10 = vsel %vm4776_vm8, %v1991_v32, %v1993_v33  ;;  %vm4781_vm8 = vnez %v4666_v20  ;;  %v1947_v32 = vld [vmem:[%s4593_s4 + $0xc] sm:$0xf] }
 0x209   :  { %v2306_v34 = vpop.permute.xlu0 %2305 }
 0x20b   :  { %v1971_v5 = vpop.permute.xlu1 %1970 }
 0x20c   :  { %v1978_v52 = vsel %vm4778_vm0, %v1969_v36, %v1971_v5 }
 0x20d   :  { %v2310_v22 = vpop.permute.xlu0 %2309 }
 0x20f   :  { %v1975_v7 = vpop.permute.xlu1 %1974 }
 0x211   :  { %v4385_v0 = vpop.permute.xlu0 %2808 }
 0x213   :  { %v2477_v38 = vpop.permute.xlu1 %2476 }
 0x215   :  { %v4387_v57 = vpop.permute.xlu0 %2983 }
 0x217   :  { %v4389_v39 = vpop.permute.xlu1 %2480 }
 0x219   :  { %v1973_v29 = vpop.permute.xlu0 %1972 }
 0x21a   :  { %v1979_v42 = vsel %vm4777_vm13, %v1971_v5, %v1973_v29  ;;  %vm4784_vm13 = vnez %v4660_v6  ;;  %v1946_v6 = vld [vmem:[%s4593_s4 + $0x8] sm:$0xf]  ;;  %v4820_v5 = vld [vmem:[#allocation9_spill] sm:$0xff] }
 0x21b   :  { %v4391_v24 = vpop.permute.xlu1 %2812 }
 0x21d   :  { %v1977_v17 = vpop.permute.xlu0 %1976 }
 0x21f   :  { %v4393_v11 = vpop.permute.xlu1 %2979 }
 0x221   :  { %v4395_v8 = vpop.permute.xlu0 %3150 }
 0x223   :  { %v1995_v40 = vpop.permute.xlu1 %1994 }
 0x224   :  { %v2001_v41 = vsel %vm4775_vm12, %v1993_v33, %v1995_v40  ;;  %vm4779_vm12 = vnez %v4656_v59  ;;  %v1981_v59 = vsel %vm4778_vm0, %v1975_v7, %v1977_v17 }
 0x225   :  { %3574 = vmatprep.subr.msk.mxu0 %vm3851_vm3, %v2001_v41  ;;  %v4408_v55 = vpop.permute.xlu0 %3325  ;;  %vm4782_vm3 = vmmov %vm4780_vm11 }
 0x226   :  { %3575 = vmatpush1.msk.msra.mxu0 %vm3857_vm7, %v2000_v10  ;;  %v2002_v51 = vsel %vm4782_vm3, %v1995_v40, %v1997_v19  ;;  %vm4783_vm7 = vnez %v4658_v63  ;;  %v1952_v10 = vld [vmem:[%s4593_s4 + $0x20] sm:$0xf] }
 0x227   :  { %3576 = vmatmul.mubr.msk.f32.vlgmr.msra.gmra.mxu0 %vm2012_vm14, %v1945_v49  ;;  %3580 = vmatprep.subr.msk.mxu0 %vm4779_vm12, %v1979_v42  ;;  %v1999_v27 = vpop.permute.xlu1 %1998  ;;  %vm4786_vm12 = vnez %v4664_v15 }
 0x228   :  { %v2003_v9 = vsel %vm4780_vm11, %v1997_v19, %v1999_v27  ;;  %3581 = vmatpush1.msk.msra.mxu0 %vm4781_vm8, %v1978_v52  ;;  %2225 = vmatprep.mubr.f32.mxu0 %v4358_v26  ;;  %vm4785_vm11 = vmmov %vm4778_vm0  ;;  %vm4787_vm8 = vcmask 121856   ;;  %vm4791_vm0 = vcmask 7168  }
 0x229   :  { %3577 = vmatprep.subr.msk.mxu1 %vm4783_vm7, %v2003_v9  ;;  %v2479_v21 = vpop.permute.xlu0 %2478  ;;  %v1980_v25 = vsel %vm4785_vm11, %v1973_v29, %v1975_v7  ;;  %vm4788_vm3 = vmmov %vm4787_vm8  ;;  %vm4789_vm7 = vnez %v4662_v12  ;;  %v1951_v7 = vld [vmem:[%s4593_s4 + $0x1c] sm:$0xf] }
 0x22a   :  { %3578 = vmatpush1.msk.msra.mxu1 %vm4784_vm13, %v2002_v51  ;;  %v2313_v63 = vsel %vm4788_vm3, %v2304_v23, %v2306_v34  ;;  %vm4790_vm13 = vnez %v4671_v44  ;;  %v2485_v15 = vsel %vm4791_vm0, %v2477_v38, %v2479_v21  ;;  %vm4792_vm11 = vmmov %vm4791_vm0  ;;  %v4813_v23 = vld [vmem:[#allocation5_spill] sm:$0xff] }
 0x22b   :  { %3579 = vmatmul.mubr.msk.f32.vlgmr.msra.gmra.mxu1 %vm2012_vm14, %v1945_v49  ;;  %3582 = vmatmul.mubr.msk.f32.vlgmr.msra.gmra.mxu0 %vm2012_vm14, %v1944_v47  ;;  %v2308_v20 = vpop.permute.xlu1 %2307  ;;  %v2484_v44 = vsel %vm4792_vm11, %v2475_v1, %v2477_v38  ;;  %v4825_v38 = vld [vmem:[#allocation4_spill] sm:$0xff]  ;;  %v4837_v49 = vld [vmem:[#allocation11_spill] sm:$0xff] }
 0x22c   :  { %3583 = vmatprep.subr.msk.mxu1 %vm4786_vm12, %v1981_v59  ;;  %v2314_v28 = vsel %vm4787_vm8, %v2306_v34, %v2308_v20  ;;  %2296 = vmatprep.mubr.f32.mxu1 %v4358_v26  ;;  %vm4793_vm12 = vnez %v4687_v18  ;;  %vm4794_vm8 = vmmov %vm4788_vm3  ;;  %v2315_v62 = vsel %vm4788_vm3, %v2308_v20, %v2310_v22  ;;  %vm4803_vm3 = vnez %v4699_v58  ;;  %v1949_v58 = vld [vmem:[%s4593_s4 + $0x14] sm:$0xf] }
 0x22d   :  { %3584 = vmatpush1.msk.msra.mxu1 %vm4789_vm7, %v1980_v25  ;;  %3586 = vmatprep.subr.msk.mxu0 %vm4790_vm13, %v2314_v28  ;;  %v2483_v30 = vpop.permute.xlu0 %2482  ;;  %vm4796_vm7 = vnez %v4693_v46  ;;  %vm4797_vm13 = vnez %v4676_v56  ;;  %v1948_v46 = vld [vmem:[%s4593_s4 + $0x10] sm:$0xf] }
 0x22e   :  { %3587 = vmatpush1.msk.msra.mxu0 %vm3979_vm6, %v2313_v63  ;;  %2392 = vmatprep.mubr.f32.mxu0 %v4358_v26  ;;  %vm4795_vm6 = vnez %v4674_v54 }
 0x22f   :  { %3585 = vmatmul.mubr.msk.f32.vlgmr.msra.gmra.mxu1 %vm2012_vm14, %v1944_v47  ;;  %v2312_v12 = vpop.permute.xlu1 %2311  ;;  %3588 = vmatmul.mubr.msk.f32.vlgmr.msra.gmra.mxu0 %vm2012_vm14, %v1946_v6 }
 0x230   :  { %3592 = vmatprep.subr.msk.mxu0 %vm4793_vm12, %v2485_v15  ;;  %v2316_v36 = vsel %vm4794_vm8, %v2310_v22, %v2312_v12  ;;  %2463 = vmatprep.mubr.f32.mxu1 %v4358_v26  ;;  %vm4801_vm12 = vnez %v4691_v45  ;;  %vm4802_vm8 = vnez %v4689_v43  ;;  %v4822_v22 = vld [vmem:[#allocation3_spill] sm:$0xff] }
 0x231   :  { %3593 = vmatpush1.msk.msra.mxu0 %vm4033_vm9, %v2484_v44  ;;  %3589 = vmatprep.subr.msk.mxu1 %vm4795_vm6, %v2316_v36  ;;  %v2811_v18 = vpop.permute.xlu0 %2810  ;;  %vm4798_vm9 = vmmov %vm4791_vm0  ;;  %vm4799_vm0 = vcmask 1039360   ;;  %vm4806_vm6 = vnez %v4701_v3 }
 0x232   :  { %3598 = vmatprep.subr.msk.mxu0 %vm4796_vm7, %v4294_v60  ;;  %3590 = vmatpush1.msk.msra.mxu1 %vm4797_vm13, %v2315_v62  ;;  %v2487_v54 = vsel %vm4798_vm9, %v4389_v39, %v2483_v30  ;;  %v2819_v1 = vsel %vm4799_vm0, %v2811_v18, %v4391_v24  ;;  %vm4800_vm11 = vmmov %vm4798_vm9  ;;  %vm4810_vm13 = vnez %v4716_v37  ;;  %vm4811_vm9 = vnez %v4727_v2  ;;  %v4815_v37 = vld [vmem:[#allocation6_spill] sm:$0xff] }
 0x233   :  { %2563 = vmatprep.mubr.f32.mxu0 %v4358_v26  ;;  %v3155_v50 = vpop.permute.xlu1 %3154  ;;  %3591 = vmatmul.mubr.msk.f32.vlgmr.msra.gmra.mxu1 %vm2012_vm14, %v1946_v6  ;;  %v2486_v56 = vsel %vm4800_vm11, %v2479_v21, %v4389_v39  ;;  %vm4807_vm7 = vmmov %vm4799_vm0  ;;  %vm4814_vm11 = vnez %v4813_v23  ;;  %v4828_v39 = vld [vmem:[#allocation7_spill] sm:$0xff] }
 0x234   :  { %3594 = vmatmul.mubr.msk.f32.vlgmr.msra.gmra.mxu0 %vm2012_vm14, %v1947_v32  ;;  %3595 = vmatprep.subr.msk.mxu1 %vm4801_vm12, %v2487_v54  ;;  %vm4816_vm12 = vnez %v4815_v37 }
 0x235   :  { %3599 = vmatpush1.msk.msra.mxu0 %vm4038_vm15, %v4280_v16  ;;  %3596 = vmatpush1.msk.msra.mxu1 %vm4802_vm8, %v2486_v56  ;;  %v2815_v45 = vpop.permute.xlu0 %2814  ;;  %vm4804_vm15 = vmmov %vm4799_vm0 }
 0x236   :  { %3604 = vmatprep.subr.msk.mxu0 %vm4070_vm10, %v2819_v1  ;;  %3601 = vmatprep.subr.msk.mxu1 %vm4803_vm3, %v4296_v61  ;;  %v2821_v43 = vsel %vm4804_vm15, %v2815_v45, %v4381_v4  ;;  %vm4805_vm10 = vmmov %vm4799_vm0  ;;  %v2820_v3 = vsel %vm4807_vm7, %v4391_v24, %v2815_v45  ;;  %vm4812_vm0 = vcmask 916480   ;;  %v4831_v24 = vld [vmem:[#allocation8_spill] sm:$0xff] }
 0x237   :  { %2634 = vmatprep.mubr.f32.mxu1 %v4358_v26  ;;  %v3159_v60 = vpop.permute.xlu1 %3158  ;;  %2716 = vmatprep.mubr.f32.mxu0 %v4358_v26  ;;  %v2818_v53 = vsel %vm4805_vm10, %v4385_v0, %v2811_v18  ;;  %vm4818_vm3 = vmmov %vm4812_vm0  ;;  %vm4821_vm10 = vnez %v4820_v5 }
 0x238   :  { %3597 = vmatmul.mubr.msk.f32.vlgmr.msra.gmra.mxu1 %vm2012_vm14, %v1947_v32  ;;  %3600 = vmatmul.mubr.msk.f32.vlgmr.msra.gmra.mxu0 %vm2012_vm14, %v1948_v46  ;;  %vm4824_vm7 = vmmov %vm4812_vm0 }
 0x239   :  { %3602 = vmatpush1.msk.msra.mxu1 %vm4806_vm6, %v4282_v31  ;;  %3605 = vmatpush1.msk.msra.mxu0 %vm4117_vm4, %v2818_v53  ;;  %v3153_v14 = vpop.permute.xlu0 %3152  ;;  %vm4808_vm4 = vcmask 924672   ;;  %v1950_v31 = vld [vmem:[%s4593_s4 + $0x18] sm:$0xf]  ;;  %vm4823_vm6 = vnez %v4822_v22 }
 0x23a   :  { %3607 = vmatprep.subr.msk.mxu1 %vm4100_vm2, %v2821_v43  ;;  %2787 = vmatprep.mubr.f32.mxu1 %v4358_v26  ;;  %vm4809_vm2 = vmmov %vm4808_vm4  ;;  %v3161_v61 = vsel %vm4812_vm0, %v3153_v14, %v3155_v50  ;;  %v3160_v33 = vsel %vm4818_vm3, %v4395_v8, %v3153_v14  ;;  %vm4838_vm3 = vnez %v4837_v49 }
 0x23b   :  { %2897 = vmatprep.mubr.f32.mxu0 %v4358_v26  ;;  %v2982_v16 = vpop.permute.xlu1 %2981  ;;  %vm4817_vm8 = vmmov %vm4809_vm2 }
 0x23c   :  { %3603 = vmatmul.mubr.msk.f32.vlgmr.msra.gmra.mxu1 %vm2012_vm14, %v1948_v46  ;;  %v2989_v48 = vsel %vm4808_vm4, %v4393_v11, %v2982_v16  ;;  %v2990_v35 = vsel %vm4809_vm2, %v2982_v16, %v4387_v57  ;;  %3606 = vmatmul.mubr.msk.f32.vlgmr.msra.gmra.mxu0 %vm2012_vm14, %v1949_v58  ;;  %vm4819_vm15 = vmmov %vm4809_vm2  ;;  %vm4826_vm4 = vnez %v4825_v38  ;;  %v4833_v11 = vld [vmem:[#allocation10_spill] sm:$0xff] }
 0x23d   :  { %3608 = vmatpush1.msk.msra.mxu1 %vm4810_vm13, %v2820_v3  ;;  %3610 = vmatprep.subr.msk.mxu0 %vm4811_vm9, %v2990_v35  ;;  %v3157_v19 = vpop.permute.xlu0 %3156  ;;  %vm4827_vm2 = vmmov %vm4812_vm0  ;;  %vm4829_vm13 = vnez %v4828_v39  ;;  %vm4830_vm9 = vcmask 908288   ;;  %vm4832_vm0 = vnez %v4831_v24 }
 0x23e   :  { %2968 = vmatprep.mubr.f32.mxu1 %v4358_v26  ;;  %3611 = vmatpush1.msk.msra.mxu0 %vm4814_vm11, %v2989_v48  ;;  %v3163_v0 = vsel %vm4824_vm7, %v3157_v19, %v3159_v60  ;;  %vm4834_vm11 = vnez %v4833_v11 }
 0x23f   :  { %3068 = vmatprep.mubr.f32.mxu0 %v4358_v26  ;;  %v2986_v4 = vpop.permute.xlu1 %2985  ;;  %3616 = vmatprep.subr.msk.mxu0 %vm4816_vm12, %v3161_v61  ;;  %vm4835_vm12 = vmmov %vm4830_vm9 }
 0x240   :  { %3609 = vmatmul.mubr.msk.f32.vlgmr.msra.gmra.mxu1 %vm2012_vm14, %v1949_v58  ;;  %v2991_v2 = vsel %vm4817_vm8, %v4387_v57, %v2986_v4  ;;  %3612 = vmatmul.mubr.msk.f32.vlgmr.msra.gmra.mxu0 %vm2012_vm14, %v1950_v31  ;;  %v2992_v34 = vsel %vm4819_vm15, %v2986_v4, %v4383_v13  ;;  %v3162_v57 = vsel %vm4827_vm2, %v3155_v50, %v3157_v19  ;;  %vm4836_vm8 = vmmov %vm4830_vm9 }
 0x241   :  { %3139 = vmatprep.mubr.f32.mxu1 %v4358_v26  ;;  %3617 = vmatpush1.msk.msra.mxu0 %vm4821_vm10, %v3160_v33  ;;  %v3330_v17 = vpop.permute.xlu0 %3329  ;;  %vm4840_vm15 = vmmov %vm4836_vm8 }
 0x242   :  { %3613 = vmatprep.subr.msk.mxu1 %vm4823_vm6, %v2992_v34  ;;  %3239 = vmatprep.mubr.f32.mxu0 %v4358_v26 }
 0x243   :  { %3614 = vmatpush1.msk.msra.mxu1 %vm4826_vm4, %v2991_v2  ;;  %v3324_v13 = vpop.permute.xlu1 %3323 }
 0x244   :  { %3615 = vmatmul.mubr.msk.f32.vlgmr.msra.gmra.mxu1 %vm2012_vm14, %v1950_v31  ;;  %3619 = vmatprep.subr.msk.mxu1 %vm4829_vm13, %v3163_v0  ;;  %v3332_v29 = vsel %vm4830_vm9, %v3324_v13, %v4408_v55 }
 0x245   :  { %3618 = vmatmul.mubr.msk.f32.vlgmr.msra.gmra.mxu0 %vm2012_vm14, %v1951_v7  ;;  %3620 = vmatpush1.msk.msra.mxu1 %vm4832_vm0, %v3162_v57 }
 0x246   :  { %3622 = vmatprep.subr.msk.mxu0 %vm4834_vm11, %v3332_v29  ;;  %3310 = vmatprep.mubr.f32.mxu1 %v4358_v26 }
 0x247   :  { %v3328_v8 = vpop.permute.xlu1 %3327  ;;  %3410 = vmatprep.mubr.f32.mxu0 %v4358_v26 }
 0x248   :  { %3621 = vmatmul.mubr.msk.f32.vlgmr.msra.gmra.mxu1 %vm2012_vm14, %v1951_v7  ;;  %v3333_v40 = vsel %vm4835_vm12, %v4408_v55, %v3328_v8  ;;  %v3334_v41 = vsel %vm4836_vm8, %v3328_v8, %v3330_v17 }
 0x249   :  { %3625 = vmatprep.subr.msk.mxu1 %vm4838_vm3, %v3334_v41  ;;  %3481 = vmatprep.mubr.f32.mxu1 %v4358_v26 }
 0x24a   :  { %3626 = vmatpush1.msk.msra.mxu1 %vm4250_vm1, %v3333_v40 }
 0x24b   :  { %v3322_v52 = vpop.permute.xlu1 %3321 }
 0x24c   :  { %3627 = vmatmul.mubr.msk.f32.vlgmr.msra.gmra.mxu1 %vm2012_vm14, %v1952_v10  ;;  %v3331_v27 = vsel %vm4840_vm15, %v3322_v52, %v3324_v13 }
 0x24d   :  { %3623 = vmatpush1.msk.msra.mxu0 %vm4258_vm5, %v3331_v27 }
 0x24e   :  { %3624 = vmatmul.mubr.msk.f32.vlgmr.msra.gmra.mxu0 %vm2012_vm14, %v1952_v10 }
 0x2e7   :  { %v2082_v9 = vpop.f32.mrf.mxu0 }
 0x2e9   :  { %v2084_v47 = vpop.f32.mrf.mxu0 }
 0x2eb   :  { %v2153_v26 = vpop.f32.mrf.mxu1  ;;  %v2227_v51 = vpop.f32.mrf.mxu0 }
 0x2ec   :  { %v2228_v50 = vadd.f32 %v2227_v51, %v2082_v9 }
 0x2ed   :  { %v2155_v59 = vpop.f32.mrf.mxu1  ;;  %v2229_v21 = vpop.f32.mrf.mxu0 }
 0x2ee   :  { %v2230_v60 = vadd.f32 %v2229_v21, %v2084_v47 }
 0x2ef   :  { %v2298_v20 = vpop.f32.mrf.mxu1  ;;  %v2394_v25 = vpop.f32.mrf.mxu0 }
 0x2f0   :  { %v2299_v56 = vadd.f32 %v2298_v20, %v2153_v26  ;;  %v2470_v43 = vadd.f32 %v2394_v25, %v2228_v50  ;;  %v3495_v26 = vpop.permute.xlu0 %3494 }
 0x2f1   :  { %v2300_v28 = vpop.f32.mrf.mxu1  ;;  %v2396_v63 = vpop.f32.mrf.mxu0 }
 0x2f2   :  { %v2301_v53 = vadd.f32 %v2300_v28, %v2155_v59  ;;  %v2471_v61 = vadd.f32 %v2396_v63, %v2230_v60 }
 0x2f3   :  { %v2465_v6 = vpop.f32.mrf.mxu1 }
 0x2f4   :  { %v2565_v15 = vpop.f32.mrf.mxu0  ;;  %v2472_v58 = vadd.f32 %v2465_v6, %v2299_v56 }
 0x2f5   :  { %v2467_v30 = vpop.f32.mrf.mxu1  ;;  %v2641_v23 = vadd.f32 %v2565_v15, %v2470_v43 }
 0x2f6   :  { %v2567_v12 = vpop.f32.mrf.mxu0  ;;  %v2473_v3 = vadd.f32 %v2467_v30, %v2301_v53 }
 0x2f7   :  { %v2642_v2 = vadd.f32 %v2567_v12, %v2471_v61 }
 0x2f8   :  { %v2636_v44 = vpop.f32.mrf.mxu1  ;;  %v2718_v36 = vpop.f32.mrf.mxu0 }
 0x2f9   :  { %v2643_v48 = vadd.f32 %v2636_v44, %v2472_v58  ;;  %v2794_v33 = vadd.f32 %v2718_v36, %v2641_v23 }
 0x2fa   :  { %v2638_v62 = vpop.f32.mrf.mxu1  ;;  %v2720_v32 = vpop.f32.mrf.mxu0 }
 0x2fb   :  { %v2644_v4 = vadd.f32 %v2638_v62, %v2473_v3  ;;  %v2795_v0 = vadd.f32 %v2720_v32, %v2642_v2 }
 0x2fc   :  { %v2789_v18 = vpop.f32.mrf.mxu1  ;;  %v2899_v54 = vpop.f32.mrf.mxu0 }
 0x2fd   :  { %v2796_v19 = vadd.f32 %v2789_v18, %v2643_v48  ;;  %v2975_v38 = vadd.f32 %v2899_v54, %v2794_v33 }
 0x2fe   :  { %v2791_v1 = vpop.f32.mrf.mxu1  ;;  %v2901_v46 = vpop.f32.mrf.mxu0 }
 0x2ff   :  { %v2797_v34 = vadd.f32 %v2791_v1, %v2644_v4  ;;  %v2976_v29 = vadd.f32 %v2901_v46, %v2795_v0 }
 0x300   :  { %v2970_v45 = vpop.f32.mrf.mxu1  ;;  %v3070_v14 = vpop.f32.mrf.mxu0 }
 0x301   :  { %v2977_v5 = vadd.f32 %v2970_v45, %v2796_v19  ;;  %v3146_v24 = vadd.f32 %v3070_v14, %v2975_v38 }
 0x302   :  { %v2972_v16 = vpop.f32.mrf.mxu1  ;;  %v3072_v35 = vpop.f32.mrf.mxu0 }
 0x303   :  { %v2978_v13 = vadd.f32 %v2972_v16, %v2797_v34  ;;  %v3147_v41 = vadd.f32 %v3072_v35, %v2976_v29 }
 0x304   :  { %v3141_v31 = vpop.f32.mrf.mxu1 }
 0x305   :  { %v3241_v22 = vpop.f32.mrf.mxu0  ;;  %v3148_v57 = vadd.f32 %v3141_v31, %v2977_v5 }
 0x306   :  { %v3143_v37 = vpop.f32.mrf.mxu1  ;;  %v3317_v49 = vadd.f32 %v3241_v22, %v3146_v24 }
 0x307   :  { %v3149_v17 = vadd.f32 %v3143_v37, %v2978_v13  ;;  %v3243_v8 = vpop.f32.mrf.mxu0 }
 0x308   :  { %v3312_v7 = vpop.f32.mrf.mxu1  ;;  %v3318_v55 = vadd.f32 %v3243_v8, %v3147_v41 }
 0x309   :  { %v3319_v11 = vadd.f32 %v3312_v7, %v3148_v57 }
 0x30a   :  { %v3314_v39 = vpop.f32.mrf.mxu1 }
 0x30b   :  { %v3320_v10 = vadd.f32 %v3314_v39, %v3149_v17 }
 0x30c   :  { %v3483_v40 = vpop.f32.mrf.mxu1 }
 0x30d   :  { %v3490_v42 = vadd.f32 %v3483_v40, %v3319_v11 }
 0x30e   :  { %v3485_v52 = vpop.f32.mrf.mxu1  ;;  %v3412_v27 = vpop.f32.mrf.mxu0 }
 0x30f   :  { %v3491_v9 = vadd.f32 %v3485_v52, %v3320_v10  ;;  %v3488_v47 = vadd.f32 %v3412_v27, %v3317_v49  ;;  %v3499_v59 = vadd.f32 %v3495_v26, %v3490_v42 }
 0x310   :  { %v3414_v51 = vpop.f32.mrf.mxu0 }
 0x311   :  { %v3500_v21 = vadd.f32 %v3495_v26, %v3491_v9  ;;  %v3489_v20 = vadd.f32 %v3414_v51, %v3318_v55  ;;  %v3497_v28 = vadd.f32 %v3495_v26, %v3488_v47 }
 0x313   :  { %v3506_v25 = vcombine.low %v3499_v59, %v3500_v21  ;;  %v3498_v63 = vadd.f32 %v3495_v26, %v3489_v20 }
 0x315   :  { %3510 = vst [vmem:[%s4594_s7 + $0x8] sm:$0xff] %v3506_v25  ;;  %v3505_v6 = vcombine.low %v3497_v28, %v3498_v63 }
 0x317   :  { %3509 = vst [vmem:[%s4594_s7] sm:$0xff] %v3505_v6 }

</bundles_post_ra>
